<compile_context>
chip_gen: v7x
topology: tpu7x:2x2x1
jax: 0.10.0
libtpu: 0.0.40
codegen_flags: <defaults>
</compile_context>

<pallas_src>
import functools

import numpy as np

import jax
import jax.numpy as jnp
from jax.experimental import pallas as pl
from jax.experimental.pallas import tpu as pltpu

ALPHA = 1.0
TAU = 0.5
NUM_MC_SAMPLES = 5
DROP_P = 0.5

# 3x3 tap geometry, row-major over (dy, dx): identical to PyTorch Conv2d
# (cross-correlation) with padding=1.
_TAPS = tuple((dy, dx) for dy in (-1, 0, 1) for dx in (-1, 0, 1))


def _round_up(v, m):
    return (v + m - 1) // m * m


def _roll_lanes(x, shift, size):
    """out[:, p] = x[:, (p + shift) % size]  (static shift, lane axis last).

    Portable two-slice rotate (pltpu.roll would hit the XLU on real TPUs but
    has no CPU/interpret lowering; this form runs everywhere).
    """
    sh = shift % size
    if sh == 0:
        return x
    return jnp.concatenate([x[:, sh:], x[:, :sh]], axis=1)


def adaptive_diffusion_kernel(cx_ref, nz_ref, keep_ref, tap_ref,
                              w1_ref, b1_ref, w2_ref, b2_ref,
                              rec_ref, mask_ref,
                              im1_ref, im2_ref, *, W):
    """One block of Bblk images per grid step; everything lives in VMEM."""
    CP = cx_ref.shape[1]          # padded input/output channels
    SB = cx_ref.shape[2]          # Bblk * SP flattened spatial lanes
    HDP = w1_ref.shape[0]         # padded hidden channels

    cx = cx_ref[0]                # (CP, SB)  corrupted_x
    nz = nz_ref[0]                # (CP, SB)  randn_like noise
    keep = keep_ref[0]            # (NUM_MC*HDP, SB) keep masks, values {0, 1/(1-p)}
    tapm = tap_ref[...]           # (9, SB)   per-tap validity masks (border/pad zeroed)
    w1 = w1_ref[...]              # (HDP, 9*CP)
    b1 = b1_ref[...]              # (HDP, 1)
    w2 = w2_ref[...]              # (CP, 9*HDP)
    b2 = b2_ref[...]              # (CP, 1)

    shifts = [dy * W + dx for dy, dx in _TAPS]

    # NOTE: for larger C/Hd cast the matmul operands to bf16 (keep
    # preferred_element_type=f32) for native MXU throughput on v6e/v7x; at
    # C=4/Hd=8 the MXU is far from the bottleneck and f32 keeps exact parity.

    def conv1(x):
        # im2col written straight into VMEM scratch (no 9-way concat), then one
        # MXU matmul (HDP, 9*CP) @ (9*CP, SB).
        for k, sh in enumerate(shifts):
            im1_ref[k * CP:(k + 1) * CP, :] = (
                _roll_lanes(x, sh, SB) * tapm[k:k + 1, :])
        return jnp.dot(w1, im1_ref[...], preferred_element_type=jnp.float32) + b1

    def conv2_single(h):
        for k, sh in enumerate(shifts):
            im2_ref[k * HDP:(k + 1) * HDP, 0:SB] = (
                _roll_lanes(h, sh, SB) * tapm[k:k + 1, :])
        return jnp.dot(w2, im2_ref[:, 0:SB],
                       preferred_element_type=jnp.float32) + b2

    # --- compute_uncertainty: 5 MC-dropout passes ----------------------------
    # conv1 + ReLU precede dropout in the base model, so they are identical for
    # every MC sample -> computed once (hoisted out of the MC loop).
    h0 = jnp.maximum(conv1(cx), 0.0)                         # (HDP, SB)

    # Fused MC conv2: build all 5 dropped im2col activations side by side on
    # the lane axis (9*HDP, NUM_MC*SB) and run ONE wide MXU matmul.
    # Linearity: im2col(h0 * keep_s)[tap k] == E_k * roll(keep_s, k) with
    # E_k = roll(h0, k) * tapmask_k, so h0 is rolled/masked once per tap and
    # the 5 keep masks are rolled stacked (scale already folded in).
    for k, sh in enumerate(shifts):
        e_k = _roll_lanes(h0, sh, SB) * tapm[k:k + 1, :]     # (HDP, SB)
        keep_k = _roll_lanes(keep, sh, SB)                   # (NUM_MC*HDP, SB)
        for s in range(NUM_MC_SAMPLES):
            im2_ref[k * HDP:(k + 1) * HDP, s * SB:(s + 1) * SB] = (
                e_k * keep_k[s * HDP:(s + 1) * HDP, :])
    preds = jnp.dot(w2, im2_ref[...],
                    preferred_element_type=jnp.float32) + b2  # (CP, NUM_MC*SB)

    # Two-pass unbiased variance over the 5 lane slices (matches torch.var).
    slices = [preds[:, s * SB:(s + 1) * SB] for s in range(NUM_MC_SAMPLES)]
    mean = sum(slices) * (1.0 / NUM_MC_SAMPLES)
    var = sum((p - mean) * (p - mean) for p in slices) * (1.0 / (NUM_MC_SAMPLES - 1))

    # --- get_corruption_mask (inference path) --------------------------------
    # sigmoid is monotone => (sigmoid(a*(var-tau)) > 0.5) == (a*(var-tau) > 0),
    # so the exp/reciprocal are dropped with bit-identical results.
    mask = (ALPHA * (var - TAU) > 0.0).astype(jnp.float32)
    # TODO(synk): training-mode Gumbel-sigmoid relaxation not implemented
    #             (eval-mode semantics reproduced here).

    # --- further corruption + reconstruction (base model in eval mode) -------
    further = mask * cx + (1.0 - mask) * nz
    rec = conv2_single(jnp.maximum(conv1(further), 0.0))

    rec_ref[0] = rec
    mask_ref[0] = mask


def _choose_block_batch(B, SP, lane_budget=2048):
    """Largest divisor of B keeping Bblk*SP within the lane budget while
    leaving >= 2 grid steps when possible (v7x has 2 TensorCores)."""
    best = 1
    for d in range(1, B + 1):
        if B % d == 0 and d * SP <= lane_budget and B // d >= min(2, B):
            best = d
    return best


def _tap_masks(H, W, SP, Bblk):
    """(9, Bblk*SP) float32 validity masks; image border, spatial padding and
    cross-image roll wrap are all zeroed (coords are per-image)."""
    S = H * W
    p = np.arange(SP)
    row, col = p // W, p % W
    rows = []
    for dy, dx in _TAPS:
        rows.append((p < S) & (row + dy >= 0) & (row + dy < H)
                    & (col + dx >= 0) & (col + dx < W))
    m = np.stack(rows).astype(np.float32)            # (9, SP)
    return jnp.asarray(np.tile(m, (1, Bblk)))        # (9, Bblk*SP)


def _conv_weight_matrix(w, out_p, in_p):
    """PyTorch (out, in, 3, 3) -> (out_p, 9*in_p), tap-major, cross-corr order."""
    o, i, _, _ = w.shape
    wt = jnp.transpose(w.astype(jnp.float32), (0, 2, 3, 1))      # (o, kh, kw, i)
    wt = jnp.pad(wt, ((0, out_p - o), (0, 0), (0, 0), (0, in_p - i)))
    return wt.reshape(out_p, 9 * in_p)


def _to_lane_major(a, nsteps, Bblk, rows, SP):
    """(B, rows, SP) -> (nsteps, rows, Bblk*SP) with image index major on lanes."""
    a = a.reshape(nsteps, Bblk, rows, SP)
    a = jnp.transpose(a, (0, 2, 1, 3))
    return a.reshape(nsteps, rows, Bblk * SP)


def adaptive_diffusion_forward(x, corrupted_x, params, rng_key):
    """Mirrors AdaptiveDiffusionModel.forward(x, corrupted_x) -> (recon, mask).

    params = (w1, b1, w2, b2) in PyTorch Conv2d layout:
      w1: (Hd, C, 3, 3), b1: (Hd,), w2: (C, Hd, 3, 3), b2: (C,).
    rng_key drives the module's internal randomness (MC-dropout masks and the
    randn_like corruption noise).
    """
    del x  # `x` is unused by the PyTorch forward; kept for signature parity.
    w1, b1, w2, b2 = params
    B, C, H, W = corrupted_x.shape
    S = H * W
    HD = w1.shape[0]

    CP = _round_up(C, 8)            # sublane-aligned channel padding
    HDP = _round_up(HD, 8)
    SP = _round_up(S, 128)          # lane-aligned spatial padding (unmasked vst)
    Bblk = _choose_block_batch(B, SP)
    nsteps = B // Bblk
    SB = Bblk * SP

    k_noise, k_drop = jax.random.split(rng_key)

    # torch.randn_like(corrupted_x)
    noise = jax.random.normal(k_noise, (B, C, H, W), jnp.float32)

    # Inverted-dropout keep masks for the 5 MC passes with the 1/(1-p) scale
    # folded in (host-side PRNG: pltpu.prng_* has no CPU/interpret lowering).
    keep = jnp.where(
        jax.random.bernoulli(k_drop, 1.0 - DROP_P, (B, NUM_MC_SAMPLES, HD, S)),
        jnp.float32(1.0 / (1.0 - DROP_P)), jnp.float32(0.0))

    # ---- lane-dense (rows, Bblk*SP) layout per grid step ---------------------
    cx = jnp.pad(corrupted_x.reshape(B, C, S).astype(jnp.float32),
                 ((0, 0), (0, CP - C), (0, SP - S)))
    nz = jnp.pad(noise.reshape(B, C, S), ((0, 0), (0, CP - C), (0, SP - S)))
    kp = jnp.pad(keep, ((0, 0), (0, 0), (0, HDP - HD), (0, SP - S)))
    kp = kp.reshape(B, NUM_MC_SAMPLES * HDP, SP)

    cx_t = _to_lane_major(cx, nsteps, Bblk, CP, SP)
    nz_t = _to_lane_major(nz, nsteps, Bblk, CP, SP)
    kp_t = _to_lane_major(kp, nsteps, Bblk, NUM_MC_SAMPLES * HDP, SP)

    tapm = _tap_masks(H, W, SP, Bblk)                        # (9, SB)

    w1m = _conv_weight_matrix(w1, HDP, CP)                   # (HDP, 9*CP)
    b1m = jnp.pad(b1.astype(jnp.float32), (0, HDP - HD)).reshape(HDP, 1)
    w2m = _conv_weight_matrix(w2, CP, HDP)                   # (CP, 9*HDP)
    b2m = jnp.pad(b2.astype(jnp.float32), (0, CP - C)).reshape(CP, 1)

    kernel = functools.partial(adaptive_diffusion_kernel, W=W)

    grid_spec = pltpu.PrefetchScalarGridSpec(
        num_scalar_prefetch=0,
        grid=(nsteps,),
        in_specs=[
            pl.BlockSpec((1, CP, SB), lambda b: (b, 0, 0)),                    # corrupted_x
            pl.BlockSpec((1, CP, SB), lambda b: (b, 0, 0)),                    # noise
            pl.BlockSpec((1, NUM_MC_SAMPLES * HDP, SB), lambda b: (b, 0, 0)),  # MC keep masks
            pl.BlockSpec((9, SB), lambda b: (0, 0)),                           # tap masks (resident)
            pl.BlockSpec((HDP, 9 * CP), lambda b: (0, 0)),                     # conv1 weight
            pl.BlockSpec((HDP, 1), lambda b: (0, 0)),                          # conv1 bias
            pl.BlockSpec((CP, 9 * HDP), lambda b: (0, 0)),                     # conv2 weight
            pl.BlockSpec((CP, 1), lambda b: (0, 0)),                           # conv2 bias
        ],
        out_specs=[
            pl.BlockSpec((1, CP, SB), lambda b: (b, 0, 0)),                    # reconstruction
            pl.BlockSpec((1, CP, SB), lambda b: (b, 0, 0)),                    # mask
        ],
        scratch_shapes=[
            pltpu.VMEM((9 * CP, SB), jnp.float32),                             # conv1 im2col
            pltpu.VMEM((9 * HDP, NUM_MC_SAMPLES * SB), jnp.float32),           # fused MC im2col
        ],
    )

    # Explicit VMEM budget (v5e scoped default is only 16 MiB; v7x physical is
    # 64 MiB).  Tiny at these shapes; stated with generous slack.
    est = 4 * (9 * CP * SB + 9 * HDP * NUM_MC_SAMPLES * SB
               + 2 * (4 * CP * SB + NUM_MC_SAMPLES * HDP * SB + 9 * SB)
               + HDP * 9 * CP + CP * 9 * HDP + HDP + CP)
    vmem_limit = int(min(max(4 * est, 16 * 1024 * 1024), 64 * 1024 * 1024))

    rec_p, mask_p = pl.pallas_call(
        kernel,
        out_shape=(jax.ShapeDtypeStruct((nsteps, CP, SB), jnp.float32),
                   jax.ShapeDtypeStruct((nsteps, CP, SB), jnp.float32)),
        grid_spec=grid_spec,
        compiler_params=pltpu.CompilerParams(
            dimension_semantics=("parallel",),
            vmem_limit_bytes=vmem_limit),
    )(cx_t, nz_t, kp_t, tapm, w1m, b1m, w2m, b2m)

    def from_lane_major(a):
        a = a.reshape(nsteps, CP, Bblk, SP)
        a = jnp.transpose(a, (0, 2, 1, 3)).reshape(B, CP, SP)
        return a[:, :C, :S].reshape(B, C, H, W)

    return from_lane_major(rec_p), from_lane_major(mask_p)


if __name__ == "__main__":
    B, C, H, W = 2, 4, 16, 16
    HD = 8

    key = jax.random.PRNGKey(0)
    kx, kcx, kw1, kb1, kw2, kb2, krun = jax.random.split(key, 7)

    # module inputs
    x = jax.random.normal(kx, (B, C, H, W), jnp.float32)
    corrupted_x = jax.random.normal(kcx, (B, C, H, W), jnp.float32)

    # deterministic synthetic base-model parameters in PyTorch Conv2d layout
    w1 = jax.random.normal(kw1, (HD, C, 3, 3), jnp.float32) / jnp.sqrt(9.0 * C)
    b1 = 0.01 * jax.random.normal(kb1, (HD,), jnp.float32)
    w2 = jax.random.normal(kw2, (C, HD, 3, 3), jnp.float32) / jnp.sqrt(9.0 * HD)
    b2 = 0.01 * jax.random.normal(kb2, (C,), jnp.float32)

    rec, mask = adaptive_diffusion_forward(
        x, corrupted_x, (w1, b1, w2, b2), krun)
    jax.block_until_ready((rec, mask))

    assert rec.shape == (B, C, H, W) and mask.shape == (B, C, H, W)
    assert rec.dtype == jnp.float32 and mask.dtype == jnp.float32
    assert bool(jnp.all(jnp.isfinite(rec)))
    assert bool(jnp.all((mask == 0.0) | (mask == 1.0)))
    print("KERNEL_OK")
</pallas_src>

<mosaic_0001>
module attributes {stable_mosaic.version = 11 : i64} {
  func.func @adaptive_diffusion_kernel(%arg0: i32, %arg1: memref<1x8x256xf32, #tpu.memory_space<vmem>>, %arg2: memref<1x8x256xf32, #tpu.memory_space<vmem>>, %arg3: memref<1x40x256xf32, #tpu.memory_space<vmem>>, %arg4: memref<9x256xf32, #tpu.memory_space<vmem>>, %arg5: memref<8x72xf32, #tpu.memory_space<vmem>>, %arg6: memref<8x1xf32, #tpu.memory_space<vmem>>, %arg7: memref<8x72xf32, #tpu.memory_space<vmem>>, %arg8: memref<8x1xf32, #tpu.memory_space<vmem>>, %arg9: memref<1x8x256xf32, #tpu.memory_space<vmem>>, %arg10: memref<1x8x256xf32, #tpu.memory_space<vmem>>, %arg11: memref<72x256xf32, #tpu.memory_space<vmem>>, %arg12: memref<72x1280xf32, #tpu.memory_space<vmem>>) attributes {dimension_semantics = [#tpu.dimension_semantics<parallel>], iteration_bounds = array<i64: 2>, scalar_prefetch = 0 : i64, scratch_operands = 2 : i64, tpu.core_type = #tpu.core_type<tc>, window_params = [{transform_indices = @transform_0, window_bounds = array<i64: 1, 8, 256>}, {transform_indices = @transform_1, window_bounds = array<i64: 1, 8, 256>}, {transform_indices = @transform_2, window_bounds = array<i64: 1, 40, 256>}, {pipeline_mode = #tpu.pipeline_mode<synchronous>, transform_indices = @transform_3, window_bounds = array<i64: 9, 256>}, {pipeline_mode = #tpu.pipeline_mode<synchronous>, transform_indices = @transform_4, window_bounds = array<i64: 8, 72>}, {pipeline_mode = #tpu.pipeline_mode<synchronous>, transform_indices = @transform_5, window_bounds = array<i64: 8, 1>}, {pipeline_mode = #tpu.pipeline_mode<synchronous>, transform_indices = @transform_6, window_bounds = array<i64: 8, 72>}, {pipeline_mode = #tpu.pipeline_mode<synchronous>, transform_indices = @transform_7, window_bounds = array<i64: 8, 1>}, {transform_indices = @transform_8, window_bounds = array<i64: 1, 8, 256>}, {transform_indices = @transform_9, window_bounds = array<i64: 1, 8, 256>}]} {
    %c0 = arith.constant 0 : index
    %c0_0 = arith.constant 0 : index
    %c0_1 = arith.constant 0 : index
    %0 = vector.load %arg1[%c0, %c0_0, %c0_1] : memref<1x8x256xf32, #tpu.memory_space<vmem>>, vector<1x8x256xf32>
    %1 = vector.shape_cast %0 : vector<1x8x256xf32> to vector<8x256xf32>
    %c0_2 = arith.constant 0 : index
    %c0_3 = arith.constant 0 : index
    %c0_4 = arith.constant 0 : index
    %2 = vector.load %arg2[%c0_2, %c0_3, %c0_4] : memref<1x8x256xf32, #tpu.memory_space<vmem>>, vector<1x8x256xf32>
    %3 = vector.shape_cast %2 : vector<1x8x256xf32> to vector<8x256xf32>
    %c0_5 = arith.constant 0 : index
    %c0_6 = arith.constant 0 : index
    %c0_7 = arith.constant 0 : index
    %4 = vector.load %arg3[%c0_5, %c0_6, %c0_7] : memref<1x40x256xf32, #tpu.memory_space<vmem>>, vector<1x40x256xf32>
    %5 = vector.shape_cast %4 : vector<1x40x256xf32> to vector<40x256xf32>
    %c0_8 = arith.constant 0 : index
    %c0_9 = arith.constant 0 : index
    %6 = vector.load %arg4[%c0_8, %c0_9] : memref<9x256xf32, #tpu.memory_space<vmem>>, vector<9x256xf32>
    %c0_10 = arith.constant 0 : index
    %c0_11 = arith.constant 0 : index
    %7 = vector.load %arg5[%c0_10, %c0_11] : memref<8x72xf32, #tpu.memory_space<vmem>>, vector<8x72xf32>
    %c0_12 = arith.constant 0 : index
    %c0_13 = arith.constant 0 : index
    %8 = vector.load %arg6[%c0_12, %c0_13] : memref<8x1xf32, #tpu.memory_space<vmem>>, vector<8x1xf32>
    %c0_14 = arith.constant 0 : index
    %c0_15 = arith.constant 0 : index
    %9 = vector.load %arg7[%c0_14, %c0_15] : memref<8x72xf32, #tpu.memory_space<vmem>>, vector<8x72xf32>
    %c0_16 = arith.constant 0 : index
    %c0_17 = arith.constant 0 : index
    %10 = vector.load %arg8[%c0_16, %c0_17] : memref<8x1xf32, #tpu.memory_space<vmem>>, vector<8x1xf32>
    %11 = vector.extract_strided_slice %1 {offsets = [0, 239], sizes = [8, 17], strides = [1, 1]} : vector<8x256xf32> to vector<8x17xf32>
    %12 = vector.extract_strided_slice %1 {offsets = [0, 0], sizes = [8, 239], strides = [1, 1]} : vector<8x256xf32> to vector<8x239xf32>
    %13 = tpu.concatenate %11, %12 in 1 : vector<8x17xf32>, vector<8x239xf32> -> vector<8x256xf32>
    %14 = vector.extract_strided_slice %6 {offsets = [0, 0], sizes = [1, 256], strides = [1, 1]} : vector<9x256xf32> to vector<1x256xf32>
    %15 = vector.broadcast %14 : vector<1x256xf32> to vector<8x256xf32>
    %16 = arith.mulf %13, %15 : vector<8x256xf32>
    %c0_18 = arith.constant 0 : index
    %c0_19 = arith.constant 0 : index
    %17 = vector.load %arg11[%c0_18, %c0_19] : memref<72x256xf32, #tpu.memory_space<vmem>>, vector<8x256xf32>
    tpu.vector_store %arg11[%c0_18, %c0_19], %16 {strides = array<i32>} : memref<72x256xf32, #tpu.memory_space<vmem>>, vector<8x256xf32>,
    %18 = vector.extract_strided_slice %1 {offsets = [0, 240], sizes = [8, 16], strides = [1, 1]} : vector<8x256xf32> to vector<8x16xf32>
    %19 = vector.extract_strided_slice %1 {offsets = [0, 0], sizes = [8, 240], strides = [1, 1]} : vector<8x256xf32> to vector<8x240xf32>
    %20 = tpu.concatenate %18, %19 in 1 : vector<8x16xf32>, vector<8x240xf32> -> vector<8x256xf32>
    %21 = vector.extract_strided_slice %6 {offsets = [1, 0], sizes = [1, 256], strides = [1, 1]} : vector<9x256xf32> to vector<1x256xf32>
    %22 = vector.broadcast %21 : vector<1x256xf32> to vector<8x256xf32>
    %23 = arith.mulf %20, %22 : vector<8x256xf32>
    %c8 = arith.constant 8 : index
    %c0_20 = arith.constant 0 : index
    %24 = vector.load %arg11[%c8, %c0_20] : memref<72x256xf32, #tpu.memory_space<vmem>>, vector<8x256xf32>
    tpu.vector_store %arg11[%c8, %c0_20], %23 {strides = array<i32>} : memref<72x256xf32, #tpu.memory_space<vmem>>, vector<8x256xf32>,
    %25 = vector.extract_strided_slice %1 {offsets = [0, 241], sizes = [8, 15], strides = [1, 1]} : vector<8x256xf32> to vector<8x15xf32>
    %26 = vector.extract_strided_slice %1 {offsets = [0, 0], sizes = [8, 241], strides = [1, 1]} : vector<8x256xf32> to vector<8x241xf32>
    %27 = tpu.concatenate %25, %26 in 1 : vector<8x15xf32>, vector<8x241xf32> -> vector<8x256xf32>
    %28 = vector.extract_strided_slice %6 {offsets = [2, 0], sizes = [1, 256], strides = [1, 1]} : vector<9x256xf32> to vector<1x256xf32>
    %29 = vector.broadcast %28 : vector<1x256xf32> to vector<8x256xf32>
    %30 = arith.mulf %27, %29 : vector<8x256xf32>
    %c16 = arith.constant 16 : index
    %c0_21 = arith.constant 0 : index
    %31 = vector.load %arg11[%c16, %c0_21] : memref<72x256xf32, #tpu.memory_space<vmem>>, vector<8x256xf32>
    tpu.vector_store %arg11[%c16, %c0_21], %30 {strides = array<i32>} : memref<72x256xf32, #tpu.memory_space<vmem>>, vector<8x256xf32>,
    %32 = vector.extract_strided_slice %1 {offsets = [0, 255], sizes = [8, 1], strides = [1, 1]} : vector<8x256xf32> to vector<8x1xf32>
    %33 = vector.extract_strided_slice %1 {offsets = [0, 0], sizes = [8, 255], strides = [1, 1]} : vector<8x256xf32> to vector<8x255xf32>
    %34 = tpu.concatenate %32, %33 in 1 : vector<8x1xf32>, vector<8x255xf32> -> vector<8x256xf32>
    %35 = vector.extract_strided_slice %6 {offsets = [3, 0], sizes = [1, 256], strides = [1, 1]} : vector<9x256xf32> to vector<1x256xf32>
    %36 = vector.broadcast %35 : vector<1x256xf32> to vector<8x256xf32>
    %37 = arith.mulf %34, %36 : vector<8x256xf32>
    %c24 = arith.constant 24 : index
    %c0_22 = arith.constant 0 : index
    %38 = vector.load %arg11[%c24, %c0_22] : memref<72x256xf32, #tpu.memory_space<vmem>>, vector<8x256xf32>
    tpu.vector_store %arg11[%c24, %c0_22], %37 {strides = array<i32>} : memref<72x256xf32, #tpu.memory_space<vmem>>, vector<8x256xf32>,
    %39 = vector.extract_strided_slice %6 {offsets = [4, 0], sizes = [1, 256], strides = [1, 1]} : vector<9x256xf32> to vector<1x256xf32>
    %40 = vector.broadcast %39 : vector<1x256xf32> to vector<8x256xf32>
    %41 = arith.mulf %1, %40 : vector<8x256xf32>
    %c32 = arith.constant 32 : index
    %c0_23 = arith.constant 0 : index
    %42 = vector.load %arg11[%c32, %c0_23] : memref<72x256xf32, #tpu.memory_space<vmem>>, vector<8x256xf32>
    tpu.vector_store %arg11[%c32, %c0_23], %41 {strides = array<i32>} : memref<72x256xf32, #tpu.memory_space<vmem>>, vector<8x256xf32>,
    %43 = vector.extract_strided_slice %1 {offsets = [0, 1], sizes = [8, 255], strides = [1, 1]} : vector<8x256xf32> to vector<8x255xf32>
    %44 = vector.extract_strided_slice %1 {offsets = [0, 0], sizes = [8, 1], strides = [1, 1]} : vector<8x256xf32> to vector<8x1xf32>
    %45 = tpu.concatenate %43, %44 in 1 : vector<8x255xf32>, vector<8x1xf32> -> vector<8x256xf32>
    %46 = vector.extract_strided_slice %6 {offsets = [5, 0], sizes = [1, 256], strides = [1, 1]} : vector<9x256xf32> to vector<1x256xf32>
    %47 = vector.broadcast %46 : vector<1x256xf32> to vector<8x256xf32>
    %48 = arith.mulf %45, %47 : vector<8x256xf32>
    %c40 = arith.constant 40 : index
    %c0_24 = arith.constant 0 : index
    %49 = vector.load %arg11[%c40, %c0_24] : memref<72x256xf32, #tpu.memory_space<vmem>>, vector<8x256xf32>
    tpu.vector_store %arg11[%c40, %c0_24], %48 {strides = array<i32>} : memref<72x256xf32, #tpu.memory_space<vmem>>, vector<8x256xf32>,
    %50 = vector.extract_strided_slice %1 {offsets = [0, 15], sizes = [8, 241], strides = [1, 1]} : vector<8x256xf32> to vector<8x241xf32>
    %51 = vector.extract_strided_slice %1 {offsets = [0, 0], sizes = [8, 15], strides = [1, 1]} : vector<8x256xf32> to vector<8x15xf32>
    %52 = tpu.concatenate %50, %51 in 1 : vector<8x241xf32>, vector<8x15xf32> -> vector<8x256xf32>
    %53 = vector.extract_strided_slice %6 {offsets = [6, 0], sizes = [1, 256], strides = [1, 1]} : vector<9x256xf32> to vector<1x256xf32>
    %54 = vector.broadcast %53 : vector<1x256xf32> to vector<8x256xf32>
    %55 = arith.mulf %52, %54 : vector<8x256xf32>
    %c48 = arith.constant 48 : index
    %c0_25 = arith.constant 0 : index
    %56 = vector.load %arg11[%c48, %c0_25] : memref<72x256xf32, #tpu.memory_space<vmem>>, vector<8x256xf32>
    tpu.vector_store %arg11[%c48, %c0_25], %55 {strides = array<i32>} : memref<72x256xf32, #tpu.memory_space<vmem>>, vector<8x256xf32>,
    %57 = vector.extract_strided_slice %1 {offsets = [0, 16], sizes = [8, 240], strides = [1, 1]} : vector<8x256xf32> to vector<8x240xf32>
    %58 = vector.extract_strided_slice %1 {offsets = [0, 0], sizes = [8, 16], strides = [1, 1]} : vector<8x256xf32> to vector<8x16xf32>
    %59 = tpu.concatenate %57, %58 in 1 : vector<8x240xf32>, vector<8x16xf32> -> vector<8x256xf32>
    %60 = vector.extract_strided_slice %6 {offsets = [7, 0], sizes = [1, 256], strides = [1, 1]} : vector<9x256xf32> to vector<1x256xf32>
    %61 = vector.broadcast %60 : vector<1x256xf32> to vector<8x256xf32>
    %62 = arith.mulf %59, %61 : vector<8x256xf32>
    %c56 = arith.constant 56 : index
    %c0_26 = arith.constant 0 : index
    %63 = vector.load %arg11[%c56, %c0_26] : memref<72x256xf32, #tpu.memory_space<vmem>>, vector<8x256xf32>
    tpu.vector_store %arg11[%c56, %c0_26], %62 {strides = array<i32>} : memref<72x256xf32, #tpu.memory_space<vmem>>, vector<8x256xf32>,
    %64 = vector.extract_strided_slice %1 {offsets = [0, 17], sizes = [8, 239], strides = [1, 1]} : vector<8x256xf32> to vector<8x239xf32>
    %65 = vector.extract_strided_slice %1 {offsets = [0, 0], sizes = [8, 17], strides = [1, 1]} : vector<8x256xf32> to vector<8x17xf32>
    %66 = tpu.concatenate %64, %65 in 1 : vector<8x239xf32>, vector<8x17xf32> -> vector<8x256xf32>
    %67 = vector.extract_strided_slice %6 {offsets = [8, 0], sizes = [1, 256], strides = [1, 1]} : vector<9x256xf32> to vector<1x256xf32>
    %68 = vector.broadcast %67 : vector<1x256xf32> to vector<8x256xf32>
    %69 = arith.mulf %66, %68 : vector<8x256xf32>
    %c64 = arith.constant 64 : index
    %c0_27 = arith.constant 0 : index
    %70 = vector.load %arg11[%c64, %c0_27] : memref<72x256xf32, #tpu.memory_space<vmem>>, vector<8x256xf32>
    tpu.vector_store %arg11[%c64, %c0_27], %69 {strides = array<i32>} : memref<72x256xf32, #tpu.memory_space<vmem>>, vector<8x256xf32>,
    %c0_28 = arith.constant 0 : index
    %c0_29 = arith.constant 0 : index
    %71 = vector.load %arg11[%c0_28, %c0_29] : memref<72x256xf32, #tpu.memory_space<vmem>>, vector<72x256xf32>
    %cst = arith.constant dense<0.000000e+00> : vector<8x256xf32>
    %72 = tpu.matmul %7, %71, %cst {dimension_numbers = #tpu.dot_dimension_numbers<[1], [0], [0], [1], [0, 0, 1, 1], [], []>} : vector<8x72xf32>, vector<72x256xf32>, vector<8x256xf32> -> vector<8x256xf32>
    %73 = vector.broadcast %8 : vector<8x1xf32> to vector<8x256xf32>
    %74 = arith.addf %72, %73 : vector<8x256xf32>
    %cst_30 = arith.constant 0.000000e+00 : f32
    %75 = vector.broadcast %cst_30 : f32 to vector<8x256xf32>
    %76 = arith.maximumf %74, %75 : vector<8x256xf32>
    %77 = vector.extract_strided_slice %76 {offsets = [0, 239], sizes = [8, 17], strides = [1, 1]} : vector<8x256xf32> to vector<8x17xf32>
    %78 = vector.extract_strided_slice %76 {offsets = [0, 0], sizes = [8, 239], strides = [1, 1]} : vector<8x256xf32> to vector<8x239xf32>
    %79 = tpu.concatenate %77, %78 in 1 : vector<8x17xf32>, vector<8x239xf32> -> vector<8x256xf32>
    %80 = vector.extract_strided_slice %6 {offsets = [0, 0], sizes = [1, 256], strides = [1, 1]} : vector<9x256xf32> to vector<1x256xf32>
    %81 = vector.broadcast %80 : vector<1x256xf32> to vector<8x256xf32>
    %82 = arith.mulf %79, %81 : vector<8x256xf32>
    %83 = vector.extract_strided_slice %5 {offsets = [0, 239], sizes = [40, 17], strides = [1, 1]} : vector<40x256xf32> to vector<40x17xf32>
    %84 = vector.extract_strided_slice %5 {offsets = [0, 0], sizes = [40, 239], strides = [1, 1]} : vector<40x256xf32> to vector<40x239xf32>
    %85 = tpu.concatenate %83, %84 in 1 : vector<40x17xf32>, vector<40x239xf32> -> vector<40x256xf32>
    %86 = vector.extract_strided_slice %85 {offsets = [0, 0], sizes = [8, 256], strides = [1, 1]} : vector<40x256xf32> to vector<8x256xf32>
    %87 = arith.mulf %82, %86 : vector<8x256xf32>
    %c0_31 = arith.constant 0 : index
    %c0_32 = arith.constant 0 : index
    %88 = vector.load %arg12[%c0_31, %c0_32] : memref<72x1280xf32, #tpu.memory_space<vmem>>, vector<8x256xf32>
    tpu.vector_store %arg12[%c0_31, %c0_32], %87 {strides = array<i32>} : memref<72x1280xf32, #tpu.memory_space<vmem>>, vector<8x256xf32>,
    %89 = vector.extract_strided_slice %85 {offsets = [8, 0], sizes = [8, 256], strides = [1, 1]} : vector<40x256xf32> to vector<8x256xf32>
    %90 = arith.mulf %82, %89 : vector<8x256xf32>
    %c0_33 = arith.constant 0 : index
    %c256 = arith.constant 256 : index
    %91 = vector.load %arg12[%c0_33, %c256] : memref<72x1280xf32, #tpu.memory_space<vmem>>, vector<8x256xf32>
    tpu.vector_store %arg12[%c0_33, %c256], %90 {strides = array<i32>} : memref<72x1280xf32, #tpu.memory_space<vmem>>, vector<8x256xf32>,
    %92 = vector.extract_strided_slice %85 {offsets = [16, 0], sizes = [8, 256], strides = [1, 1]} : vector<40x256xf32> to vector<8x256xf32>
    %93 = arith.mulf %82, %92 : vector<8x256xf32>
    %c0_34 = arith.constant 0 : index
    %c512 = arith.constant 512 : index
    %94 = vector.load %arg12[%c0_34, %c512] : memref<72x1280xf32, #tpu.memory_space<vmem>>, vector<8x256xf32>
    tpu.vector_store %arg12[%c0_34, %c512], %93 {strides = array<i32>} : memref<72x1280xf32, #tpu.memory_space<vmem>>, vector<8x256xf32>,
    %95 = vector.extract_strided_slice %85 {offsets = [24, 0], sizes = [8, 256], strides = [1, 1]} : vector<40x256xf32> to vector<8x256xf32>
    %96 = arith.mulf %82, %95 : vector<8x256xf32>
    %c0_35 = arith.constant 0 : index
    %c768 = arith.constant 768 : index
    %97 = vector.load %arg12[%c0_35, %c768] : memref<72x1280xf32, #tpu.memory_space<vmem>>, vector<8x256xf32>
    tpu.vector_store %arg12[%c0_35, %c768], %96 {strides = array<i32>} : memref<72x1280xf32, #tpu.memory_space<vmem>>, vector<8x256xf32>,
    %98 = vector.extract_strided_slice %85 {offsets = [32, 0], sizes = [8, 256], strides = [1, 1]} : vector<40x256xf32> to vector<8x256xf32>
    %99 = arith.mulf %82, %98 : vector<8x256xf32>
    %c0_36 = arith.constant 0 : index
    %c1024 = arith.constant 1024 : index
    %100 = vector.load %arg12[%c0_36, %c1024] : memref<72x1280xf32, #tpu.memory_space<vmem>>, vector<8x256xf32>
    tpu.vector_store %arg12[%c0_36, %c1024], %99 {strides = array<i32>} : memref<72x1280xf32, #tpu.memory_space<vmem>>, vector<8x256xf32>,
    %101 = vector.extract_strided_slice %76 {offsets = [0, 240], sizes = [8, 16], strides = [1, 1]} : vector<8x256xf32> to vector<8x16xf32>
    %102 = vector.extract_strided_slice %76 {offsets = [0, 0], sizes = [8, 240], strides = [1, 1]} : vector<8x256xf32> to vector<8x240xf32>
    %103 = tpu.concatenate %101, %102 in 1 : vector<8x16xf32>, vector<8x240xf32> -> vector<8x256xf32>
    %104 = vector.extract_strided_slice %6 {offsets = [1, 0], sizes = [1, 256], strides = [1, 1]} : vector<9x256xf32> to vector<1x256xf32>
    %105 = vector.broadcast %104 : vector<1x256xf32> to vector<8x256xf32>
    %106 = arith.mulf %103, %105 : vector<8x256xf32>
    %107 = vector.extract_strided_slice %5 {offsets = [0, 240], sizes = [40, 16], strides = [1, 1]} : vector<40x256xf32> to vector<40x16xf32>
    %108 = vector.extract_strided_slice %5 {offsets = [0, 0], sizes = [40, 240], strides = [1, 1]} : vector<40x256xf32> to vector<40x240xf32>
    %109 = tpu.concatenate %107, %108 in 1 : vector<40x16xf32>, vector<40x240xf32> -> vector<40x256xf32>
    %110 = vector.extract_strided_slice %109 {offsets = [0, 0], sizes = [8, 256], strides = [1, 1]} : vector<40x256xf32> to vector<8x256xf32>
    %111 = arith.mulf %106, %110 : vector<8x256xf32>
    %c8_37 = arith.constant 8 : index
    %c0_38 = arith.constant 0 : index
    %112 = vector.load %arg12[%c8_37, %c0_38] : memref<72x1280xf32, #tpu.memory_space<vmem>>, vector<8x256xf32>
    tpu.vector_store %arg12[%c8_37, %c0_38], %111 {strides = array<i32>} : memref<72x1280xf32, #tpu.memory_space<vmem>>, vector<8x256xf32>,
    %113 = vector.extract_strided_slice %109 {offsets = [8, 0], sizes = [8, 256], strides = [1, 1]} : vector<40x256xf32> to vector<8x256xf32>
    %114 = arith.mulf %106, %113 : vector<8x256xf32>
    %c8_39 = arith.constant 8 : index
    %c256_40 = arith.constant 256 : index
    %115 = vector.load %arg12[%c8_39, %c256_40] : memref<72x1280xf32, #tpu.memory_space<vmem>>, vector<8x256xf32>
    tpu.vector_store %arg12[%c8_39, %c256_40], %114 {strides = array<i32>} : memref<72x1280xf32, #tpu.memory_space<vmem>>, vector<8x256xf32>,
    %116 = vector.extract_strided_slice %109 {offsets = [16, 0], sizes = [8, 256], strides = [1, 1]} : vector<40x256xf32> to vector<8x256xf32>
    %117 = arith.mulf %106, %116 : vector<8x256xf32>
    %c8_41 = arith.constant 8 : index
    %c512_42 = arith.constant 512 : index
    %118 = vector.load %arg12[%c8_41, %c512_42] : memref<72x1280xf32, #tpu.memory_space<vmem>>, vector<8x256xf32>
    tpu.vector_store %arg12[%c8_41, %c512_42], %117 {strides = array<i32>} : memref<72x1280xf32, #tpu.memory_space<vmem>>, vector<8x256xf32>,
    %119 = vector.extract_strided_slice %109 {offsets = [24, 0], sizes = [8, 256], strides = [1, 1]} : vector<40x256xf32> to vector<8x256xf32>
    %120 = arith.mulf %106, %119 : vector<8x256xf32>
    %c8_43 = arith.constant 8 : index
    %c768_44 = arith.constant 768 : index
    %121 = vector.load %arg12[%c8_43, %c768_44] : memref<72x1280xf32, #tpu.memory_space<vmem>>, vector<8x256xf32>
    tpu.vector_store %arg12[%c8_43, %c768_44], %120 {strides = array<i32>} : memref<72x1280xf32, #tpu.memory_space<vmem>>, vector<8x256xf32>,
    %122 = vector.extract_strided_slice %109 {offsets = [32, 0], sizes = [8, 256], strides = [1, 1]} : vector<40x256xf32> to vector<8x256xf32>
    %123 = arith.mulf %106, %122 : vector<8x256xf32>
    %c8_45 = arith.constant 8 : index
    %c1024_46 = arith.constant 1024 : index
    %124 = vector.load %arg12[%c8_45, %c1024_46] : memref<72x1280xf32, #tpu.memory_space<vmem>>, vector<8x256xf32>
    tpu.vector_store %arg12[%c8_45, %c1024_46], %123 {strides = array<i32>} : memref<72x1280xf32, #tpu.memory_space<vmem>>, vector<8x256xf32>,
    %125 = vector.extract_strided_slice %76 {offsets = [0, 241], sizes = [8, 15], strides = [1, 1]} : vector<8x256xf32> to vector<8x15xf32>
    %126 = vector.extract_strided_slice %76 {offsets = [0, 0], sizes = [8, 241], strides = [1, 1]} : vector<8x256xf32> to vector<8x241xf32>
    %127 = tpu.concatenate %125, %126 in 1 : vector<8x15xf32>, vector<8x241xf32> -> vector<8x256xf32>
    %128 = vector.extract_strided_slice %6 {offsets = [2, 0], sizes = [1, 256], strides = [1, 1]} : vector<9x256xf32> to vector<1x256xf32>
    %129 = vector.broadcast %128 : vector<1x256xf32> to vector<8x256xf32>
    %130 = arith.mulf %127, %129 : vector<8x256xf32>
    %131 = vector.extract_strided_slice %5 {offsets = [0, 241], sizes = [40, 15], strides = [1, 1]} : vector<40x256xf32> to vector<40x15xf32>
    %132 = vector.extract_strided_slice %5 {offsets = [0, 0], sizes = [40, 241], strides = [1, 1]} : vector<40x256xf32> to vector<40x241xf32>
    %133 = tpu.concatenate %131, %132 in 1 : vector<40x15xf32>, vector<40x241xf32> -> vector<40x256xf32>
    %134 = vector.extract_strided_slice %133 {offsets = [0, 0], sizes = [8, 256], strides = [1, 1]} : vector<40x256xf32> to vector<8x256xf32>
    %135 = arith.mulf %130, %134 : vector<8x256xf32>
    %c16_47 = arith.constant 16 : index
    %c0_48 = arith.constant 0 : index
    %136 = vector.load %arg12[%c16_47, %c0_48] : memref<72x1280xf32, #tpu.memory_space<vmem>>, vector<8x256xf32>
    tpu.vector_store %arg12[%c16_47, %c0_48], %135 {strides = array<i32>} : memref<72x1280xf32, #tpu.memory_space<vmem>>, vector<8x256xf32>,
    %137 = vector.extract_strided_slice %133 {offsets = [8, 0], sizes = [8, 256], strides = [1, 1]} : vector<40x256xf32> to vector<8x256xf32>
    %138 = arith.mulf %130, %137 : vector<8x256xf32>
    %c16_49 = arith.constant 16 : index
    %c256_50 = arith.constant 256 : index
    %139 = vector.load %arg12[%c16_49, %c256_50] : memref<72x1280xf32, #tpu.memory_space<vmem>>, vector<8x256xf32>
    tpu.vector_store %arg12[%c16_49, %c256_50], %138 {strides = array<i32>} : memref<72x1280xf32, #tpu.memory_space<vmem>>, vector<8x256xf32>,
    %140 = vector.extract_strided_slice %133 {offsets = [16, 0], sizes = [8, 256], strides = [1, 1]} : vector<40x256xf32> to vector<8x256xf32>
    %141 = arith.mulf %130, %140 : vector<8x256xf32>
    %c16_51 = arith.constant 16 : index
    %c512_52 = arith.constant 512 : index
    %142 = vector.load %arg12[%c16_51, %c512_52] : memref<72x1280xf32, #tpu.memory_space<vmem>>, vector<8x256xf32>
    tpu.vector_store %arg12[%c16_51, %c512_52], %141 {strides = array<i32>} : memref<72x1280xf32, #tpu.memory_space<vmem>>, vector<8x256xf32>,
    %143 = vector.extract_strided_slice %133 {offsets = [24, 0], sizes = [8, 256], strides = [1, 1]} : vector<40x256xf32> to vector<8x256xf32>
    %144 = arith.mulf %130, %143 : vector<8x256xf32>
    %c16_53 = arith.constant 16 : index
    %c768_54 = arith.constant 768 : index
    %145 = vector.load %arg12[%c16_53, %c768_54] : memref<72x1280xf32, #tpu.memory_space<vmem>>, vector<8x256xf32>
    tpu.vector_store %arg12[%c16_53, %c768_54], %144 {strides = array<i32>} : memref<72x1280xf32, #tpu.memory_space<vmem>>, vector<8x256xf32>,
    %146 = vector.extract_strided_slice %133 {offsets = [32, 0], sizes = [8, 256], strides = [1, 1]} : vector<40x256xf32> to vector<8x256xf32>
    %147 = arith.mulf %130, %146 : vector<8x256xf32>
    %c16_55 = arith.constant 16 : index
    %c1024_56 = arith.constant 1024 : index
    %148 = vector.load %arg12[%c16_55, %c1024_56] : memref<72x1280xf32, #tpu.memory_space<vmem>>, vector<8x256xf32>
    tpu.vector_store %arg12[%c16_55, %c1024_56], %147 {strides = array<i32>} : memref<72x1280xf32, #tpu.memory_space<vmem>>, vector<8x256xf32>,
    %149 = vector.extract_strided_slice %76 {offsets = [0, 255], sizes = [8, 1], strides = [1, 1]} : vector<8x256xf32> to vector<8x1xf32>
    %150 = vector.extract_strided_slice %76 {offsets = [0, 0], sizes = [8, 255], strides = [1, 1]} : vector<8x256xf32> to vector<8x255xf32>
    %151 = tpu.concatenate %149, %150 in 1 : vector<8x1xf32>, vector<8x255xf32> -> vector<8x256xf32>
    %152 = vector.extract_strided_slice %6 {offsets = [3, 0], sizes = [1, 256], strides = [1, 1]} : vector<9x256xf32> to vector<1x256xf32>
    %153 = vector.broadcast %152 : vector<1x256xf32> to vector<8x256xf32>
    %154 = arith.mulf %151, %153 : vector<8x256xf32>
    %155 = vector.extract_strided_slice %5 {offsets = [0, 255], sizes = [40, 1], strides = [1, 1]} : vector<40x256xf32> to vector<40x1xf32>
    %156 = vector.extract_strided_slice %5 {offsets = [0, 0], sizes = [40, 255], strides = [1, 1]} : vector<40x256xf32> to vector<40x255xf32>
    %157 = tpu.concatenate %155, %156 in 1 : vector<40x1xf32>, vector<40x255xf32> -> vector<40x256xf32>
    %158 = vector.extract_strided_slice %157 {offsets = [0, 0], sizes = [8, 256], strides = [1, 1]} : vector<40x256xf32> to vector<8x256xf32>
    %159 = arith.mulf %154, %158 : vector<8x256xf32>
    %c24_57 = arith.constant 24 : index
    %c0_58 = arith.constant 0 : index
    %160 = vector.load %arg12[%c24_57, %c0_58] : memref<72x1280xf32, #tpu.memory_space<vmem>>, vector<8x256xf32>
    tpu.vector_store %arg12[%c24_57, %c0_58], %159 {strides = array<i32>} : memref<72x1280xf32, #tpu.memory_space<vmem>>, vector<8x256xf32>,
    %161 = vector.extract_strided_slice %157 {offsets = [8, 0], sizes = [8, 256], strides = [1, 1]} : vector<40x256xf32> to vector<8x256xf32>
    %162 = arith.mulf %154, %161 : vector<8x256xf32>
    %c24_59 = arith.constant 24 : index
    %c256_60 = arith.constant 256 : index
    %163 = vector.load %arg12[%c24_59, %c256_60] : memref<72x1280xf32, #tpu.memory_space<vmem>>, vector<8x256xf32>
    tpu.vector_store %arg12[%c24_59, %c256_60], %162 {strides = array<i32>} : memref<72x1280xf32, #tpu.memory_space<vmem>>, vector<8x256xf32>,
    %164 = vector.extract_strided_slice %157 {offsets = [16, 0], sizes = [8, 256], strides = [1, 1]} : vector<40x256xf32> to vector<8x256xf32>
    %165 = arith.mulf %154, %164 : vector<8x256xf32>
    %c24_61 = arith.constant 24 : index
    %c512_62 = arith.constant 512 : index
    %166 = vector.load %arg12[%c24_61, %c512_62] : memref<72x1280xf32, #tpu.memory_space<vmem>>, vector<8x256xf32>
    tpu.vector_store %arg12[%c24_61, %c512_62], %165 {strides = array<i32>} : memref<72x1280xf32, #tpu.memory_space<vmem>>, vector<8x256xf32>,
    %167 = vector.extract_strided_slice %157 {offsets = [24, 0], sizes = [8, 256], strides = [1, 1]} : vector<40x256xf32> to vector<8x256xf32>
    %168 = arith.mulf %154, %167 : vector<8x256xf32>
    %c24_63 = arith.constant 24 : index
    %c768_64 = arith.constant 768 : index
    %169 = vector.load %arg12[%c24_63, %c768_64] : memref<72x1280xf32, #tpu.memory_space<vmem>>, vector<8x256xf32>
    tpu.vector_store %arg12[%c24_63, %c768_64], %168 {strides = array<i32>} : memref<72x1280xf32, #tpu.memory_space<vmem>>, vector<8x256xf32>,
    %170 = vector.extract_strided_slice %157 {offsets = [32, 0], sizes = [8, 256], strides = [1, 1]} : vector<40x256xf32> to vector<8x256xf32>
    %171 = arith.mulf %154, %170 : vector<8x256xf32>
    %c24_65 = arith.constant 24 : index
    %c1024_66 = arith.constant 1024 : index
    %172 = vector.load %arg12[%c24_65, %c1024_66] : memref<72x1280xf32, #tpu.memory_space<vmem>>, vector<8x256xf32>
    tpu.vector_store %arg12[%c24_65, %c1024_66], %171 {strides = array<i32>} : memref<72x1280xf32, #tpu.memory_space<vmem>>, vector<8x256xf32>,
    %173 = vector.extract_strided_slice %6 {offsets = [4, 0], sizes = [1, 256], strides = [1, 1]} : vector<9x256xf32> to vector<1x256xf32>
    %174 = vector.broadcast %173 : vector<1x256xf32> to vector<8x256xf32>
    %175 = arith.mulf %76, %174 : vector<8x256xf32>
    %176 = vector.extract_strided_slice %5 {offsets = [0, 0], sizes = [8, 256], strides = [1, 1]} : vector<40x256xf32> to vector<8x256xf32>
    %177 = arith.mulf %175, %176 : vector<8x256xf32>
    %c32_67 = arith.constant 32 : index
    %c0_68 = arith.constant 0 : index
    %178 = vector.load %arg12[%c32_67, %c0_68] : memref<72x1280xf32, #tpu.memory_space<vmem>>, vector<8x256xf32>
    tpu.vector_store %arg12[%c32_67, %c0_68], %177 {strides = array<i32>} : memref<72x1280xf32, #tpu.memory_space<vmem>>, vector<8x256xf32>,
    %179 = vector.extract_strided_slice %5 {offsets = [8, 0], sizes = [8, 256], strides = [1, 1]} : vector<40x256xf32> to vector<8x256xf32>
    %180 = arith.mulf %175, %179 : vector<8x256xf32>
    %c32_69 = arith.constant 32 : index
    %c256_70 = arith.constant 256 : index
    %181 = vector.load %arg12[%c32_69, %c256_70] : memref<72x1280xf32, #tpu.memory_space<vmem>>, vector<8x256xf32>
    tpu.vector_store %arg12[%c32_69, %c256_70], %180 {strides = array<i32>} : memref<72x1280xf32, #tpu.memory_space<vmem>>, vector<8x256xf32>,
    %182 = vector.extract_strided_slice %5 {offsets = [16, 0], sizes = [8, 256], strides = [1, 1]} : vector<40x256xf32> to vector<8x256xf32>
    %183 = arith.mulf %175, %182 : vector<8x256xf32>
    %c32_71 = arith.constant 32 : index
    %c512_72 = arith.constant 512 : index
    %184 = vector.load %arg12[%c32_71, %c512_72] : memref<72x1280xf32, #tpu.memory_space<vmem>>, vector<8x256xf32>
    tpu.vector_store %arg12[%c32_71, %c512_72], %183 {strides = array<i32>} : memref<72x1280xf32, #tpu.memory_space<vmem>>, vector<8x256xf32>,
    %185 = vector.extract_strided_slice %5 {offsets = [24, 0], sizes = [8, 256], strides = [1, 1]} : vector<40x256xf32> to vector<8x256xf32>
    %186 = arith.mulf %175, %185 : vector<8x256xf32>
    %c32_73 = arith.constant 32 : index
    %c768_74 = arith.constant 768 : index
    %187 = vector.load %arg12[%c32_73, %c768_74] : memref<72x1280xf32, #tpu.memory_space<vmem>>, vector<8x256xf32>
    tpu.vector_store %arg12[%c32_73, %c768_74], %186 {strides = array<i32>} : memref<72x1280xf32, #tpu.memory_space<vmem>>, vector<8x256xf32>,
    %188 = vector.extract_strided_slice %5 {offsets = [32, 0], sizes = [8, 256], strides = [1, 1]} : vector<40x256xf32> to vector<8x256xf32>
    %189 = arith.mulf %175, %188 : vector<8x256xf32>
    %c32_75 = arith.constant 32 : index
    %c1024_76 = arith.constant 1024 : index
    %190 = vector.load %arg12[%c32_75, %c1024_76] : memref<72x1280xf32, #tpu.memory_space<vmem>>, vector<8x256xf32>
    tpu.vector_store %arg12[%c32_75, %c1024_76], %189 {strides = array<i32>} : memref<72x1280xf32, #tpu.memory_space<vmem>>, vector<8x256xf32>,
    %191 = vector.extract_strided_slice %76 {offsets = [0, 1], sizes = [8, 255], strides = [1, 1]} : vector<8x256xf32> to vector<8x255xf32>
    %192 = vector.extract_strided_slice %76 {offsets = [0, 0], sizes = [8, 1], strides = [1, 1]} : vector<8x256xf32> to vector<8x1xf32>
    %193 = tpu.concatenate %191, %192 in 1 : vector<8x255xf32>, vector<8x1xf32> -> vector<8x256xf32>
    %194 = vector.extract_strided_slice %6 {offsets = [5, 0], sizes = [1, 256], strides = [1, 1]} : vector<9x256xf32> to vector<1x256xf32>
    %195 = vector.broadcast %194 : vector<1x256xf32> to vector<8x256xf32>
    %196 = arith.mulf %193, %195 : vector<8x256xf32>
    %197 = vector.extract_strided_slice %5 {offsets = [0, 1], sizes = [40, 255], strides = [1, 1]} : vector<40x256xf32> to vector<40x255xf32>
    %198 = vector.extract_strided_slice %5 {offsets = [0, 0], sizes = [40, 1], strides = [1, 1]} : vector<40x256xf32> to vector<40x1xf32>
    %199 = tpu.concatenate %197, %198 in 1 : vector<40x255xf32>, vector<40x1xf32> -> vector<40x256xf32>
    %200 = vector.extract_strided_slice %199 {offsets = [0, 0], sizes = [8, 256], strides = [1, 1]} : vector<40x256xf32> to vector<8x256xf32>
    %201 = arith.mulf %196, %200 : vector<8x256xf32>
    %c40_77 = arith.constant 40 : index
    %c0_78 = arith.constant 0 : index
    %202 = vector.load %arg12[%c40_77, %c0_78] : memref<72x1280xf32, #tpu.memory_space<vmem>>, vector<8x256xf32>
    tpu.vector_store %arg12[%c40_77, %c0_78], %201 {strides = array<i32>} : memref<72x1280xf32, #tpu.memory_space<vmem>>, vector<8x256xf32>,
    %203 = vector.extract_strided_slice %199 {offsets = [8, 0], sizes = [8, 256], strides = [1, 1]} : vector<40x256xf32> to vector<8x256xf32>
    %204 = arith.mulf %196, %203 : vector<8x256xf32>
    %c40_79 = arith.constant 40 : index
    %c256_80 = arith.constant 256 : index
    %205 = vector.load %arg12[%c40_79, %c256_80] : memref<72x1280xf32, #tpu.memory_space<vmem>>, vector<8x256xf32>
    tpu.vector_store %arg12[%c40_79, %c256_80], %204 {strides = array<i32>} : memref<72x1280xf32, #tpu.memory_space<vmem>>, vector<8x256xf32>,
    %206 = vector.extract_strided_slice %199 {offsets = [16, 0], sizes = [8, 256], strides = [1, 1]} : vector<40x256xf32> to vector<8x256xf32>
    %207 = arith.mulf %196, %206 : vector<8x256xf32>
    %c40_81 = arith.constant 40 : index
    %c512_82 = arith.constant 512 : index
    %208 = vector.load %arg12[%c40_81, %c512_82] : memref<72x1280xf32, #tpu.memory_space<vmem>>, vector<8x256xf32>
    tpu.vector_store %arg12[%c40_81, %c512_82], %207 {strides = array<i32>} : memref<72x1280xf32, #tpu.memory_space<vmem>>, vector<8x256xf32>,
    %209 = vector.extract_strided_slice %199 {offsets = [24, 0], sizes = [8, 256], strides = [1, 1]} : vector<40x256xf32> to vector<8x256xf32>
    %210 = arith.mulf %196, %209 : vector<8x256xf32>
    %c40_83 = arith.constant 40 : index
    %c768_84 = arith.constant 768 : index
    %211 = vector.load %arg12[%c40_83, %c768_84] : memref<72x1280xf32, #tpu.memory_space<vmem>>, vector<8x256xf32>
    tpu.vector_store %arg12[%c40_83, %c768_84], %210 {strides = array<i32>} : memref<72x1280xf32, #tpu.memory_space<vmem>>, vector<8x256xf32>,
    %212 = vector.extract_strided_slice %199 {offsets = [32, 0], sizes = [8, 256], strides = [1, 1]} : vector<40x256xf32> to vector<8x256xf32>
    %213 = arith.mulf %196, %212 : vector<8x256xf32>
    %c40_85 = arith.constant 40 : index
    %c1024_86 = arith.constant 1024 : index
    %214 = vector.load %arg12[%c40_85, %c1024_86] : memref<72x1280xf32, #tpu.memory_space<vmem>>, vector<8x256xf32>
    tpu.vector_store %arg12[%c40_85, %c1024_86], %213 {strides = array<i32>} : memref<72x1280xf32, #tpu.memory_space<vmem>>, vector<8x256xf32>,
    %215 = vector.extract_strided_slice %76 {offsets = [0, 15], sizes = [8, 241], strides = [1, 1]} : vector<8x256xf32> to vector<8x241xf32>
    %216 = vector.extract_strided_slice %76 {offsets = [0, 0], sizes = [8, 15], strides = [1, 1]} : vector<8x256xf32> to vector<8x15xf32>
    %217 = tpu.concatenate %215, %216 in 1 : vector<8x241xf32>, vector<8x15xf32> -> vector<8x256xf32>
    %218 = vector.extract_strided_slice %6 {offsets = [6, 0], sizes = [1, 256], strides = [1, 1]} : vector<9x256xf32> to vector<1x256xf32>
    %219 = vector.broadcast %218 : vector<1x256xf32> to vector<8x256xf32>
    %220 = arith.mulf %217, %219 : vector<8x256xf32>
    %221 = vector.extract_strided_slice %5 {offsets = [0, 15], sizes = [40, 241], strides = [1, 1]} : vector<40x256xf32> to vector<40x241xf32>
    %222 = vector.extract_strided_slice %5 {offsets = [0, 0], sizes = [40, 15], strides = [1, 1]} : vector<40x256xf32> to vector<40x15xf32>
    %223 = tpu.concatenate %221, %222 in 1 : vector<40x241xf32>, vector<40x15xf32> -> vector<40x256xf32>
    %224 = vector.extract_strided_slice %223 {offsets = [0, 0], sizes = [8, 256], strides = [1, 1]} : vector<40x256xf32> to vector<8x256xf32>
    %225 = arith.mulf %220, %224 : vector<8x256xf32>
    %c48_87 = arith.constant 48 : index
    %c0_88 = arith.constant 0 : index
    %226 = vector.load %arg12[%c48_87, %c0_88] : memref<72x1280xf32, #tpu.memory_space<vmem>>, vector<8x256xf32>
    tpu.vector_store %arg12[%c48_87, %c0_88], %225 {strides = array<i32>} : memref<72x1280xf32, #tpu.memory_space<vmem>>, vector<8x256xf32>,
    %227 = vector.extract_strided_slice %223 {offsets = [8, 0], sizes = [8, 256], strides = [1, 1]} : vector<40x256xf32> to vector<8x256xf32>
    %228 = arith.mulf %220, %227 : vector<8x256xf32>
    %c48_89 = arith.constant 48 : index
    %c256_90 = arith.constant 256 : index
    %229 = vector.load %arg12[%c48_89, %c256_90] : memref<72x1280xf32, #tpu.memory_space<vmem>>, vector<8x256xf32>
    tpu.vector_store %arg12[%c48_89, %c256_90], %228 {strides = array<i32>} : memref<72x1280xf32, #tpu.memory_space<vmem>>, vector<8x256xf32>,
    %230 = vector.extract_strided_slice %223 {offsets = [16, 0], sizes = [8, 256], strides = [1, 1]} : vector<40x256xf32> to vector<8x256xf32>
    %231 = arith.mulf %220, %230 : vector<8x256xf32>
    %c48_91 = arith.constant 48 : index
    %c512_92 = arith.constant 512 : index
    %232 = vector.load %arg12[%c48_91, %c512_92] : memref<72x1280xf32, #tpu.memory_space<vmem>>, vector<8x256xf32>
    tpu.vector_store %arg12[%c48_91, %c512_92], %231 {strides = array<i32>} : memref<72x1280xf32, #tpu.memory_space<vmem>>, vector<8x256xf32>,
    %233 = vector.extract_strided_slice %223 {offsets = [24, 0], sizes = [8, 256], strides = [1, 1]} : vector<40x256xf32> to vector<8x256xf32>
    %234 = arith.mulf %220, %233 : vector<8x256xf32>
    %c48_93 = arith.constant 48 : index
    %c768_94 = arith.constant 768 : index
    %235 = vector.load %arg12[%c48_93, %c768_94] : memref<72x1280xf32, #tpu.memory_space<vmem>>, vector<8x256xf32>
    tpu.vector_store %arg12[%c48_93, %c768_94], %234 {strides = array<i32>} : memref<72x1280xf32, #tpu.memory_space<vmem>>, vector<8x256xf32>,
    %236 = vector.extract_strided_slice %223 {offsets = [32, 0], sizes = [8, 256], strides = [1, 1]} : vector<40x256xf32> to vector<8x256xf32>
    %237 = arith.mulf %220, %236 : vector<8x256xf32>
    %c48_95 = arith.constant 48 : index
    %c1024_96 = arith.constant 1024 : index
    %238 = vector.load %arg12[%c48_95, %c1024_96] : memref<72x1280xf32, #tpu.memory_space<vmem>>, vector<8x256xf32>
    tpu.vector_store %arg12[%c48_95, %c1024_96], %237 {strides = array<i32>} : memref<72x1280xf32, #tpu.memory_space<vmem>>, vector<8x256xf32>,
    %239 = vector.extract_strided_slice %76 {offsets = [0, 16], sizes = [8, 240], strides = [1, 1]} : vector<8x256xf32> to vector<8x240xf32>
    %240 = vector.extract_strided_slice %76 {offsets = [0, 0], sizes = [8, 16], strides = [1, 1]} : vector<8x256xf32> to vector<8x16xf32>
    %241 = tpu.concatenate %239, %240 in 1 : vector<8x240xf32>, vector<8x16xf32> -> vector<8x256xf32>
    %242 = vector.extract_strided_slice %6 {offsets = [7, 0], sizes = [1, 256], strides = [1, 1]} : vector<9x256xf32> to vector<1x256xf32>
    %243 = vector.broadcast %242 : vector<1x256xf32> to vector<8x256xf32>
    %244 = arith.mulf %241, %243 : vector<8x256xf32>
    %245 = vector.extract_strided_slice %5 {offsets = [0, 16], sizes = [40, 240], strides = [1, 1]} : vector<40x256xf32> to vector<40x240xf32>
    %246 = vector.extract_strided_slice %5 {offsets = [0, 0], sizes = [40, 16], strides = [1, 1]} : vector<40x256xf32> to vector<40x16xf32>
    %247 = tpu.concatenate %245, %246 in 1 : vector<40x240xf32>, vector<40x16xf32> -> vector<40x256xf32>
    %248 = vector.extract_strided_slice %247 {offsets = [0, 0], sizes = [8, 256], strides = [1, 1]} : vector<40x256xf32> to vector<8x256xf32>
    %249 = arith.mulf %244, %248 : vector<8x256xf32>
    %c56_97 = arith.constant 56 : index
    %c0_98 = arith.constant 0 : index
    %250 = vector.load %arg12[%c56_97, %c0_98] : memref<72x1280xf32, #tpu.memory_space<vmem>>, vector<8x256xf32>
    tpu.vector_store %arg12[%c56_97, %c0_98], %249 {strides = array<i32>} : memref<72x1280xf32, #tpu.memory_space<vmem>>, vector<8x256xf32>,
    %251 = vector.extract_strided_slice %247 {offsets = [8, 0], sizes = [8, 256], strides = [1, 1]} : vector<40x256xf32> to vector<8x256xf32>
    %252 = arith.mulf %244, %251 : vector<8x256xf32>
    %c56_99 = arith.constant 56 : index
    %c256_100 = arith.constant 256 : index
    %253 = vector.load %arg12[%c56_99, %c256_100] : memref<72x1280xf32, #tpu.memory_space<vmem>>, vector<8x256xf32>
    tpu.vector_store %arg12[%c56_99, %c256_100], %252 {strides = array<i32>} : memref<72x1280xf32, #tpu.memory_space<vmem>>, vector<8x256xf32>,
    %254 = vector.extract_strided_slice %247 {offsets = [16, 0], sizes = [8, 256], strides = [1, 1]} : vector<40x256xf32> to vector<8x256xf32>
    %255 = arith.mulf %244, %254 : vector<8x256xf32>
    %c56_101 = arith.constant 56 : index
    %c512_102 = arith.constant 512 : index
    %256 = vector.load %arg12[%c56_101, %c512_102] : memref<72x1280xf32, #tpu.memory_space<vmem>>, vector<8x256xf32>
    tpu.vector_store %arg12[%c56_101, %c512_102], %255 {strides = array<i32>} : memref<72x1280xf32, #tpu.memory_space<vmem>>, vector<8x256xf32>,
    %257 = vector.extract_strided_slice %247 {offsets = [24, 0], sizes = [8, 256], strides = [1, 1]} : vector<40x256xf32> to vector<8x256xf32>
    %258 = arith.mulf %244, %257 : vector<8x256xf32>
    %c56_103 = arith.constant 56 : index
    %c768_104 = arith.constant 768 : index
    %259 = vector.load %arg12[%c56_103, %c768_104] : memref<72x1280xf32, #tpu.memory_space<vmem>>, vector<8x256xf32>
    tpu.vector_store %arg12[%c56_103, %c768_104], %258 {strides = array<i32>} : memref<72x1280xf32, #tpu.memory_space<vmem>>, vector<8x256xf32>,
    %260 = vector.extract_strided_slice %247 {offsets = [32, 0], sizes = [8, 256], strides = [1, 1]} : vector<40x256xf32> to vector<8x256xf32>
    %261 = arith.mulf %244, %260 : vector<8x256xf32>
    %c56_105 = arith.constant 56 : index
    %c1024_106 = arith.constant 1024 : index
    %262 = vector.load %arg12[%c56_105, %c1024_106] : memref<72x1280xf32, #tpu.memory_space<vmem>>, vector<8x256xf32>
    tpu.vector_store %arg12[%c56_105, %c1024_106], %261 {strides = array<i32>} : memref<72x1280xf32, #tpu.memory_space<vmem>>, vector<8x256xf32>,
    %263 = vector.extract_strided_slice %76 {offsets = [0, 17], sizes = [8, 239], strides = [1, 1]} : vector<8x256xf32> to vector<8x239xf32>
    %264 = vector.extract_strided_slice %76 {offsets = [0, 0], sizes = [8, 17], strides = [1, 1]} : vector<8x256xf32> to vector<8x17xf32>
    %265 = tpu.concatenate %263, %264 in 1 : vector<8x239xf32>, vector<8x17xf32> -> vector<8x256xf32>
    %266 = vector.extract_strided_slice %6 {offsets = [8, 0], sizes = [1, 256], strides = [1, 1]} : vector<9x256xf32> to vector<1x256xf32>
    %267 = vector.broadcast %266 : vector<1x256xf32> to vector<8x256xf32>
    %268 = arith.mulf %265, %267 : vector<8x256xf32>
    %269 = vector.extract_strided_slice %5 {offsets = [0, 17], sizes = [40, 239], strides = [1, 1]} : vector<40x256xf32> to vector<40x239xf32>
    %270 = vector.extract_strided_slice %5 {offsets = [0, 0], sizes = [40, 17], strides = [1, 1]} : vector<40x256xf32> to vector<40x17xf32>
    %271 = tpu.concatenate %269, %270 in 1 : vector<40x239xf32>, vector<40x17xf32> -> vector<40x256xf32>
    %272 = vector.extract_strided_slice %271 {offsets = [0, 0], sizes = [8, 256], strides = [1, 1]} : vector<40x256xf32> to vector<8x256xf32>
    %273 = arith.mulf %268, %272 : vector<8x256xf32>
    %c64_107 = arith.constant 64 : index
    %c0_108 = arith.constant 0 : index
    %274 = vector.load %arg12[%c64_107, %c0_108] : memref<72x1280xf32, #tpu.memory_space<vmem>>, vector<8x256xf32>
    tpu.vector_store %arg12[%c64_107, %c0_108], %273 {strides = array<i32>} : memref<72x1280xf32, #tpu.memory_space<vmem>>, vector<8x256xf32>,
    %275 = vector.extract_strided_slice %271 {offsets = [8, 0], sizes = [8, 256], strides = [1, 1]} : vector<40x256xf32> to vector<8x256xf32>
    %276 = arith.mulf %268, %275 : vector<8x256xf32>
    %c64_109 = arith.constant 64 : index
    %c256_110 = arith.constant 256 : index
    %277 = vector.load %arg12[%c64_109, %c256_110] : memref<72x1280xf32, #tpu.memory_space<vmem>>, vector<8x256xf32>
    tpu.vector_store %arg12[%c64_109, %c256_110], %276 {strides = array<i32>} : memref<72x1280xf32, #tpu.memory_space<vmem>>, vector<8x256xf32>,
    %278 = vector.extract_strided_slice %271 {offsets = [16, 0], sizes = [8, 256], strides = [1, 1]} : vector<40x256xf32> to vector<8x256xf32>
    %279 = arith.mulf %268, %278 : vector<8x256xf32>
    %c64_111 = arith.constant 64 : index
    %c512_112 = arith.constant 512 : index
    %280 = vector.load %arg12[%c64_111, %c512_112] : memref<72x1280xf32, #tpu.memory_space<vmem>>, vector<8x256xf32>
    tpu.vector_store %arg12[%c64_111, %c512_112], %279 {strides = array<i32>} : memref<72x1280xf32, #tpu.memory_space<vmem>>, vector<8x256xf32>,
    %281 = vector.extract_strided_slice %271 {offsets = [24, 0], sizes = [8, 256], strides = [1, 1]} : vector<40x256xf32> to vector<8x256xf32>
    %282 = arith.mulf %268, %281 : vector<8x256xf32>
    %c64_113 = arith.constant 64 : index
    %c768_114 = arith.constant 768 : index
    %283 = vector.load %arg12[%c64_113, %c768_114] : memref<72x1280xf32, #tpu.memory_space<vmem>>, vector<8x256xf32>
    tpu.vector_store %arg12[%c64_113, %c768_114], %282 {strides = array<i32>} : memref<72x1280xf32, #tpu.memory_space<vmem>>, vector<8x256xf32>,
    %284 = vector.extract_strided_slice %271 {offsets = [32, 0], sizes = [8, 256], strides = [1, 1]} : vector<40x256xf32> to vector<8x256xf32>
    %285 = arith.mulf %268, %284 : vector<8x256xf32>
    %c64_115 = arith.constant 64 : index
    %c1024_116 = arith.constant 1024 : index
    %286 = vector.load %arg12[%c64_115, %c1024_116] : memref<72x1280xf32, #tpu.memory_space<vmem>>, vector<8x256xf32>
    tpu.vector_store %arg12[%c64_115, %c1024_116], %285 {strides = array<i32>} : memref<72x1280xf32, #tpu.memory_space<vmem>>, vector<8x256xf32>,
    %c0_117 = arith.constant 0 : index
    %c0_118 = arith.constant 0 : index
    %287 = vector.load %arg12[%c0_117, %c0_118] : memref<72x1280xf32, #tpu.memory_space<vmem>>, vector<72x1280xf32>
    %cst_119 = arith.constant dense<0.000000e+00> : vector<8x1280xf32>
    %288 = tpu.matmul %9, %287, %cst_119 {dimension_numbers = #tpu.dot_dimension_numbers<[1], [0], [0], [1], [0, 0, 1, 1], [], []>} : vector<8x72xf32>, vector<72x1280xf32>, vector<8x1280xf32> -> vector<8x1280xf32>
    %289 = vector.broadcast %10 : vector<8x1xf32> to vector<8x1280xf32>
    %290 = arith.addf %288, %289 : vector<8x1280xf32>
    %291 = vector.extract_strided_slice %290 {offsets = [0, 0], sizes = [8, 256], strides = [1, 1]} : vector<8x1280xf32> to vector<8x256xf32>
    %292 = vector.extract_strided_slice %290 {offsets = [0, 256], sizes = [8, 256], strides = [1, 1]} : vector<8x1280xf32> to vector<8x256xf32>
    %293 = vector.extract_strided_slice %290 {offsets = [0, 512], sizes = [8, 256], strides = [1, 1]} : vector<8x1280xf32> to vector<8x256xf32>
    %294 = vector.extract_strided_slice %290 {offsets = [0, 768], sizes = [8, 256], strides = [1, 1]} : vector<8x1280xf32> to vector<8x256xf32>
    %295 = vector.extract_strided_slice %290 {offsets = [0, 1024], sizes = [8, 256], strides = [1, 1]} : vector<8x1280xf32> to vector<8x256xf32>
    %cst_120 = arith.constant 0.000000e+00 : f32
    %296 = vector.broadcast %cst_120 : f32 to vector<8x256xf32>
    %297 = arith.addf %296, %291 : vector<8x256xf32>
    %298 = arith.addf %297, %292 : vector<8x256xf32>
    %299 = arith.addf %298, %293 : vector<8x256xf32>
    %300 = arith.addf %299, %294 : vector<8x256xf32>
    %301 = arith.addf %300, %295 : vector<8x256xf32>
    %cst_121 = arith.constant 2.000000e-01 : f32
    %302 = vector.broadcast %cst_121 : f32 to vector<8x256xf32>
    %303 = arith.mulf %301, %302 : vector<8x256xf32>
    %304 = arith.subf %291, %303 : vector<8x256xf32>
    %305 = arith.subf %291, %303 : vector<8x256xf32>
    %306 = arith.mulf %304, %305 : vector<8x256xf32>
    %cst_122 = arith.constant 0.000000e+00 : f32
    %307 = vector.broadcast %cst_122 : f32 to vector<8x256xf32>
    %308 = arith.addf %307, %306 : vector<8x256xf32>
    %309 = arith.subf %292, %303 : vector<8x256xf32>
    %310 = arith.subf %292, %303 : vector<8x256xf32>
    %311 = arith.mulf %309, %310 : vector<8x256xf32>
    %312 = arith.addf %308, %311 : vector<8x256xf32>
    %313 = arith.subf %293, %303 : vector<8x256xf32>
    %314 = arith.subf %293, %303 : vector<8x256xf32>
    %315 = arith.mulf %313, %314 : vector<8x256xf32>
    %316 = arith.addf %312, %315 : vector<8x256xf32>
    %317 = arith.subf %294, %303 : vector<8x256xf32>
    %318 = arith.subf %294, %303 : vector<8x256xf32>
    %319 = arith.mulf %317, %318 : vector<8x256xf32>
    %320 = arith.addf %316, %319 : vector<8x256xf32>
    %321 = arith.subf %295, %303 : vector<8x256xf32>
    %322 = arith.subf %295, %303 : vector<8x256xf32>
    %323 = arith.mulf %321, %322 : vector<8x256xf32>
    %324 = arith.addf %320, %323 : vector<8x256xf32>
    %cst_123 = arith.constant 2.500000e-01 : f32
    %325 = vector.broadcast %cst_123 : f32 to vector<8x256xf32>
    %326 = arith.mulf %324, %325 : vector<8x256xf32>
    %cst_124 = arith.constant 5.000000e-01 : f32
    %327 = vector.broadcast %cst_124 : f32 to vector<8x256xf32>
    %328 = arith.subf %326, %327 : vector<8x256xf32>
    %cst_125 = arith.constant 1.000000e+00 : f32
    %329 = vector.broadcast %cst_125 : f32 to vector<8x256xf32>
    %330 = arith.mulf %329, %328 : vector<8x256xf32>
    %cst_126 = arith.constant 0.000000e+00 : f32
    %331 = vector.broadcast %cst_126 : f32 to vector<8x256xf32>
    %332 = arith.cmpf ogt, %330, %331 : vector<8x256xf32>
    %333 = arith.extui %332 : vector<8x256xi1> to vector<8x256xi32>
    %334 = arith.sitofp %333 : vector<8x256xi32> to vector<8x256xf32>
    %335 = arith.mulf %334, %1 : vector<8x256xf32>
    %cst_127 = arith.constant 1.000000e+00 : f32
    %336 = vector.broadcast %cst_127 : f32 to vector<8x256xf32>
    %337 = arith.subf %336, %334 : vector<8x256xf32>
    %338 = arith.mulf %337, %3 : vector<8x256xf32>
    %339 = arith.addf %335, %338 : vector<8x256xf32>
    %340 = vector.extract_strided_slice %339 {offsets = [0, 239], sizes = [8, 17], strides = [1, 1]} : vector<8x256xf32> to vector<8x17xf32>
    %341 = vector.extract_strided_slice %339 {offsets = [0, 0], sizes = [8, 239], strides = [1, 1]} : vector<8x256xf32> to vector<8x239xf32>
    %342 = tpu.concatenate %340, %341 in 1 : vector<8x17xf32>, vector<8x239xf32> -> vector<8x256xf32>
    %343 = vector.extract_strided_slice %6 {offsets = [0, 0], sizes = [1, 256], strides = [1, 1]} : vector<9x256xf32> to vector<1x256xf32>
    %344 = vector.broadcast %343 : vector<1x256xf32> to vector<8x256xf32>
    %345 = arith.mulf %342, %344 : vector<8x256xf32>
    %c0_128 = arith.constant 0 : index
    %c0_129 = arith.constant 0 : index
    %346 = vector.load %arg11[%c0_128, %c0_129] : memref<72x256xf32, #tpu.memory_space<vmem>>, vector<8x256xf32>
    tpu.vector_store %arg11[%c0_128, %c0_129], %345 {strides = array<i32>} : memref<72x256xf32, #tpu.memory_space<vmem>>, vector<8x256xf32>,
    %347 = vector.extract_strided_slice %339 {offsets = [0, 240], sizes = [8, 16], strides = [1, 1]} : vector<8x256xf32> to vector<8x16xf32>
    %348 = vector.extract_strided_slice %339 {offsets = [0, 0], sizes = [8, 240], strides = [1, 1]} : vector<8x256xf32> to vector<8x240xf32>
    %349 = tpu.concatenate %347, %348 in 1 : vector<8x16xf32>, vector<8x240xf32> -> vector<8x256xf32>
    %350 = vector.extract_strided_slice %6 {offsets = [1, 0], sizes = [1, 256], strides = [1, 1]} : vector<9x256xf32> to vector<1x256xf32>
    %351 = vector.broadcast %350 : vector<1x256xf32> to vector<8x256xf32>
    %352 = arith.mulf %349, %351 : vector<8x256xf32>
    %c8_130 = arith.constant 8 : index
    %c0_131 = arith.constant 0 : index
    %353 = vector.load %arg11[%c8_130, %c0_131] : memref<72x256xf32, #tpu.memory_space<vmem>>, vector<8x256xf32>
    tpu.vector_store %arg11[%c8_130, %c0_131], %352 {strides = array<i32>} : memref<72x256xf32, #tpu.memory_space<vmem>>, vector<8x256xf32>,
    %354 = vector.extract_strided_slice %339 {offsets = [0, 241], sizes = [8, 15], strides = [1, 1]} : vector<8x256xf32> to vector<8x15xf32>
    %355 = vector.extract_strided_slice %339 {offsets = [0, 0], sizes = [8, 241], strides = [1, 1]} : vector<8x256xf32> to vector<8x241xf32>
    %356 = tpu.concatenate %354, %355 in 1 : vector<8x15xf32>, vector<8x241xf32> -> vector<8x256xf32>
    %357 = vector.extract_strided_slice %6 {offsets = [2, 0], sizes = [1, 256], strides = [1, 1]} : vector<9x256xf32> to vector<1x256xf32>
    %358 = vector.broadcast %357 : vector<1x256xf32> to vector<8x256xf32>
    %359 = arith.mulf %356, %358 : vector<8x256xf32>
    %c16_132 = arith.constant 16 : index
    %c0_133 = arith.constant 0 : index
    %360 = vector.load %arg11[%c16_132, %c0_133] : memref<72x256xf32, #tpu.memory_space<vmem>>, vector<8x256xf32>
    tpu.vector_store %arg11[%c16_132, %c0_133], %359 {strides = array<i32>} : memref<72x256xf32, #tpu.memory_space<vmem>>, vector<8x256xf32>,
    %361 = vector.extract_strided_slice %339 {offsets = [0, 255], sizes = [8, 1], strides = [1, 1]} : vector<8x256xf32> to vector<8x1xf32>
    %362 = vector.extract_strided_slice %339 {offsets = [0, 0], sizes = [8, 255], strides = [1, 1]} : vector<8x256xf32> to vector<8x255xf32>
    %363 = tpu.concatenate %361, %362 in 1 : vector<8x1xf32>, vector<8x255xf32> -> vector<8x256xf32>
    %364 = vector.extract_strided_slice %6 {offsets = [3, 0], sizes = [1, 256], strides = [1, 1]} : vector<9x256xf32> to vector<1x256xf32>
    %365 = vector.broadcast %364 : vector<1x256xf32> to vector<8x256xf32>
    %366 = arith.mulf %363, %365 : vector<8x256xf32>
    %c24_134 = arith.constant 24 : index
    %c0_135 = arith.constant 0 : index
    %367 = vector.load %arg11[%c24_134, %c0_135] : memref<72x256xf32, #tpu.memory_space<vmem>>, vector<8x256xf32>
    tpu.vector_store %arg11[%c24_134, %c0_135], %366 {strides = array<i32>} : memref<72x256xf32, #tpu.memory_space<vmem>>, vector<8x256xf32>,
    %368 = vector.extract_strided_slice %6 {offsets = [4, 0], sizes = [1, 256], strides = [1, 1]} : vector<9x256xf32> to vector<1x256xf32>
    %369 = vector.broadcast %368 : vector<1x256xf32> to vector<8x256xf32>
    %370 = arith.mulf %339, %369 : vector<8x256xf32>
    %c32_136 = arith.constant 32 : index
    %c0_137 = arith.constant 0 : index
    %371 = vector.load %arg11[%c32_136, %c0_137] : memref<72x256xf32, #tpu.memory_space<vmem>>, vector<8x256xf32>
    tpu.vector_store %arg11[%c32_136, %c0_137], %370 {strides = array<i32>} : memref<72x256xf32, #tpu.memory_space<vmem>>, vector<8x256xf32>,
    %372 = vector.extract_strided_slice %339 {offsets = [0, 1], sizes = [8, 255], strides = [1, 1]} : vector<8x256xf32> to vector<8x255xf32>
    %373 = vector.extract_strided_slice %339 {offsets = [0, 0], sizes = [8, 1], strides = [1, 1]} : vector<8x256xf32> to vector<8x1xf32>
    %374 = tpu.concatenate %372, %373 in 1 : vector<8x255xf32>, vector<8x1xf32> -> vector<8x256xf32>
    %375 = vector.extract_strided_slice %6 {offsets = [5, 0], sizes = [1, 256], strides = [1, 1]} : vector<9x256xf32> to vector<1x256xf32>
    %376 = vector.broadcast %375 : vector<1x256xf32> to vector<8x256xf32>
    %377 = arith.mulf %374, %376 : vector<8x256xf32>
    %c40_138 = arith.constant 40 : index
    %c0_139 = arith.constant 0 : index
    %378 = vector.load %arg11[%c40_138, %c0_139] : memref<72x256xf32, #tpu.memory_space<vmem>>, vector<8x256xf32>
    tpu.vector_store %arg11[%c40_138, %c0_139], %377 {strides = array<i32>} : memref<72x256xf32, #tpu.memory_space<vmem>>, vector<8x256xf32>,
    %379 = vector.extract_strided_slice %339 {offsets = [0, 15], sizes = [8, 241], strides = [1, 1]} : vector<8x256xf32> to vector<8x241xf32>
    %380 = vector.extract_strided_slice %339 {offsets = [0, 0], sizes = [8, 15], strides = [1, 1]} : vector<8x256xf32> to vector<8x15xf32>
    %381 = tpu.concatenate %379, %380 in 1 : vector<8x241xf32>, vector<8x15xf32> -> vector<8x256xf32>
    %382 = vector.extract_strided_slice %6 {offsets = [6, 0], sizes = [1, 256], strides = [1, 1]} : vector<9x256xf32> to vector<1x256xf32>
    %383 = vector.broadcast %382 : vector<1x256xf32> to vector<8x256xf32>
    %384 = arith.mulf %381, %383 : vector<8x256xf32>
    %c48_140 = arith.constant 48 : index
    %c0_141 = arith.constant 0 : index
    %385 = vector.load %arg11[%c48_140, %c0_141] : memref<72x256xf32, #tpu.memory_space<vmem>>, vector<8x256xf32>
    tpu.vector_store %arg11[%c48_140, %c0_141], %384 {strides = array<i32>} : memref<72x256xf32, #tpu.memory_space<vmem>>, vector<8x256xf32>,
    %386 = vector.extract_strided_slice %339 {offsets = [0, 16], sizes = [8, 240], strides = [1, 1]} : vector<8x256xf32> to vector<8x240xf32>
    %387 = vector.extract_strided_slice %339 {offsets = [0, 0], sizes = [8, 16], strides = [1, 1]} : vector<8x256xf32> to vector<8x16xf32>
    %388 = tpu.concatenate %386, %387 in 1 : vector<8x240xf32>, vector<8x16xf32> -> vector<8x256xf32>
    %389 = vector.extract_strided_slice %6 {offsets = [7, 0], sizes = [1, 256], strides = [1, 1]} : vector<9x256xf32> to vector<1x256xf32>
    %390 = vector.broadcast %389 : vector<1x256xf32> to vector<8x256xf32>
    %391 = arith.mulf %388, %390 : vector<8x256xf32>
    %c56_142 = arith.constant 56 : index
    %c0_143 = arith.constant 0 : index
    %392 = vector.load %arg11[%c56_142, %c0_143] : memref<72x256xf32, #tpu.memory_space<vmem>>, vector<8x256xf32>
    tpu.vector_store %arg11[%c56_142, %c0_143], %391 {strides = array<i32>} : memref<72x256xf32, #tpu.memory_space<vmem>>, vector<8x256xf32>,
    %393 = vector.extract_strided_slice %339 {offsets = [0, 17], sizes = [8, 239], strides = [1, 1]} : vector<8x256xf32> to vector<8x239xf32>
    %394 = vector.extract_strided_slice %339 {offsets = [0, 0], sizes = [8, 17], strides = [1, 1]} : vector<8x256xf32> to vector<8x17xf32>
    %395 = tpu.concatenate %393, %394 in 1 : vector<8x239xf32>, vector<8x17xf32> -> vector<8x256xf32>
    %396 = vector.extract_strided_slice %6 {offsets = [8, 0], sizes = [1, 256], strides = [1, 1]} : vector<9x256xf32> to vector<1x256xf32>
    %397 = vector.broadcast %396 : vector<1x256xf32> to vector<8x256xf32>
    %398 = arith.mulf %395, %397 : vector<8x256xf32>
    %c64_144 = arith.constant 64 : index
    %c0_145 = arith.constant 0 : index
    %399 = vector.load %arg11[%c64_144, %c0_145] : memref<72x256xf32, #tpu.memory_space<vmem>>, vector<8x256xf32>
    tpu.vector_store %arg11[%c64_144, %c0_145], %398 {strides = array<i32>} : memref<72x256xf32, #tpu.memory_space<vmem>>, vector<8x256xf32>,
    %c0_146 = arith.constant 0 : index
    %c0_147 = arith.constant 0 : index
    %400 = vector.load %arg11[%c0_146, %c0_147] : memref<72x256xf32, #tpu.memory_space<vmem>>, vector<72x256xf32>
    %cst_148 = arith.constant dense<0.000000e+00> : vector<8x256xf32>
    %401 = tpu.matmul %7, %400, %cst_148 {dimension_numbers = #tpu.dot_dimension_numbers<[1], [0], [0], [1], [0, 0, 1, 1], [], []>} : vector<8x72xf32>, vector<72x256xf32>, vector<8x256xf32> -> vector<8x256xf32>
    %402 = vector.broadcast %8 : vector<8x1xf32> to vector<8x256xf32>
    %403 = arith.addf %401, %402 : vector<8x256xf32>
    %cst_149 = arith.constant 0.000000e+00 : f32
    %404 = vector.broadcast %cst_149 : f32 to vector<8x256xf32>
    %405 = arith.maximumf %403, %404 : vector<8x256xf32>
    %406 = vector.extract_strided_slice %405 {offsets = [0, 239], sizes = [8, 17], strides = [1, 1]} : vector<8x256xf32> to vector<8x17xf32>
    %407 = vector.extract_strided_slice %405 {offsets = [0, 0], sizes = [8, 239], strides = [1, 1]} : vector<8x256xf32> to vector<8x239xf32>
    %408 = tpu.concatenate %406, %407 in 1 : vector<8x17xf32>, vector<8x239xf32> -> vector<8x256xf32>
    %409 = vector.extract_strided_slice %6 {offsets = [0, 0], sizes = [1, 256], strides = [1, 1]} : vector<9x256xf32> to vector<1x256xf32>
    %410 = vector.broadcast %409 : vector<1x256xf32> to vector<8x256xf32>
    %411 = arith.mulf %408, %410 : vector<8x256xf32>
    %c0_150 = arith.constant 0 : index
    %c0_151 = arith.constant 0 : index
    %412 = vector.load %arg12[%c0_150, %c0_151] : memref<72x1280xf32, #tpu.memory_space<vmem>>, vector<8x256xf32>
    tpu.vector_store %arg12[%c0_150, %c0_151], %411 {strides = array<i32>} : memref<72x1280xf32, #tpu.memory_space<vmem>>, vector<8x256xf32>,
    %413 = vector.extract_strided_slice %405 {offsets = [0, 240], sizes = [8, 16], strides = [1, 1]} : vector<8x256xf32> to vector<8x16xf32>
    %414 = vector.extract_strided_slice %405 {offsets = [0, 0], sizes = [8, 240], strides = [1, 1]} : vector<8x256xf32> to vector<8x240xf32>
    %415 = tpu.concatenate %413, %414 in 1 : vector<8x16xf32>, vector<8x240xf32> -> vector<8x256xf32>
    %416 = vector.extract_strided_slice %6 {offsets = [1, 0], sizes = [1, 256], strides = [1, 1]} : vector<9x256xf32> to vector<1x256xf32>
    %417 = vector.broadcast %416 : vector<1x256xf32> to vector<8x256xf32>
    %418 = arith.mulf %415, %417 : vector<8x256xf32>
    %c8_152 = arith.constant 8 : index
    %c0_153 = arith.constant 0 : index
    %419 = vector.load %arg12[%c8_152, %c0_153] : memref<72x1280xf32, #tpu.memory_space<vmem>>, vector<8x256xf32>
    tpu.vector_store %arg12[%c8_152, %c0_153], %418 {strides = array<i32>} : memref<72x1280xf32, #tpu.memory_space<vmem>>, vector<8x256xf32>,
    %420 = vector.extract_strided_slice %405 {offsets = [0, 241], sizes = [8, 15], strides = [1, 1]} : vector<8x256xf32> to vector<8x15xf32>
    %421 = vector.extract_strided_slice %405 {offsets = [0, 0], sizes = [8, 241], strides = [1, 1]} : vector<8x256xf32> to vector<8x241xf32>
    %422 = tpu.concatenate %420, %421 in 1 : vector<8x15xf32>, vector<8x241xf32> -> vector<8x256xf32>
    %423 = vector.extract_strided_slice %6 {offsets = [2, 0], sizes = [1, 256], strides = [1, 1]} : vector<9x256xf32> to vector<1x256xf32>
    %424 = vector.broadcast %423 : vector<1x256xf32> to vector<8x256xf32>
    %425 = arith.mulf %422, %424 : vector<8x256xf32>
    %c16_154 = arith.constant 16 : index
    %c0_155 = arith.constant 0 : index
    %426 = vector.load %arg12[%c16_154, %c0_155] : memref<72x1280xf32, #tpu.memory_space<vmem>>, vector<8x256xf32>
    tpu.vector_store %arg12[%c16_154, %c0_155], %425 {strides = array<i32>} : memref<72x1280xf32, #tpu.memory_space<vmem>>, vector<8x256xf32>,
    %427 = vector.extract_strided_slice %405 {offsets = [0, 255], sizes = [8, 1], strides = [1, 1]} : vector<8x256xf32> to vector<8x1xf32>
    %428 = vector.extract_strided_slice %405 {offsets = [0, 0], sizes = [8, 255], strides = [1, 1]} : vector<8x256xf32> to vector<8x255xf32>
    %429 = tpu.concatenate %427, %428 in 1 : vector<8x1xf32>, vector<8x255xf32> -> vector<8x256xf32>
    %430 = vector.extract_strided_slice %6 {offsets = [3, 0], sizes = [1, 256], strides = [1, 1]} : vector<9x256xf32> to vector<1x256xf32>
    %431 = vector.broadcast %430 : vector<1x256xf32> to vector<8x256xf32>
    %432 = arith.mulf %429, %431 : vector<8x256xf32>
    %c24_156 = arith.constant 24 : index
    %c0_157 = arith.constant 0 : index
    %433 = vector.load %arg12[%c24_156, %c0_157] : memref<72x1280xf32, #tpu.memory_space<vmem>>, vector<8x256xf32>
    tpu.vector_store %arg12[%c24_156, %c0_157], %432 {strides = array<i32>} : memref<72x1280xf32, #tpu.memory_space<vmem>>, vector<8x256xf32>,
    %434 = vector.extract_strided_slice %6 {offsets = [4, 0], sizes = [1, 256], strides = [1, 1]} : vector<9x256xf32> to vector<1x256xf32>
    %435 = vector.broadcast %434 : vector<1x256xf32> to vector<8x256xf32>
    %436 = arith.mulf %405, %435 : vector<8x256xf32>
    %c32_158 = arith.constant 32 : index
    %c0_159 = arith.constant 0 : index
    %437 = vector.load %arg12[%c32_158, %c0_159] : memref<72x1280xf32, #tpu.memory_space<vmem>>, vector<8x256xf32>
    tpu.vector_store %arg12[%c32_158, %c0_159], %436 {strides = array<i32>} : memref<72x1280xf32, #tpu.memory_space<vmem>>, vector<8x256xf32>,
    %438 = vector.extract_strided_slice %405 {offsets = [0, 1], sizes = [8, 255], strides = [1, 1]} : vector<8x256xf32> to vector<8x255xf32>
    %439 = vector.extract_strided_slice %405 {offsets = [0, 0], sizes = [8, 1], strides = [1, 1]} : vector<8x256xf32> to vector<8x1xf32>
    %440 = tpu.concatenate %438, %439 in 1 : vector<8x255xf32>, vector<8x1xf32> -> vector<8x256xf32>
    %441 = vector.extract_strided_slice %6 {offsets = [5, 0], sizes = [1, 256], strides = [1, 1]} : vector<9x256xf32> to vector<1x256xf32>
    %442 = vector.broadcast %441 : vector<1x256xf32> to vector<8x256xf32>
    %443 = arith.mulf %440, %442 : vector<8x256xf32>
    %c40_160 = arith.constant 40 : index
    %c0_161 = arith.constant 0 : index
    %444 = vector.load %arg12[%c40_160, %c0_161] : memref<72x1280xf32, #tpu.memory_space<vmem>>, vector<8x256xf32>
    tpu.vector_store %arg12[%c40_160, %c0_161], %443 {strides = array<i32>} : memref<72x1280xf32, #tpu.memory_space<vmem>>, vector<8x256xf32>,
    %445 = vector.extract_strided_slice %405 {offsets = [0, 15], sizes = [8, 241], strides = [1, 1]} : vector<8x256xf32> to vector<8x241xf32>
    %446 = vector.extract_strided_slice %405 {offsets = [0, 0], sizes = [8, 15], strides = [1, 1]} : vector<8x256xf32> to vector<8x15xf32>
    %447 = tpu.concatenate %445, %446 in 1 : vector<8x241xf32>, vector<8x15xf32> -> vector<8x256xf32>
    %448 = vector.extract_strided_slice %6 {offsets = [6, 0], sizes = [1, 256], strides = [1, 1]} : vector<9x256xf32> to vector<1x256xf32>
    %449 = vector.broadcast %448 : vector<1x256xf32> to vector<8x256xf32>
    %450 = arith.mulf %447, %449 : vector<8x256xf32>
    %c48_162 = arith.constant 48 : index
    %c0_163 = arith.constant 0 : index
    %451 = vector.load %arg12[%c48_162, %c0_163] : memref<72x1280xf32, #tpu.memory_space<vmem>>, vector<8x256xf32>
    tpu.vector_store %arg12[%c48_162, %c0_163], %450 {strides = array<i32>} : memref<72x1280xf32, #tpu.memory_space<vmem>>, vector<8x256xf32>,
    %452 = vector.extract_strided_slice %405 {offsets = [0, 16], sizes = [8, 240], strides = [1, 1]} : vector<8x256xf32> to vector<8x240xf32>
    %453 = vector.extract_strided_slice %405 {offsets = [0, 0], sizes = [8, 16], strides = [1, 1]} : vector<8x256xf32> to vector<8x16xf32>
    %454 = tpu.concatenate %452, %453 in 1 : vector<8x240xf32>, vector<8x16xf32> -> vector<8x256xf32>
    %455 = vector.extract_strided_slice %6 {offsets = [7, 0], sizes = [1, 256], strides = [1, 1]} : vector<9x256xf32> to vector<1x256xf32>
    %456 = vector.broadcast %455 : vector<1x256xf32> to vector<8x256xf32>
    %457 = arith.mulf %454, %456 : vector<8x256xf32>
    %c56_164 = arith.constant 56 : index
    %c0_165 = arith.constant 0 : index
    %458 = vector.load %arg12[%c56_164, %c0_165] : memref<72x1280xf32, #tpu.memory_space<vmem>>, vector<8x256xf32>
    tpu.vector_store %arg12[%c56_164, %c0_165], %457 {strides = array<i32>} : memref<72x1280xf32, #tpu.memory_space<vmem>>, vector<8x256xf32>,
    %459 = vector.extract_strided_slice %405 {offsets = [0, 17], sizes = [8, 239], strides = [1, 1]} : vector<8x256xf32> to vector<8x239xf32>
    %460 = vector.extract_strided_slice %405 {offsets = [0, 0], sizes = [8, 17], strides = [1, 1]} : vector<8x256xf32> to vector<8x17xf32>
    %461 = tpu.concatenate %459, %460 in 1 : vector<8x239xf32>, vector<8x17xf32> -> vector<8x256xf32>
    %462 = vector.extract_strided_slice %6 {offsets = [8, 0], sizes = [1, 256], strides = [1, 1]} : vector<9x256xf32> to vector<1x256xf32>
    %463 = vector.broadcast %462 : vector<1x256xf32> to vector<8x256xf32>
    %464 = arith.mulf %461, %463 : vector<8x256xf32>
    %c64_166 = arith.constant 64 : index
    %c0_167 = arith.constant 0 : index
    %465 = vector.load %arg12[%c64_166, %c0_167] : memref<72x1280xf32, #tpu.memory_space<vmem>>, vector<8x256xf32>
    tpu.vector_store %arg12[%c64_166, %c0_167], %464 {strides = array<i32>} : memref<72x1280xf32, #tpu.memory_space<vmem>>, vector<8x256xf32>,
    %c0_168 = arith.constant 0 : index
    %c0_169 = arith.constant 0 : index
    %466 = vector.load %arg12[%c0_168, %c0_169] : memref<72x1280xf32, #tpu.memory_space<vmem>>, vector<72x256xf32>
    %cst_170 = arith.constant dense<0.000000e+00> : vector<8x256xf32>
    %467 = tpu.matmul %9, %466, %cst_170 {dimension_numbers = #tpu.dot_dimension_numbers<[1], [0], [0], [1], [0, 0, 1, 1], [], []>} : vector<8x72xf32>, vector<72x256xf32>, vector<8x256xf32> -> vector<8x256xf32>
    %468 = vector.broadcast %10 : vector<8x1xf32> to vector<8x256xf32>
    %469 = arith.addf %467, %468 : vector<8x256xf32>
    %c0_171 = arith.constant 0 : index
    %c0_172 = arith.constant 0 : index
    %c0_173 = arith.constant 0 : index
    %470 = vector.load %arg9[%c0_171, %c0_172, %c0_173] : memref<1x8x256xf32, #tpu.memory_space<vmem>>, vector<1x8x256xf32>
    %471 = vector.shape_cast %470 : vector<1x8x256xf32> to vector<8x256xf32>
    %472 = vector.shape_cast %469 : vector<8x256xf32> to vector<1x8x256xf32>
    tpu.vector_store %arg9[%c0_171, %c0_172, %c0_173], %472 {strides = array<i32>} : memref<1x8x256xf32, #tpu.memory_space<vmem>>, vector<1x8x256xf32>,
    %c0_174 = arith.constant 0 : index
    %c0_175 = arith.constant 0 : index
    %c0_176 = arith.constant 0 : index
    %473 = vector.load %arg10[%c0_174, %c0_175, %c0_176] : memref<1x8x256xf32, #tpu.memory_space<vmem>>, vector<1x8x256xf32>
    %474 = vector.shape_cast %473 : vector<1x8x256xf32> to vector<8x256xf32>
    %475 = vector.shape_cast %334 : vector<8x256xf32> to vector<1x8x256xf32>
    tpu.vector_store %arg10[%c0_174, %c0_175, %c0_176], %475 {strides = array<i32>} : memref<1x8x256xf32, #tpu.memory_space<vmem>>, vector<1x8x256xf32>,
    return
  }
  func.func @transform_0(%arg0: i32) -> (i32, i32, i32) {
    %c0_i32 = arith.constant 0 : i32
    %c0_i32_0 = arith.constant 0 : i32
    %c0_i32_1 = arith.constant 0 : i32
    return %arg0, %c0_i32, %c0_i32_0 : i32, i32, i32
  }
  func.func @transform_1(%arg0: i32) -> (i32, i32, i32) {
    %c0_i32 = arith.constant 0 : i32
    %c0_i32_0 = arith.constant 0 : i32
    %c0_i32_1 = arith.constant 0 : i32
    return %arg0, %c0_i32, %c0_i32_0 : i32, i32, i32
  }
  func.func @transform_2(%arg0: i32) -> (i32, i32, i32) {
    %c0_i32 = arith.constant 0 : i32
    %c0_i32_0 = arith.constant 0 : i32
    %c0_i32_1 = arith.constant 0 : i32
    return %arg0, %c0_i32, %c0_i32_0 : i32, i32, i32
  }
  func.func @transform_3(%arg0: i32) -> (i32, i32) {
    %c0_i32 = arith.constant 0 : i32
    %c0_i32_0 = arith.constant 0 : i32
    %c0_i32_1 = arith.constant 0 : i32
    return %c0_i32, %c0_i32_0 : i32, i32
  }
  func.func @transform_4(%arg0: i32) -> (i32, i32) {
    %c0_i32 = arith.constant 0 : i32
    %c0_i32_0 = arith.constant 0 : i32
    %c0_i32_1 = arith.constant 0 : i32
    return %c0_i32, %c0_i32_0 : i32, i32
  }
  func.func @transform_5(%arg0: i32) -> (i32, i32) {
    %c0_i32 = arith.constant 0 : i32
    %c0_i32_0 = arith.constant 0 : i32
    %c0_i32_1 = arith.constant 0 : i32
    return %c0_i32, %c0_i32_0 : i32, i32
  }
  func.func @transform_6(%arg0: i32) -> (i32, i32) {
    %c0_i32 = arith.constant 0 : i32
    %c0_i32_0 = arith.constant 0 : i32
    %c0_i32_1 = arith.constant 0 : i32
    return %c0_i32, %c0_i32_0 : i32, i32
  }
  func.func @transform_7(%arg0: i32) -> (i32, i32) {
    %c0_i32 = arith.constant 0 : i32
    %c0_i32_0 = arith.constant 0 : i32
    %c0_i32_1 = arith.constant 0 : i32
    return %c0_i32, %c0_i32_0 : i32, i32
  }
  func.func @transform_8(%arg0: i32) -> (i32, i32, i32) {
    %c0_i32 = arith.constant 0 : i32
    %c0_i32_0 = arith.constant 0 : i32
    %c0_i32_1 = arith.constant 0 : i32
    return %arg0, %c0_i32, %c0_i32_0 : i32, i32, i32
  }
  func.func @transform_9(%arg0: i32) -> (i32, i32, i32) {
    %c0_i32 = arith.constant 0 : i32
    %c0_i32_0 = arith.constant 0 : i32
    %c0_i32_1 = arith.constant 0 : i32
    return %arg0, %c0_i32, %c0_i32_0 : i32, i32, i32
  }
}

</mosaic_0001>

<bundles_post_ra>
// kernel: tpu_custom_call.1
= control target key start
LH: loop header
LB: loop body
LE: loop exit
PB: predicated region body
PF: predicated region fallthrough
CT: control target
= control target key end

     0   :  { %s4549_s0 = inlined_call_operand.hbm [shape: f32[2,8,256], index: 0, kind: input, shape index: {}]   ;;  %s4550_s1 = inlined_call_operand.hbm [shape: f32[2,8,256], index: 1, kind: input, shape index: {}]   ;;  %s4551_s2 = inlined_call_operand.hbm [shape: f32[2,40,256], index: 2, kind: input, shape index: {}]   ;;  %s4552_s3 = inlined_call_operand.hbm [shape: f32[9,256], index: 3, kind: input, shape index: {}]   ;;  %s4553_s4 = inlined_call_operand.vmem [shape: f32[8,72], index: 4, kind: input, shape index: {}]   ;;  %s4554_s5 = inlined_call_operand.vmem [shape: f32[8,1], index: 5, kind: input, shape index: {}]   ;;  %s4555_s6 = inlined_call_operand.vmem [shape: f32[8,72], index: 6, kind: input, shape index: {}]   ;;  %s4556_s7 = inlined_call_operand.vmem [shape: f32[8,1], index: 7, kind: input, shape index: {}]   ;;  %s4557_s8 = inlined_call_operand.hbm [shape: f32[2,8,256], index: 8, kind: output, shape index: {0}]   ;;  %s4558_s9 = inlined_call_operand.hbm [shape: f32[2,8,256], index: 9, kind: output, shape index: {1}]  }
   0x1   :  { %4639 = sst [smem:[#allocation82_spill]] %s4550_s1 }
   0x2   :  { %4640 = sst [smem:[#allocation83_spill]] %s4555_s6 }
   0x3   :  { %4641 = sst [smem:[#allocation84_spill]] %s4557_s8 }
   0x4   :  { %4642 = sst [smem:[#allocation85_spill]] %s4558_s9 }
   0x5   :  { %15 = vsyncpa [#allocation5], 0 }
   0x6   :  { %17 = vsyncpa [#allocation5 + $0x1], 0 }
   0x7   :  { %18 = vsyncpa [#allocation8], 0 }
   0x8   :  { %20 = vsyncpa [#allocation8 + $0x1], 0 }
   0x9   :  { %21 = vsyncpa [#allocation11], 0 }
   0xa   :  { %22 = vsyncpa [#allocation6], 0 }
   0xb   :  { %24 = vsyncpa [#allocation6 + $0x1], 0 }
   0xc   :  { %25 = vsyncpa [#allocation14], 0 }
   0xd   :  { %27 = vsyncpa [#allocation14 + $0x1], 0  ;;  %s3068_s30 = smov 0   ;;  %s3070_s10 = smov 0  }
   0xe   :  { %s3072_s11 = smov 0   ;;  %s3074_s12 = smov 0  }
   0xf LB: > { %4643 = sst [smem:[#allocation20_spill]] %s2986_s30  ;;  %s3089_s13 = sadd.s32 1, %s2998_s12   ;;  %s2998_s12 = sphi %s3074_s12, %s4802_s12   ;;  %s2994_s11 = sphi %s3072_s11, %s4804_s11   ;;  %s2990_s10 = sphi %s3070_s10, %s4806_s10   ;;  %s2986_s30 = sphi %s3068_s30, %s4805_s30  }
  0x10   : > { %4644 = sst [smem:[#allocation21_spill]] %s2994_s11  ;;  %s40_s14 = sadd.s32 1, %s2994_s11 }
  0x11   : > { %4645 = sst [smem:[#allocation22_spill]] %s3089_s13  ;;  %s37_s15 = ssub.s32 %s2998_s12, %s3089_s13 }
  0x12   : > { %p4560_p0 = scmp.ne.s32.totalorder %s2994_s11, %s2990_s10  ;;  %p38_p1 = scmp.eq.s32.totalorder %s37_s15, 0 }
  0x13   : > { %p48_p2 = scmp.eq.s32.totalorder %s2998_s12, 0  ;;  %p2720_p4 = scmp.lt.s32.totalorder %s2998_s12, 2 }
  0x14   : > { %s3100_s16 = scalar_select %p38_p1, %s2994_s11, %s40_s14  }
  0x15   : > { %p49_p5 = por %p48_p2, %p4560_p0  ;;  %s3106_s17 = sand.u32 1, %s2994_s11  }
  0x16   : > { %4646 = sst [smem:[#allocation23_spill]] %s3100_s16  ;;  %s4559_s18 = sshll.u32 %s3106_s17, 4 }
  0x17   : > { %s2549_s19 = sshll.u32 %s2998_s12, 8  ;;  %p3110_p6 = pnand %p2720_p4, %p49_p5 }
  0x18   : > { %s330_s21 = sand.u32 1, %s2998_s12   ;;  %s4648_s1 = sld [smem:[#allocation82_spill]] }
  0x19   : > { %s4647_s20 = scalar_select %p3110_p6, 1, 0 }
  0x1a   : > { %s334_s25 = scalar_lea.vmem [#allocation7], %s4559_s18  ;;  %s2681_s27 = smul.u32 80, %s3106_s17 }
  0x1b   : > { %s342_s26 = sshll.u32 %s334_s25, 4  ;;  %s3127_s28 = scalar_lea.sflag [#allocation8], %s330_s21  ;;  %s3125_s26 = int_to_ptr.vmem [resolvable:$true] %s342_s26 }
  0x1c   : > { %p3133_p8 = pneg %p3110_p6 }
  0x1e   : > { %s3120_s24 = scalar_lea.hbm %s4648_s1, %s2549_s19  ;;  %s2779_s23 = scalar_lea.hbm %s4648_s1, 512 }
  0x1f   : > { %s2774_s29 = scalar_lea.hbm %s3120_s24, 256  ;;  %p2780_p11 = scmp.lt.u32.totalorder %s3120_s24, %s4648_s1 }
  0x20   : > { %p2775_p7 = scmp.ne.s32.totalorder %s3120_s24, %s2774_s29  ;;  %p2781_p12 = scmp.lt.u32.totalorder %s2779_s23, %s2774_s29 }
  0x21   : > { %s4649_s14 = scalar_select %p3133_p8, 1, 0 }
  0x22   : > { %p2777_p9 = pnand %p3133_p8, %p2775_p7  ;;  %p2782_p13 = por %p2781_p12, %p2780_p11 }
  0x23   : > { %p2783_p1 = scmp.lt.u32.totalorder %s2774_s29, %s3120_s24 }
  0x24   : > { %p2778_p10 = pneg %p2777_p9 }
  0x25   : > { %p2784_p2 = por %p2783_p1, %p2782_p13 }
  0x27   : > { %p2785_p4 = pnand %p2784_p2, %p2778_p10 }
  0x29   : > { %2788 = shalt.err (!%p2785_p4)
}
  0x2a   : > { %s2789_s21 = scalar_lea.vmem %s3125_s26, 256  ;;  %s3000_s15 = smov [#allocation7]  }
  0x2b   : > { %p2790_p5 = scmp.ne.s32.totalorder %s3125_s26, %s2789_s21  ;;  %s2794_s22 = sshll.u32 %s3000_s15, 4  ;;  %s2795_s22 = int_to_ptr.vmem [resolvable:$false] %s2794_s22 }
  0x2c   : > { %s2796_s18 = scalar_lea.vmem %s2795_s22, 512  ;;  %p2797_p3 = scmp.lt.s32.totalorder %s3125_s26, %s2795_s22 }
  0x2d   : > { %p2792_p7 = pnand %p2790_p5, %p3133_p8  ;;  %p2798_p0 = scmp.lt.s32.totalorder %s2796_s18, %s2789_s21 }
  0x2f   : > { %p2793_p9 = pneg %p2792_p7  ;;  %p2799_p11 = por %p2798_p0, %p2797_p3 }
  0x31   : > { %p2800_p12 = pnand %p2799_p11, %p2793_p9 }
  0x33   : > { %2803 = shalt.err (!%p2800_p12)
}
  0x34   : > { %2708 = dma.hbm_to_vmem [thread:$0]  (!%p3110_p6), %s3120_s24, 256, %s3125_s26, %s3127_s28  }
  0x35   : > { %s3158_s29 = sadd.s32 4294967295, %s2998_s12   ;;  %s353_s23 = scalar_lea.vmem [#allocation9], %s2681_s27 }
  0x36   : > { %s360_s25 = sshll.u32 %s353_s23, 4  ;;  %s2510_s21 = sadd.s32 4294967294, %s2998_s12   ;;  %s3212_s25 = int_to_ptr.vmem [resolvable:$true] %s360_s25 }
  0x37   : > { %p53_p0 = scmp.ne.s32.totalorder %s2990_s10, %s2986_s30  ;;  %p4568_p3 = scmp.eq.s32.totalorder %s3158_s29, 0 }
  0x38   : > { %p234_p10 = scmp.eq.s32.totalorder %s3158_s29, 1  ;;  %p240_p13 = scmp.eq.s32.totalorder %s2510_s21, 1 }
  0x39   : > { %p3169_p1 = por %p4568_p3, %p53_p0  ;;  %p2511_p2 = scmp.ge.s32.totalorder %s2998_s12, 1 }
  0x3a   : > { %p4651_p4 = scmp.ne.s32.totalorder %s2994_s11, %s2990_s10  ;;  %p3181_p7 = por %p240_p13, %p53_p0 }
  0x3b   : > { %s4650_s24 = scalar_select %p3169_p1, 1, 0 }
  0x3c   : > { %p3177_p5 = por %p234_p10, %p4651_p4  ;;  %p273_p9 = scmp.lt.s32.totalorder %s2998_s12, 3 }
  0x3d   : > { %s4654_s27 = scalar_select %p3181_p7, 1, 0 }
  0x3e   : > { %s4652_s26 = scalar_select %p3177_p5, 1, 0 }
  0x3f   : > { %4655 = sst [smem:[#allocation25_spill]] %s4654_s27  ;;  %p3186_p11 = pnand %p2511_p2, %p273_p9 }
  0x40   : > { %4653 = sst [smem:[#allocation24_spill]] %s4652_s26  ;;  %s3001_s22 = smov [#allocation10]  }
  0x41   : > { %s4656_s15 = scalar_select %p3186_p11, 1, 0 }
  0x42   : > { %s285_s18 = sshll.u32 %s3001_s22, 4  ;;  %p2698_p12 = pneg %p3186_p11  ;;  %s3190_s18 = int_to_ptr.vmem [resolvable:$true] %s285_s18 }
  0x43   : > { %s3199_s1 = scalar_lea.hbm %s4549_s0, %s2549_s19  ;;  %s4658_s11 = sshll.u32 %s3106_s17, 4 }
  0x44   : > { %p3203_p0 = pnand %p2698_p12, %p4568_p3  ;;  %s315_s13 = scalar_lea.vmem [#allocation4], %s4658_s11 }
  0x45   : > { %s323_s27 = sshll.u32 %s315_s13, 4  ;;  %s2804_s23 = scalar_lea.hbm %s4552_s3, 512  ;;  %s3209_s27 = int_to_ptr.vmem [resolvable:$true] %s323_s27 }
  0x46   : > { %p2805_p10 = scmp.ne.s32.totalorder %s4552_s3, %s2804_s23  ;;  %p2806_p13 = pneg %p3203_p0 }
  0x47   : > { %p2811_p9 = scmp.lt.u32.totalorder %s2804_s23, %s4552_s3 }
  0x48   : > { %p2807_p2 = pnand %p2806_p13, %p2805_p10 }
  0x4a   : > { %p2808_p4 = pneg %p2807_p2 }
  0x4c   : > { %p2813_p12 = pnand %p2811_p9, %p2808_p4 }
  0x4e   : > { %2816 = shalt.err (!%p2813_p12)
}
  0x4f   : > { %s2817_s13 = scalar_lea.vmem %s3190_s18, 512  ;;  %p2825_p1 = scmp.lt.s32.totalorder %s3190_s18, %s3190_s18 }
  0x50   : > { %p2818_p3 = scmp.ne.s32.totalorder %s3190_s18, %s2817_s13  ;;  %p2826_p11 = scmp.lt.s32.totalorder %s2817_s13, %s2817_s13 }
  0x52   : > { %p2820_p7 = pnand %p2818_p3, %p2806_p13  ;;  %p2827_p6 = por %p2826_p11, %p2825_p1 }
  0x54   : > { %p2821_p5 = pneg %p2820_p7 }
  0x56   : > { %p2828_p8 = pnand %p2827_p6, %p2821_p5 }
  0x58   : > { %2831 = shalt.err (!%p2828_p8)
}
  0x59   : > { %s3002_s8 = smov 256   ;;  %s3003_s9 = smov 16  }
  0x5a   : > { %2701 = dma.hbm_to_vmem [thread:$0]  (!%p3203_p0), %s4552_s3, 512, %s3190_s18, [#allocation11], %s3002_s8, %s3002_s8, %s3003_s9  }
  0x5b   : > { %s312_s19 = scalar_lea.sflag [#allocation5], %s3106_s17  ;;  %s2832_s21 = scalar_lea.hbm %s3199_s1, 256 }
  0x5c   : > { %p2833_p6 = scmp.ne.s32.totalorder %s3199_s1, %s2832_s21  ;;  %p4659_p8 = scmp.ne.s32.totalorder %s4649_s14, 0 }
  0x5d   : > { %s2837_s22 = scalar_lea.hbm %s4549_s0, 512  ;;  %p2838_p5 = scmp.lt.u32.totalorder %s3199_s1, %s4549_s0 }
  0x5e   : > { %p2835_p3 = pnand %p2833_p6, %p4659_p8  ;;  %p2839_p7 = scmp.lt.u32.totalorder %s2837_s22, %s2832_s21 }
  0x5f   : > { %p2841_p10 = scmp.lt.u32.totalorder %s2832_s21, %s3199_s1 }
  0x60   : > { %p2836_p1 = pneg %p2835_p3  ;;  %p2840_p11 = por %p2839_p7, %p2838_p5 }
  0x62   : > { %p2842_p13 = por %p2841_p10, %p2840_p11 }
  0x64   : > { %p2843_p2 = pnand %p2842_p13, %p2836_p1 }
  0x66   : > { %2846 = shalt.err (!%p2843_p2)
}
  0x67   : > { %s2847_s16 = scalar_lea.vmem %s3209_s27, 256  ;;  %s3004_s17 = smov [#allocation4]  }
  0x68   : > { %p2848_p0 = scmp.ne.s32.totalorder %s3209_s27, %s2847_s16  ;;  %s2852_s18 = sshll.u32 %s3004_s17, 4  ;;  %s2853_s18 = int_to_ptr.vmem [resolvable:$false] %s2852_s18 }
  0x69   : > { %s2854_s6 = scalar_lea.vmem %s2853_s18, 512  ;;  %p2855_p12 = scmp.lt.s32.totalorder %s3209_s27, %s2853_s18 }
  0x6a   : > { %p2850_p4 = pnand %p2848_p0, %p4659_p8  ;;  %p2856_p6 = scmp.lt.s32.totalorder %s2854_s6, %s2847_s16 }
  0x6c   : > { %p2851_p9 = pneg %p2850_p4  ;;  %p2857_p3 = por %p2856_p6, %p2855_p12 }
  0x6e   : > { %p2858_p5 = pnand %p2857_p3, %p2851_p9 }
  0x70   : > { %2861 = shalt.err (!%p2858_p5)
}
  0x71   : > { %p4660_p1 = scmp.ne.s32.totalorder %s4647_s20, 0  ;;  %s4661_s26 = smul.u32 1280, %s2998_s12 }
  0x72   : > { %s2867_s16 = scalar_lea.hbm %s4551_s2, 2560 }
  0x73   : > { %2705 = dma.hbm_to_vmem [thread:$0]  (!%p4660_p1), %s3199_s1, 256, %s3209_s27, %s312_s19  }
  0x74   : > { %s3265_s23 = scalar_lea.hbm %s4551_s2, %s4661_s26 }
  0x75   : > { %s2862_s21 = scalar_lea.hbm %s3265_s23, 1280  ;;  %p2868_p13 = scmp.lt.u32.totalorder %s3265_s23, %s4551_s2 }
  0x76   : > { %p2863_p7 = scmp.ne.s32.totalorder %s3265_s23, %s2862_s21  ;;  %p2869_p2 = scmp.lt.u32.totalorder %s2867_s16, %s2862_s21 }
  0x77   : > { %p2871_p4 = scmp.lt.u32.totalorder %s2862_s21, %s3265_s23 }
  0x78   : > { %p2865_p11 = pnand %p2863_p7, %p4659_p8  ;;  %p2870_p0 = por %p2869_p2, %p2868_p13 }
  0x7a   : > { %p2866_p10 = pneg %p2865_p11  ;;  %p2872_p9 = por %p2871_p4, %p2870_p0 }
  0x7c   : > { %p2873_p12 = pnand %p2872_p9, %p2866_p10 }
  0x7e   : > { %2876 = shalt.err (!%p2873_p12)
}
  0x7f   : > { %s2877_s19 = scalar_lea.vmem %s3212_s25, 1280  ;;  %s3005_s17 = smov [#allocation9]  }
  0x80   : > { %p2878_p6 = scmp.ne.s32.totalorder %s3212_s25, %s2877_s19  ;;  %s2882_s18 = sshll.u32 %s3005_s17, 4  ;;  %s2883_s18 = int_to_ptr.vmem [resolvable:$false] %s2882_s18 }
  0x81   : > { %s2884_s6 = scalar_lea.vmem %s2883_s18, 2560  ;;  %p2885_p7 = scmp.lt.s32.totalorder %s3212_s25, %s2883_s18 }
  0x82   : > { %p2880_p3 = pnand %p2878_p6, %p4659_p8  ;;  %p2886_p11 = scmp.lt.s32.totalorder %s2884_s6, %s2877_s19 }
  0x84   : > { %p2881_p5 = pneg %p2880_p3  ;;  %p2887_p13 = por %p2886_p11, %p2885_p7 }
  0x86   : > { %p2888_p2 = pnand %p2887_p13, %p2881_p5 }
  0x88   : > { %2891 = shalt.err (!%p2888_p2)
}
  0x89   : > { %2711 = dma.hbm_to_vmem [thread:$0]  (!%p4660_p1), %s3265_s23, 1280, %s3212_s25, %s3127_s28, %s3002_s8, %s3002_s8, %s3003_s9  }
  0x8a   : > { %p4662_p8 = scmp.ne.s32.totalorder %s4656_s15, 0 }
  0x8c   : > { %372 = sbr.rel (%p4662_p8) target bundleno = 1717 (0x6b5), region = 52 }
  0x93   : > { %s3295_s14 = sand.u32 1, %s2990_s10   ;;  %p4663_p10 = scmp.ne.s32.totalorder %s4650_s24, 0 }
  0x94   : > { %s3298_s26 = sshll.u32 %s3295_s14, 4  ;;  %s375_s20 = scalar_lea.sflag [#allocation5], %s3295_s14 }
  0x95   : > { %s3302_s22 = scalar_lea.vmem [#allocation4], %s3298_s26 }
  0x96   : > { %2965 = dma.done.wait (%p4663_p10), %s375_s20, 256  }
  0x97   : > { %2967 = vsyncadd (%p4663_p10), %s375_s20, 4294967040  ;;  %s383_s28 = sand.u32 1, %s3158_s29   ;;  %s387_s15 = scalar_lea.vmem [#allocation7], %s3298_s26 }
  0x98   : > { %s384_s25 = scalar_lea.sflag [#allocation8], %s383_s28 }
  0x99   : > { %2969 = dma.done.wait (%p4663_p10), %s384_s25, 1536  }
  0x9a   : > { %2971 = vsyncadd (%p4663_p10), %s384_s25, 4294965760  ;;  %s2683_s8 = smul.u32 80, %s3295_s14  ;;  %p4664_p1 = scmp.eq.s32.totalorder %s3158_s29, 0 }
  0x9c   : > { %s3315_s9 = scalar_lea.vmem [#allocation9], %s2683_s8 }
  0x9d   : > { %2973 = dma.done.wait (%p4664_p1), [#allocation11], 512   ;;  %p4665_p0 = pmov %p4664_p1 }
  0x9e   : > { %v3322_v0 = vld [vmem:[%s3302_s22 + $0x8] sm:$0xff]  ;;  %s3006_s30 = smov 16   ;;  %s3007_s24 = smov 17   ;;  %v3329_v1 = vld [vmem:[%s3302_s22] sm:$0xff]  ;;  %v4578_v2 = vmov 0.0   ;;  %v3013_v3 = vmov 0   ;;  %v484_v11 = vlaneseq }
  0x9f   : > { %2975 = vsyncadd (%p4665_p0), [#allocation11], 4294966784  ;;  %496 = vrot.lane.b32.xlu1 %v3322_v0, %s3006_s30  ;;  %473 = vrot.lane.b32.xlu0 %v3322_v0, %s3007_s24  ;;  %s3008_s23 = smov 15   ;;  %s3009_s21 = smov 1   ;;  %v469_v4 = vld [vmem:[%s4554_s5] sm:$0xff]  ;;  %v3370_v6 = vld [vmem:[%s3315_s9 + $0x8] sm:$0xff] }
  0xa0   : > { %s3010_s11 = smov 127   ;;  %s3011_s13 = smov 113   ;;  %753 = vmatprep.mubr.f32.mxu0 %v4578_v2  ;;  %1566 = vmatprep.mubr.f32.mxu1 %v4578_v2  ;;  %v3365_v5 = vld [vmem:[%s3315_s9] sm:$0xff]  ;;  %4667 = vst [vmem:[#allocation27_spill] sm:$0xff] %v3370_v6  ;;  %v3397_v7 = vld [vmem:[%s3315_s9 + $0x10] sm:$0xff]  ;;  %v3404_v8 = vld [vmem:[%s3315_s9 + $0x18] sm:$0xff] }
  0xa1   : > { %2768 = vset.pattern.permute.xlu0 %v3013_v3  ;;  %s3014_s16 = smov 112   ;;  %s3015_s1 = smov 111   ;;  %4666 = vst [vmem:[#allocation26_spill] sm:$0xff] %v3365_v5  ;;  %4668 = vst [vmem:[#allocation28_spill] sm:$0xff] %v3397_v7  ;;  %v3411_v9 = vld [vmem:[%s3315_s9 + $0x20] sm:$0xff]  ;;  %v3418_v10 = vld [vmem:[%s3315_s9 + $0x28] sm:$0xff] }
  0xa2   : > { %4669 = vst [vmem:[#allocation29_spill] sm:$0xff] %v3404_v8  ;;  %4670 = vst [vmem:[#allocation30_spill] sm:$0xff] %v3411_v9  ;;  %v3456_v12 = vshrl.u32 %v484_v11, 7  ;;  %v3463_v14 = vld [vmem:[#allocation10] sm:$0xff]  ;;  %v3470_v16 = vld [vmem:[#allocation10 + $0x8] sm:$0xff]  ;;  %vm501_vm0 = vcmask 130048  }
  0xa3   : > { %499 = vrot.lane.b32.xlu1 %v3329_v1, %s3006_s30  ;;  %477 = vrot.lane.b32.xlu0 %v3329_v1, %s3007_s24  ;;  %4671 = vst [vmem:[#allocation31_spill] sm:$0xff] %v3418_v10  ;;  %vm479_vm1 = vcmask 138240   ;;  %v3491_v27 = vld [vmem:[%s3315_s9 + $0x30] sm:$0xff]  ;;  %v3506_v36 = vld [vmem:[%s3315_s9 + $0x38] sm:$0xff]  ;;  %vm523_vm2 = vcmask 121856   ;;  %vm545_vm3 = vcmask 7168  }
  0xa4   : > { %v486_v13 = vsub.s32 0, %v3456_v12  ;;  %v508_v15 = vsub.s32 1, %v3456_v12  ;;  %v530_v25 = vsub.s32 2, %v3456_v12  ;;  %v552_v26 = vsub.s32 3, %v3456_v12  ;;  %4676 = vst [vmem:[#allocation36_spill] sm:$0xff] %v3491_v27  ;;  %4677 = vst [vmem:[#allocation37_spill] sm:$0xff] %v3506_v36 }
  0xa5   : > { %v564_v41 = vsub.s32 4, %v3456_v12  ;;  %v586_v43 = vsub.s32 5, %v3456_v12  ;;  %vm578_vm4 = vcmask 1039360   ;;  %vm600_vm5 = vcmask 924672   ;;  %s4756_s8 = sld [smem:[#allocation83_spill]]  ;;  %s2327_s27 = scalar_lea.sflag [#allocation14], %s3295_s14 }
  0xa6   : > { %v3473_v19 = vrot.slane %v3463_v14, %v486_v13  ;;  %v3476_v20 = vrot.slane %v3470_v16, %v486_v13  ;;  %v3479_v21 = vrot.slane %v3470_v16, %v508_v15  ;;  %v3482_v22 = vrot.slane %v3463_v14, %v508_v15  ;;  %v3555_v13 = vld [vmem:[%s3315_s9 + $0x40] sm:$0xff]  ;;  %s3016_s17 = smov [#allocation13]  }
  0xa7   : > { %521 = vrot.lane.b32.xlu1 %v3329_v1, %s3008_s23  ;;  %518 = vrot.lane.b32.xlu0 %v3322_v0, %s3008_s23  ;;  %v3510_v42 = vrot.slane %v3463_v14, %v530_v25  ;;  %v3514_v44 = vrot.slane %v3470_v16, %v530_v25  ;;  %v3517_v45 = vrot.slane %v3463_v14, %v552_v26  ;;  %v630_v25 = vsub.s32 7, %v3456_v12  ;;  %s2896_s18 = sshll.u32 %s3016_s17, 4  ;;  %s2897_s18 = int_to_ptr.vmem [resolvable:$false] %s2896_s18 }
  0xa8   : > { %4672 = vst [vmem:[#allocation32_spill] sm:$0xff] %v3473_v19  ;;  %4673 = vst [vmem:[#allocation33_spill] sm:$0xff] %v3476_v20  ;;  %v3520_v46 = vrot.slane %v3470_v16, %v552_v26  ;;  %v3529_v51 = vrot.slane %v3470_v16, %v564_v41  ;;  %v3532_v52 = vrot.slane %v3463_v14, %v564_v41  ;;  %vm622_vm6 = vcmask 916480   ;;  %s2898_s6 = scalar_lea.vmem %s2897_s18, 512 }
  0xa9   : > { %4674 = vst [vmem:[#allocation34_spill] sm:$0xff] %v3479_v21  ;;  %4675 = vst [vmem:[#allocation35_spill] sm:$0xff] %v3482_v22  ;;  %v3537_v55 = vrot.slane %v3463_v14, %v586_v43  ;;  %v3540_v56 = vrot.slane %v3470_v16, %v586_v43  ;;  %vm644_vm7 = vcmask 908288   ;;  %v3596_v43 = vld [vmem:[#allocation10 + $0x18] ss:$0 sm:$0xff]  ;;  %vm685_vm8 = vcmask 588800  }
  0xaa   : > { %4678 = vst [vmem:[#allocation38_spill] sm:$0xff] %v3510_v42  ;;  %4679 = vst [vmem:[#allocation39_spill] sm:$0xff] %v3514_v44  ;;  %v570_v11 = vmul.f32 %v3532_v52, %v3329_v1 }
  0xab   : > { %543 = vrot.lane.b32.xlu1 %v3329_v1, %s3009_s21  ;;  %540 = vrot.lane.b32.xlu0 %v3322_v0, %s3009_s21  ;;  %4680 = vst [vmem:[#allocation40_spill] sm:$0xff] %v3517_v45  ;;  %4681 = vst [vmem:[#allocation41_spill] sm:$0xff] %v3520_v46 }
  0xac   : > { %4682 = vst [vmem:[#allocation42_spill] sm:$0xff] %v3529_v51  ;;  %4683 = vst [vmem:[#allocation43_spill] sm:$0xff] %v3532_v52 }
  0xad   : > { %4684 = vst [vmem:[#allocation44_spill] sm:$0xff] %v3537_v55  ;;  %4685 = vst [vmem:[#allocation45_spill] sm:$0xff] %v3540_v56 }
  0xae   : > { %4686 = vst [vmem:[#allocation46_spill] sm:$0xff] %v3555_v13  ;;  %4692 = vst [vmem:[#allocation52_spill] sm:$0xff] %v3596_v43 }
  0xaf   : > { %576 = vrot.lane.b32.xlu1 %v3322_v0, %s3010_s11  ;;  %574 = vrot.lane.b32.xlu0 %v3329_v1, %s3010_s11 }
  0xb3   : > { %598 = vrot.lane.b32.xlu1 %v3322_v0, %s3011_s13  ;;  %596 = vrot.lane.b32.xlu0 %v3329_v1, %s3011_s13 }
  0xb7   : > { %620 = vrot.lane.b32.xlu1 %v3322_v0, %s3014_s16  ;;  %618 = vrot.lane.b32.xlu0 %v3329_v1, %s3014_s16 }
  0xbb   : > { %642 = vrot.lane.b32.xlu1 %v3322_v0, %s3015_s1  ;;  %640 = vrot.lane.b32.xlu0 %v3329_v1, %s3015_s1 }
  0xbf   : > { %682 = vperm.xlu0 %2768, %v469_v4   ;;  %800 = vrot.lane.b32.xlu1 %v3365_v5, %s3007_s24  ;;  %v571_v4 = vmul.f32 %v3529_v51, %v3322_v0  ;;  %v3568_v0 = vld [vmem:[%s3315_s9 + $0x48] sm:$0xff]  ;;  %s4350_s9 = scalar_lea.vmem [#allocation13], %s3298_s26 }
  0xc0   : > { %4687 = vst [vmem:[#allocation47_spill] sm:$0xff] %v3568_v0 }
  0xc3   : > { %780 = vrot.lane.b32.xlu0 %v3370_v6, %s3007_s24  ;;  %876 = vrot.lane.b32.xlu1 %v3365_v5, %s3006_s30 }
  0xc7   : > { %861 = vrot.lane.b32.xlu0 %v3370_v6, %s3006_s30  ;;  %952 = vrot.lane.b32.xlu1 %v3365_v5, %s3008_s23 }
  0xcb   : > { %937 = vrot.lane.b32.xlu0 %v3370_v6, %s3008_s23  ;;  %1028 = vrot.lane.b32.xlu1 %v3365_v5, %s3009_s21 }
  0xcf   : > { %1013 = vrot.lane.b32.xlu0 %v3370_v6, %s3009_s21  ;;  %1113 = vrot.lane.b32.xlu1 %v3370_v6, %s3010_s11 }
  0xd3   : > { %1111 = vrot.lane.b32.xlu0 %v3365_v5, %s3010_s11  ;;  %1189 = vrot.lane.b32.xlu1 %v3370_v6, %s3011_s13 }
  0xd7   : > { %1187 = vrot.lane.b32.xlu0 %v3365_v5, %s3011_s13  ;;  %1265 = vrot.lane.b32.xlu1 %v3370_v6, %s3014_s16 }
  0xdb   : > { %1263 = vrot.lane.b32.xlu0 %v3365_v5, %s3014_s16  ;;  %802 = vrot.lane.b32.xlu1 %v3397_v7, %s3007_s24 }
  0xdf   : > { %782 = vrot.lane.b32.xlu0 %v3404_v8, %s3007_s24  ;;  %878 = vrot.lane.b32.xlu1 %v3397_v7, %s3006_s30 }
  0xe3   : > { %863 = vrot.lane.b32.xlu0 %v3404_v8, %s3006_s30  ;;  %804 = vrot.lane.b32.xlu1 %v3411_v9, %s3007_s24 }
  0xe7   : > { %784 = vrot.lane.b32.xlu0 %v3418_v10, %s3007_s24  ;;  %880 = vrot.lane.b32.xlu1 %v3411_v9, %s3006_s30 }
  0xeb   : > { %865 = vrot.lane.b32.xlu0 %v3418_v10, %s3006_s30  ;;  %1341 = vrot.lane.b32.xlu1 %v3370_v6, %s3015_s1 }
  0xef   : > { %1339 = vrot.lane.b32.xlu0 %v3365_v5, %s3015_s1  ;;  %954 = vrot.lane.b32.xlu1 %v3397_v7, %s3008_s23 }
  0xf3   : > { %939 = vrot.lane.b32.xlu0 %v3404_v8, %s3008_s23  ;;  %1030 = vrot.lane.b32.xlu1 %v3397_v7, %s3009_s21 }
  0xf7   : > { %1015 = vrot.lane.b32.xlu0 %v3404_v8, %s3009_s21  ;;  %956 = vrot.lane.b32.xlu1 %v3411_v9, %s3008_s23 }
  0xfb   : > { %941 = vrot.lane.b32.xlu0 %v3418_v10, %s3008_s23  ;;  %1032 = vrot.lane.b32.xlu1 %v3411_v9, %s3009_s21 }
  0xff   : > { %1017 = vrot.lane.b32.xlu0 %v3418_v10, %s3009_s21  ;;  %1117 = vrot.lane.b32.xlu1 %v3404_v8, %s3010_s11 }
 0x103   : > { %1115 = vrot.lane.b32.xlu0 %v3397_v7, %s3010_s11  ;;  %1121 = vrot.lane.b32.xlu1 %v3418_v10, %s3010_s11 }
 0x107   : > { %1119 = vrot.lane.b32.xlu0 %v3411_v9, %s3010_s11  ;;  %1193 = vrot.lane.b32.xlu1 %v3404_v8, %s3011_s13 }
 0x10b   : > { %1191 = vrot.lane.b32.xlu0 %v3397_v7, %s3011_s13  ;;  %1269 = vrot.lane.b32.xlu1 %v3404_v8, %s3014_s16 }
 0x10f   : > { %1267 = vrot.lane.b32.xlu0 %v3397_v7, %s3014_s16  ;;  %1197 = vrot.lane.b32.xlu1 %v3418_v10, %s3011_s13 }
 0x111   : > { %v497_v17 = vpop.permute.xlu1 %496  ;;  %v474_v18 = vpop.permute.xlu0 %473 }
 0x113   : > { %1195 = vrot.lane.b32.xlu0 %v3411_v9, %s3011_s13  ;;  %1273 = vrot.lane.b32.xlu1 %v3418_v10, %s3014_s16 }
 0x115   : > { %v500_v23 = vpop.permute.xlu1 %499  ;;  %v478_v24 = vpop.permute.xlu0 %477 }
 0x116   : > { %v505_v28 = vsel %vm501_vm0, %v497_v17, %v500_v23  ;;  %v483_v29 = vsel %vm479_vm1, %v474_v18, %v478_v24  ;;  %v480_v30 = vsel %vm479_vm1, %v478_v24, %v474_v18  ;;  %v502_v31 = vsel %vm501_vm0, %v500_v23, %v497_v17 }
 0x117   : > { %v493_v32 = vmul.f32 %v3476_v20, %v480_v30  ;;  %v515_v33 = vmul.f32 %v3479_v21, %v502_v31  ;;  %v492_v34 = vmul.f32 %v3473_v19, %v483_v29  ;;  %v514_v35 = vmul.f32 %v3482_v22, %v505_v28  ;;  %1271 = vrot.lane.b32.xlu0 %v3411_v9, %s3014_s16 }
 0x118   : > { %806 = vrot.lane.b32.xlu1 %v3491_v27, %s3007_s24  ;;  %v608_v18 = vsub.s32 6, %v3456_v12  ;;  %v3577_v12 = vrot.slane %v3463_v14, %v630_v25 }
 0x119   : > { %v522_v37 = vpop.permute.xlu1 %521  ;;  %v519_v38 = vpop.permute.xlu0 %518  ;;  %v2553_v39 = vpack.c.bf16 %v515_v33, %v493_v32  ;;  %v2555_v40 = vpack.c.bf16 %v514_v35, %v492_v34  ;;  %v3580_v32 = vrot.slane %v3470_v16, %v630_v25 }
 0x11a   : > { %v524_v47 = vsel %vm523_vm2, %v522_v37, %v519_v38  ;;  %v527_v48 = vsel %vm523_vm2, %v519_v38, %v522_v37  ;;  %v3571_v30 = vrot.slane %v3463_v14, %v608_v18  ;;  %v3574_v31 = vrot.slane %v3470_v16, %v608_v18  ;;  %4690 = vst [vmem:[#allocation50_spill] sm:$0xff] %v3577_v12 }
 0x11b   : > { %2554 = vmatprep.subr.bf16.mxu0 %v2553_v39  ;;  %786 = vrot.lane.b32.xlu0 %v3506_v36, %s3007_s24  ;;  %v536_v57 = vmul.f32 %v3510_v42, %v527_v48  ;;  %v537_v58 = vmul.f32 %v3514_v44, %v524_v47  ;;  %4691 = vst [vmem:[#allocation51_spill] sm:$0xff] %v3580_v32 }
 0x11c   : > { %2556 = vmatpush1.bf16.msra.mxu0 %v2555_v40  ;;  %882 = vrot.lane.b32.xlu1 %v3491_v27, %s3006_s30  ;;  %4688 = vst [vmem:[#allocation48_spill] sm:$0xff] %v3571_v30  ;;  %4689 = vst [vmem:[#allocation49_spill] sm:$0xff] %v3574_v31 }
 0x11d   : > { %v544_v49 = vpop.permute.xlu1 %543  ;;  %v541_v50 = vpop.permute.xlu0 %540 }
 0x11e   : > { %v546_v53 = vsel %vm545_vm3, %v544_v49, %v541_v50  ;;  %v549_v54 = vsel %vm545_vm3, %v541_v50, %v544_v49 }
 0x11f   : > { %v558_v59 = vmul.f32 %v3517_v45, %v549_v54  ;;  %v559_v60 = vmul.f32 %v3520_v46, %v546_v53  ;;  %867 = vrot.lane.b32.xlu0 %v3506_v36, %s3006_s30  ;;  %v3598_v53 = vld [vmem:[#allocation10 + $0x10] ss:$0 sm:$0xff] }
 0x120   : > { %1345 = vrot.lane.b32.xlu1 %v3404_v8, %s3015_s1  ;;  %4693 = vst [vmem:[#allocation53_spill] sm:$0xff] %v3598_v53 }
 0x121   : > { %v577_v61 = vpop.permute.xlu1 %576  ;;  %v575_v62 = vpop.permute.xlu0 %574  ;;  %v2557_v63 = vpack.c.bf16 %v559_v60, %v537_v58  ;;  %v2559_v3 = vpack.c.bf16 %v558_v59, %v536_v57  ;;  %v468_v60 = vld [vmem:[%s4553_s4] sm:$0xff] }
 0x122   : > { %v579_v15 = vsel %vm578_vm4, %v575_v62, %v577_v61  ;;  %v583_v17 = vsel %vm578_vm4, %v577_v61, %v575_v62 }
 0x123   : > { %v592_v23 = vmul.f32 %v3537_v55, %v579_v15  ;;  %v593_v24 = vmul.f32 %v3540_v56, %v583_v17  ;;  %2558 = vmatprep.subr.bf16.mxu0 %v2557_v63  ;;  %1343 = vrot.lane.b32.xlu0 %v3397_v7, %s3015_s1 }
 0x124   : > { %2560 = vmatpush1.bf16.msra.mxu0 %v2559_v3  ;;  %808 = vrot.lane.b32.xlu1 %v3555_v13, %s3007_s24 }
 0x125   : > { %v599_v1 = vpop.permute.xlu1 %598  ;;  %v597_v26 = vpop.permute.xlu0 %596  ;;  %v2561_v28 = vpack.c.bf16 %v593_v24, %v571_v4  ;;  %v2563_v29 = vpack.c.bf16 %v592_v23, %v570_v11 }
 0x126   : > { %v601_v33 = vsel %vm600_vm5, %v597_v26, %v599_v1  ;;  %v605_v34 = vsel %vm600_vm5, %v599_v1, %v597_v26 }
 0x127   : > { %2562 = vmatprep.subr.bf16.mxu0 %v2561_v28  ;;  %788 = vrot.lane.b32.xlu0 %v3568_v0, %s3007_s24  ;;  %v614_v16 = vmul.f32 %v3571_v30, %v601_v33  ;;  %v615_v39 = vmul.f32 %v3574_v31, %v605_v34 }
 0x128   : > { %2564 = vmatpush1.bf16.msra.mxu0 %v2563_v29  ;;  %884 = vrot.lane.b32.xlu1 %v3555_v13, %s3006_s30 }
 0x129   : > { %v621_v35 = vpop.permute.xlu1 %620  ;;  %v619_v37 = vpop.permute.xlu0 %618 }
 0x12a   : > { %v623_v38 = vsel %vm622_vm6, %v619_v37, %v621_v35  ;;  %v627_v14 = vsel %vm622_vm6, %v621_v35, %v619_v37 }
 0x12b   : > { %v636_v40 = vmul.f32 %v3577_v12, %v623_v38  ;;  %v637_v41 = vmul.f32 %v3580_v32, %v627_v14  ;;  %869 = vrot.lane.b32.xlu0 %v3568_v0, %s3006_s30 }
 0x12d   : > { %v643_v47 = vpop.permute.xlu1 %642  ;;  %v641_v48 = vpop.permute.xlu0 %640  ;;  %v2565_v49 = vpack.c.bf16 %v637_v41, %v615_v39  ;;  %v2567_v50 = vpack.c.bf16 %v636_v40, %v614_v16 }
 0x12e   : > { %v645_v54 = vsel %vm644_vm7, %v641_v48, %v643_v47  ;;  %v649_v57 = vsel %vm644_vm7, %v643_v47, %v641_v48 }
 0x12f   : > { %2566 = vmatprep.subr.bf16.mxu0 %v2565_v49  ;;  %v659_v58 = vmul.f32 %v3596_v43, %v649_v57  ;;  %v658_v59 = vmul.f32 %v3598_v53, %v645_v54 }
 0x130   : > { %2568 = vmatpush1.bf16.msra.mxu0 %v2567_v50 }
 0x131   : > { %705 = vmatprep.subr.mxu0 %v659_v58  ;;  %v3611_v62 = vpop.permute.xlu1 %800 }
 0x134   : > { %706 = vmatpush1.msra.mxu0 %v658_v59 }
 0x135   : > { %2529 = vmatmul.mubr.msk.f32.vlgmr.msra.gmra.mrb[0].mxu0 %vm685_vm8, %v468_v60  ;;  %v3615_v3 = vpop.permute.xlu1 %876 }
 0x136   : > { %1637 = vmatprep.mubr.f32.mxu0 %v4578_v2 }
 0x139   : > { %v3619_v11 = vpop.permute.xlu1 %952 }
 0x13d   : > { %v3623_v17 = vpop.permute.xlu1 %1028 }
 0x13e   : > { %v3609_v61 = vpop.permute.xlu0 %682 }
 0x13f   : > { %4694 = vst [vmem:[#allocation54_spill] sm:$0xff] %v3609_v61 }
 0x141   : > { %v3627_v23 = vpop.permute.xlu1 %1113 }
 0x142   : > { %v3613_v63 = vpop.permute.xlu0 %780 }
 0x145   : > { %v3631_v25 = vpop.permute.xlu1 %1189 }
 0x146   : > { %v3617_v4 = vpop.permute.xlu0 %861 }
 0x149   : > { %v3635_v26 = vpop.permute.xlu1 %1265 }
 0x14a   : > { %v3621_v15 = vpop.permute.xlu0 %937 }
 0x14d   : > { %v3639_v29 = vpop.permute.xlu1 %802 }
 0x14e   : > { %v3625_v18 = vpop.permute.xlu0 %1013 }
 0x151   : > { %v3643_v34 = vpop.permute.xlu1 %878 }
 0x152   : > { %v3629_v24 = vpop.permute.xlu0 %1111 }
 0x155   : > { %v3647_v37 = vpop.permute.xlu1 %804 }
 0x156   : > { %v3633_v1 = vpop.permute.xlu0 %1187 }
 0x159   : > { %v3651_v14 = vpop.permute.xlu1 %880 }
 0x15a   : > { %v3637_v28 = vpop.permute.xlu0 %1263 }
 0x15d   : > { %v3655_v39 = vpop.permute.xlu1 %1341 }
 0x15e   : > { %v3641_v33 = vpop.permute.xlu0 %782 }
 0x161   : > { %v3659_v41 = vpop.permute.xlu1 %954 }
 0x162   : > { %v3645_v35 = vpop.permute.xlu0 %863 }
 0x165   : > { %v3663_v48 = vpop.permute.xlu1 %1030 }
 0x166   : > { %v3649_v38 = vpop.permute.xlu0 %784 }
 0x169   : > { %v3667_v50 = vpop.permute.xlu1 %956 }
 0x16a   : > { %v3653_v16 = vpop.permute.xlu0 %865 }
 0x16d   : > { %v3671_v57 = vpop.permute.xlu1 %1032 }
 0x16e   : > { %v3657_v40 = vpop.permute.xlu0 %1339  ;;  %4695 = vst [vmem:[#allocation55_spill] sm:$0xff] %v3671_v57 }
 0x171   : > { %v1118_v59 = vpop.permute.xlu1 %1117 }
 0x172   : > { %v3661_v47 = vpop.permute.xlu0 %939 }
 0x175   : > { %v1122_v53 = vpop.permute.xlu1 %1121 }
 0x176   : > { %v3665_v49 = vpop.permute.xlu0 %1015 }
 0x179   : > { %v1194_v30 = vpop.permute.xlu1 %1193 }
 0x17a   : > { %v3669_v54 = vpop.permute.xlu0 %941 }
 0x17e   : > { %v3673_v58 = vpop.permute.xlu0 %1017 }
 0x182   : > { %v1116_v60 = vpop.permute.xlu0 %1115 }
 0x183   : > { %v3676_v2 = vsel %vm578_vm4, %v1116_v60, %v1118_v59  ;;  %v3679_v43 = vsel %vm578_vm4, %v1118_v59, %v1116_v60 }
 0x184   : > { %4696 = vst [vmem:[#allocation56_spill] sm:$0xff] %v3676_v2  ;;  %4697 = vst [vmem:[#allocation57_spill] sm:$0xff] %v3679_v43  ;;  %v1270_v2 = vpop.permute.xlu1 %1269 }
 0x186   : > { %v1120_v32 = vpop.permute.xlu0 %1119 }
 0x187   : > { %v3682_v12 = vsel %vm578_vm4, %v1120_v32, %v1122_v53  ;;  %v3685_v31 = vsel %vm578_vm4, %v1122_v53, %v1120_v32 }
 0x188   : > { %4698 = vst [vmem:[#allocation58_spill] sm:$0xff] %v3682_v12  ;;  %4699 = vst [vmem:[#allocation59_spill] sm:$0xff] %v3685_v31  ;;  %v1198_v12 = vpop.permute.xlu1 %1197 }
 0x18a   : > { %v1192_v8 = vpop.permute.xlu0 %1191 }
 0x18b   : > { %v3688_v6 = vsel %vm600_vm5, %v1192_v8, %v1194_v30  ;;  %v3691_v7 = vsel %vm600_vm5, %v1194_v30, %v1192_v8 }
 0x18c   : > { %4700 = vst [vmem:[#allocation60_spill] sm:$0xff] %v3688_v6  ;;  %4701 = vst [vmem:[#allocation61_spill] sm:$0xff] %v3691_v7  ;;  %v1274_v31 = vpop.permute.xlu1 %1273 }
 0x18e   : > { %v1268_v5 = vpop.permute.xlu0 %1267 }
 0x18f   : > { %v3694_v59 = vsel %vm622_vm6, %v1268_v5, %v1270_v2  ;;  %v3697_v60 = vsel %vm622_vm6, %v1270_v2, %v1268_v5 }
 0x190   : > { %4702 = vst [vmem:[#allocation62_spill] sm:$0xff] %v3694_v59  ;;  %4703 = vst [vmem:[#allocation63_spill] sm:$0xff] %v3697_v60  ;;  %v807_v59 = vpop.permute.xlu1 %806 }
 0x192   : > { %v1196_v43 = vpop.permute.xlu0 %1195 }
 0x193   : > { %v3700_v32 = vsel %vm600_vm5, %v1196_v43, %v1198_v12  ;;  %v3703_v53 = vsel %vm600_vm5, %v1198_v12, %v1196_v43 }
 0x194   : > { %4704 = vst [vmem:[#allocation64_spill] sm:$0xff] %v3700_v32  ;;  %4705 = vst [vmem:[#allocation65_spill] sm:$0xff] %v3703_v53  ;;  %v883_v32 = vpop.permute.xlu1 %882 }
 0x196   : > { %v1272_v6 = vpop.permute.xlu0 %1271 }
 0x197   : > { %v3706_v8 = vsel %vm622_vm6, %v1272_v6, %v1274_v31  ;;  %v3709_v30 = vsel %vm622_vm6, %v1274_v31, %v1272_v6 }
 0x198   : > { %4706 = vst [vmem:[#allocation66_spill] sm:$0xff] %v3706_v8  ;;  %4707 = vst [vmem:[#allocation67_spill] sm:$0xff] %v3709_v30  ;;  %v3723_v53 = vpop.permute.xlu1 %1345 }
 0x19a   : > { %v787_v7 = vpop.permute.xlu0 %786 }
 0x19b   : > { %v3712_v2 = vsel %vm479_vm1, %v807_v59, %v787_v7  ;;  %v3715_v5 = vsel %vm479_vm1, %v787_v7, %v807_v59 }
 0x19c   : > { %v809_v31 = vpop.permute.xlu1 %808 }
 0x19e   : > { %v868_v60 = vpop.permute.xlu0 %867 }
 0x19f   : > { %v3718_v12 = vsel %vm501_vm0, %v883_v32, %v868_v60  ;;  %v3721_v43 = vsel %vm501_vm0, %v868_v60, %v883_v32 }
 0x1a0   : > { %v3826_v32 = vpop.permute.xlu1 %884 }
 0x1a1   : > { %4710 = vst [vmem:[#allocation70_spill] sm:$0xff] %v3826_v32  ;;  %v901_v32 = vsel %vm501_vm0, %v3617_v4, %v3615_v3 }
 0x1a2   : > { %v3725_v6 = vpop.permute.xlu0 %1343 }
 0x1a6   : > { %v789_v8 = vpop.permute.xlu0 %788 }
 0x1a7   : > { %v3728_v30 = vsel %vm479_vm1, %v809_v31, %v789_v8  ;;  %v3731_v7 = vsel %vm479_vm1, %v789_v8, %v809_v31 }
 0x1a8   : > { %4708 = vst [vmem:[#allocation68_spill] sm:$0xff] %v3728_v30  ;;  %4709 = vst [vmem:[#allocation69_spill] sm:$0xff] %v3731_v7 }
 0x1aa   : > { %v3828_v8 = vpop.permute.xlu0 %869 }
 0x1ab   : > { %4711 = vst [vmem:[#allocation71_spill] sm:$0xff] %v3828_v8  ;;  %v810_v8 = vsel %vm479_vm1, %v3611_v62, %v3613_v63 }
 0x208   : > { %v755_v59 = vpop.f32.mrb[0].mxu0 }
 0x209   : > { %v756_v56 = vadd.f32 %v755_v59, %v3609_v61  ;;  %v757_v55 = vpop.f32.mrb[1].mxu0 }
 0x20b   : > { %v3734_v57 = vmax.f32 %v756_v56, 0.0  ;;  %v758_v56 = vadd.f32 %v757_v55, %v3609_v61  ;;  %v471_v55 = vld [vmem:[%s4556_s7] sm:$0xff] }
 0x20d   : > { %1100 = vrot.lane.b32.xlu0 %v3734_v57, %s3010_s11  ;;  %767 = vrot.lane.b32.xlu1 %v3734_v57, %s3007_s24  ;;  %v3753_v60 = vmax.f32 %v758_v56, 0.0 }
 0x211   : > { %1176 = vrot.lane.b32.xlu0 %v3734_v57, %s3011_s13  ;;  %853 = vrot.lane.b32.xlu1 %v3734_v57, %s3006_s30 }
 0x215   : > { %1252 = vrot.lane.b32.xlu0 %v3734_v57, %s3014_s16  ;;  %929 = vrot.lane.b32.xlu1 %v3734_v57, %s3008_s23 }
 0x219   : > { %1328 = vrot.lane.b32.xlu0 %v3734_v57, %s3015_s1  ;;  %1005 = vrot.lane.b32.xlu1 %v3734_v57, %s3009_s21 }
 0x21d   : > { %850 = vrot.lane.b32.xlu0 %v3753_v60, %s3006_s30  ;;  %763 = vrot.lane.b32.xlu1 %v3753_v60, %s3007_s24 }
 0x221   : > { %926 = vrot.lane.b32.xlu0 %v3753_v60, %s3008_s23  ;;  %1349 = vrot.lane.b32.xlu1 %v3418_v10, %s3015_s1 }
 0x225   : > { %1002 = vrot.lane.b32.xlu0 %v3753_v60, %s3009_s21  ;;  %958 = vrot.lane.b32.xlu1 %v3491_v27, %s3008_s23 }
 0x229   : > { %1347 = vrot.lane.b32.xlu0 %v3411_v9, %s3015_s1  ;;  %1034 = vrot.lane.b32.xlu1 %v3491_v27, %s3009_s21 }
 0x22d   : > { %943 = vrot.lane.b32.xlu0 %v3506_v36, %s3008_s23  ;;  %1102 = vrot.lane.b32.xlu1 %v3753_v60, %s3010_s11 }
 0x231   : > { %1019 = vrot.lane.b32.xlu0 %v3506_v36, %s3009_s21  ;;  %1178 = vrot.lane.b32.xlu1 %v3753_v60, %s3011_s13 }
 0x235   : > { %945 = vrot.lane.b32.xlu0 %v3568_v0, %s3008_s23  ;;  %1254 = vrot.lane.b32.xlu1 %v3753_v60, %s3014_s16 }
 0x239   : > { %1021 = vrot.lane.b32.xlu0 %v3568_v0, %s3009_s21  ;;  %1330 = vrot.lane.b32.xlu1 %v3753_v60, %s3015_s1 }
 0x23d   : > { %1123 = vrot.lane.b32.xlu0 %v3491_v27, %s3010_s11  ;;  %960 = vrot.lane.b32.xlu1 %v3555_v13, %s3008_s23 }
 0x241   : > { %1127 = vrot.lane.b32.xlu0 %v3555_v13, %s3010_s11  ;;  %1036 = vrot.lane.b32.xlu1 %v3555_v13, %s3009_s21 }
 0x245   : > { %1199 = vrot.lane.b32.xlu0 %v3491_v27, %s3011_s13  ;;  %1125 = vrot.lane.b32.xlu1 %v3506_v36, %s3010_s11 }
 0x249   : > { %1275 = vrot.lane.b32.xlu0 %v3491_v27, %s3014_s16  ;;  %1129 = vrot.lane.b32.xlu1 %v3568_v0, %s3010_s11 }
 0x24d   : > { %1203 = vrot.lane.b32.xlu0 %v3555_v13, %s3011_s13  ;;  %1201 = vrot.lane.b32.xlu1 %v3506_v36, %s3011_s13 }
 0x251   : > { %1279 = vrot.lane.b32.xlu0 %v3555_v13, %s3014_s16  ;;  %1277 = vrot.lane.b32.xlu1 %v3506_v36, %s3014_s16 }
 0x255   : > { %1351 = vrot.lane.b32.xlu0 %v3491_v27, %s3015_s1  ;;  %1205 = vrot.lane.b32.xlu1 %v3568_v0, %s3011_s13  ;;  %v962_v27 = vsel %vm523_vm2, %v3619_v11, %v3621_v15 }
 0x259   : > { %1355 = vrot.lane.b32.xlu0 %v3555_v13, %s3015_s1  ;;  %1281 = vrot.lane.b32.xlu1 %v3568_v0, %s3014_s16 }
 0x25d   : > { %1496 = vperm.xlu0 %2768, %v471_v55   ;;  %1353 = vrot.lane.b32.xlu1 %v3506_v36, %s3015_s1  ;;  %v886_v36 = vsel %vm501_vm0, %v3615_v3, %v3617_v4  ;;  %v3870_v3 = vsel %vm578_vm4, %v3627_v23, %v3629_v24  ;;  %v3875_v4 = vsel %vm600_vm5, %v3633_v1, %v3631_v25 }
 0x25e   : > { %4715 = vst [vmem:[#allocation75_spill] sm:$0xff] %v3875_v4 }
 0x261   : > { %1357 = vrot.lane.b32.xlu1 %v3568_v0, %s3015_s1  ;;  %v825_v0 = vsel %vm479_vm1, %v3613_v63, %v3611_v62  ;;  %v1053_v62 = vsel %vm545_vm3, %v3625_v18, %v3623_v17  ;;  %v3865_v63 = vsel %vm578_vm4, %v3629_v24, %v3627_v23 }
 0x27f   : > { %v3830_v31 = vpop.permute.xlu0 %1100  ;;  %v768_v59 = vpop.permute.xlu1 %767 }
 0x283   : > { %v3832_v56 = vpop.permute.xlu0 %1176  ;;  %v854_v61 = vpop.permute.xlu1 %853 }
 0x284   : > { %4712 = vst [vmem:[#allocation72_spill] sm:$0xff] %v3832_v56 }
 0x287   : > { %v3834_v13 = vpop.permute.xlu0 %1252  ;;  %v930_v7 = vpop.permute.xlu1 %929 }
 0x288   : > { %4713 = vst [vmem:[#allocation73_spill] sm:$0xff] %v3834_v13  ;;  %v1038_v13 = vsel %vm545_vm3, %v3623_v17, %v3625_v18 }
 0x28b   : > { %v3836_v55 = vpop.permute.xlu0 %1328  ;;  %v1006_v30 = vpop.permute.xlu1 %1005 }
 0x28c   : > { %4714 = vst [vmem:[#allocation74_spill] sm:$0xff] %v3836_v55  ;;  %v977_v55 = vsel %vm523_vm2, %v3621_v15, %v3619_v11  ;;  %v3880_v11 = vsel %vm600_vm5, %v3631_v25, %v3633_v1  ;;  %v811_v1 = vsel %vm479_vm1, %v3639_v29, %v3641_v33 }
 0x28f   : > { %v851_v15 = vpop.permute.xlu0 %850  ;;  %v764_v17 = vpop.permute.xlu1 %763 }
 0x290   : > { %v855_v18 = vsel %vm501_vm0, %v854_v61, %v851_v15  ;;  %v858_v9 = vsel %vm501_vm0, %v851_v15, %v854_v61  ;;  %v769_v10 = vsel %vm479_vm1, %v768_v59, %v764_v17  ;;  %v772_v23 = vsel %vm479_vm1, %v764_v17, %v768_v59 }
 0x291   : > { %v3887_v24 = vmul.f32 %v858_v9, %v3482_v22  ;;  %v3890_v4 = vmul.f32 %v855_v18, %v3479_v21  ;;  %v3893_v56 = vmul.f32 %v772_v23, %v3473_v19  ;;  %v3896_v25 = vmul.f32 %v769_v10, %v3476_v20 }
 0x292   : > { %v3901_v61 = vsel %vm622_vm6, %v3637_v28, %v3635_v26  ;;  %v826_v9 = vsel %vm479_vm1, %v3641_v33, %v3639_v29  ;;  %v887_v59 = vsel %vm501_vm0, %v3643_v34, %v3645_v35  ;;  %v902_v19 = vsel %vm501_vm0, %v3645_v35, %v3643_v34 }
 0x293   : > { %4716 = vst [vmem:[#allocation76_spill] sm:$0xff] %v3890_v4  ;;  %4717 = vst [vmem:[#allocation77_spill] sm:$0xff] %v3893_v56  ;;  %v927_v15 = vpop.permute.xlu0 %926  ;;  %v3912_v10 = vpop.permute.xlu1 %1349  ;;  %v831_v17 = vmul.f32 %v810_v8, %v3896_v25  ;;  %v907_v18 = vmul.f32 %v886_v36, %v3890_v4  ;;  %v835_v23 = vmul.f32 %v811_v1, %v3896_v25 }
 0x294   : > { %4718 = vst [vmem:[#allocation78_spill] sm:$0xff] %v3896_v25  ;;  %4719 = vst [vmem:[#allocation79_spill] sm:$0xff] %v3901_v61  ;;  %v911_v21 = vmul.f32 %v887_v59, %v3890_v4  ;;  %v931_v22 = vsel %vm523_vm2, %v930_v7, %v927_v15  ;;  %v934_v20 = vsel %vm523_vm2, %v927_v15, %v930_v7 }
 0x295   : > { %4720 = vst [vmem:[#allocation80_spill] sm:$0xff] %v3912_v10  ;;  %v830_v29 = vmul.f32 %v825_v0, %v3893_v56  ;;  %v906_v33 = vmul.f32 %v901_v32, %v3887_v24  ;;  %v3926_v8 = vmul.f32 %v931_v22, %v3514_v44  ;;  %v2569_v36 = vpack.c.bf16 %v907_v18, %v831_v17  ;;  %v4750_v44 = vld [vmem:[#allocation53_spill] sm:$0xff] }
 0x296   : > { %v2585_v10 = vpack.c.bf16 %v911_v21, %v835_v23  ;;  %v3929_v1 = vmul.f32 %v934_v20, %v3510_v42  ;;  %v834_v61 = vmul.f32 %v826_v9, %v3893_v56  ;;  %v910_v7 = vmul.f32 %v902_v19, %v3887_v24 }
 0x297   : > { %v2571_v59 = vpack.c.bf16 %v906_v33, %v830_v29  ;;  %v963_v0 = vsel %vm523_vm2, %v3659_v41, %v3661_v47  ;;  %v978_v34 = vsel %vm523_vm2, %v3661_v47, %v3659_v41  ;;  %v1039_v21 = vsel %vm545_vm3, %v3663_v48, %v3665_v49  ;;  %v1003_v22 = vpop.permute.xlu0 %1002  ;;  %2570 = vmatprep.subr.bf16.mxu1 %v2569_v36  ;;  %v3942_v20 = vpop.permute.xlu1 %958 }
 0x298   : > { %2586 = vmatprep.subr.bf16.mxu0 %v2585_v10  ;;  %v1054_v19 = vsel %vm545_vm3, %v3665_v49, %v3663_v48  ;;  %v1007_v35 = vsel %vm545_vm3, %v1006_v30, %v1003_v22  ;;  %v1010_v32 = vsel %vm545_vm3, %v1003_v22, %v1006_v30  ;;  %v2587_v9 = vpack.c.bf16 %v910_v7, %v834_v61 }
 0x299   : > { %2572 = vmatpush1.bf16.msra.mxu1 %v2571_v59  ;;  %v3950_v41 = vmul.f32 %v1010_v32, %v3517_v45  ;;  %v3953_v47 = vmul.f32 %v1007_v35, %v3520_v46  ;;  %v983_v15 = vmul.f32 %v962_v27, %v3926_v8  ;;  %v3958_v10 = vmul.f32 %v3712_v2, %v3896_v25  ;;  %v4723_v35 = vld [vmem:[#allocation44_spill] sm:$0xff] }
 0x29a   : > { %2588 = vmatpush1.bf16.msra.mxu0 %v2587_v9  ;;  %v987_v48 = vmul.f32 %v963_v0, %v3926_v8  ;;  %v982_v49 = vmul.f32 %v977_v55, %v3929_v1  ;;  %v986_v30 = vmul.f32 %v978_v34, %v3929_v1  ;;  %v3965_v61 = vmul.f32 %v3718_v12, %v3890_v4  ;;  %v4724_v9 = vld [vmem:[#allocation45_spill] sm:$0xff] }
 0x29b   : > { %v3967_v17 = vpop.permute.xlu0 %1347  ;;  %v3969_v18 = vpop.permute.xlu1 %1034  ;;  %v1059_v27 = vmul.f32 %v1038_v13, %v3953_v47  ;;  %v1063_v2 = vmul.f32 %v1039_v21, %v3953_v47  ;;  %v1058_v23 = vmul.f32 %v1053_v62, %v3950_v41  ;;  %v1062_v29 = vmul.f32 %v1054_v19, %v3950_v41  ;;  %v4733_v13 = vld [vmem:[#allocation49_spill] sm:$0xff] }
 0x29c   : > { %4721 = vst [vmem:[#allocation81_spill] sm:$0xff] %v3967_v17  ;;  %v3978_v55 = vsel %vm622_vm6, %v3635_v26, %v3637_v28  ;;  %v812_v12 = vsel %vm479_vm1, %v3647_v37, %v3649_v38  ;;  %v827_v33 = vsel %vm479_vm1, %v3649_v38, %v3647_v37  ;;  %v888_v26 = vsel %vm501_vm0, %v3651_v14, %v3653_v16 }
 0x29d   : > { %v2573_v36 = vpack.c.bf16 %v1059_v27, %v983_v15  ;;  %v2589_v62 = vpack.c.bf16 %v1063_v2, %v987_v48  ;;  %v2575_v59 = vpack.c.bf16 %v1058_v23, %v982_v49  ;;  %v2591_v7 = vpack.c.bf16 %v1062_v29, %v986_v30  ;;  %v4725_v15 = vld [vmem:[#allocation26_spill] sm:$0xff]  ;;  %v4726_v49 = vld [vmem:[#allocation28_spill] sm:$0xff] }
 0x29e   : > { %v3993_v28 = vmul.f32 %v3734_v57, %v3532_v52  ;;  %v3997_v0 = vmul.f32 %v3715_v5, %v3893_v56  ;;  %v4001_v37 = vmul.f32 %v3721_v43, %v3887_v24  ;;  %v4006_v38 = vsel %vm501_vm0, %v3653_v16, %v3651_v14  ;;  %v4732_v27 = vld [vmem:[#allocation48_spill] sm:$0xff]  ;;  %v4734_v52 = vld [vmem:[#allocation31_spill] sm:$0xff] }
 0x29f   : > { %v4011_v34 = vsel %vm644_vm7, %v3657_v40, %v3655_v39  ;;  %v4016_v57 = vsel %vm644_vm7, %v3655_v39, %v3657_v40  ;;  %v4018_v5 = vpop.permute.xlu0 %943  ;;  %2574 = vmatprep.subr.bf16.mxu1 %v2573_v36  ;;  %2590 = vmatprep.subr.bf16.mxu0 %v2589_v62  ;;  %v1103_v43 = vpop.permute.xlu1 %1102  ;;  %v4023_v14 = vsel %vm523_vm2, %v3667_v50, %v3669_v54  ;;  %v4722_v40 = vld [vmem:[#allocation55_spill] sm:$0xff]  ;;  %v4727_v36 = vld [vmem:[#allocation57_spill] sm:$0xff] }
 0x2a0   : > { %v1104_v16 = vsel %vm578_vm4, %v3830_v31, %v1103_v43  ;;  %v1108_v21 = vsel %vm578_vm4, %v1103_v43, %v3830_v31  ;;  %2576 = vmatpush1.bf16.msra.mxu1 %v2575_v59  ;;  %v4031_v39 = vmul.f32 %v3753_v60, %v3529_v51  ;;  %v4036_v22 = vsel %vm545_vm3, %v4722_v40, %v3673_v58 }
 0x2a1   : > { %v4041_v19 = vsel %vm644_vm7, %v3725_v6, %v3723_v53  ;;  %v4044_v32 = vmul.f32 %v1104_v16, %v4723_v35  ;;  %v4047_v31 = vmul.f32 %v1108_v21, %v4724_v9  ;;  %2592 = vmatpush1.bf16.msra.mxu0 %v2591_v7  ;;  %v4052_v60 = vsel %vm644_vm7, %v3723_v53, %v3725_v6  ;;  %v4728_v6 = vld [vmem:[#allocation56_spill] sm:$0xff]  ;;  %v4730_v21 = vld [vmem:[#allocation27_spill] sm:$0xff]  ;;  %v4735_v35 = vld [vmem:[#allocation30_spill] sm:$0xff] }
 0x2a2   : > { %v1080_v48 = vmul.f32 %v3993_v28, %v4725_v15  ;;  %v1084_v30 = vmul.f32 %v3993_v28, %v4726_v49  ;;  %v4729_v7 = vld [vmem:[#allocation72_spill] sm:$0xff]  ;;  %v1081_v15 = vmul.f32 %v4031_v39, %v4730_v21  ;;  %v4731_v49 = vld [vmem:[#allocation29_spill] sm:$0xff]  ;;  %v4090_v51 = vmul.f32 %v3993_v28, %v4735_v35 }
 0x2a3   : > { %v4060_v2 = vpop.permute.xlu0 %1019  ;;  %v1179_v23 = vpop.permute.xlu1 %1178  ;;  %v1157_v29 = vmul.f32 %v3870_v3, %v4047_v31  ;;  %v1161_v62 = vmul.f32 %v4727_v36, %v4047_v31  ;;  %v1156_v53 = vmul.f32 %v3865_v63, %v4044_v32  ;;  %v1160_v59 = vmul.f32 %v4728_v6, %v4044_v32 }
 0x2a4   : > { %v1180_v43 = vsel %vm600_vm5, %v4729_v7, %v1179_v23  ;;  %v1184_v16 = vsel %vm600_vm5, %v1179_v23, %v4729_v7  ;;  %v1085_v3 = vmul.f32 %v4031_v39, %v4731_v49  ;;  %v4086_v6 = vmul.f32 %v4031_v39, %v4734_v52 }
 0x2a5   : > { %v4079_v36 = vmul.f32 %v1180_v43, %v4732_v27  ;;  %v4082_v63 = vmul.f32 %v1184_v16, %v4733_v13  ;;  %v2577_v23 = vpack.c.bf16 %v1157_v29, %v1081_v15  ;;  %v2579_v21 = vpack.c.bf16 %v1156_v53, %v1080_v48  ;;  %v4737_v48 = vld [vmem:[#allocation73_spill] sm:$0xff]  ;;  %v4738_v53 = vld [vmem:[#allocation50_spill] sm:$0xff] }
 0x2a6   : > { %v2593_v7 = vpack.c.bf16 %v1161_v62, %v1085_v3  ;;  %v2595_v9 = vpack.c.bf16 %v1160_v59, %v1084_v30  ;;  %v1041_v43 = vsel %vm545_vm3, %v3969_v18, %v4060_v2  ;;  %v4098_v16 = vmul.f32 %v812_v12, %v3896_v25  ;;  %v4739_v59 = vld [vmem:[#allocation51_spill] sm:$0xff] }
 0x2a7   : > { %v1255_v49 = vpop.permute.xlu1 %1254  ;;  %v4095_v27 = vpop.permute.xlu0 %945  ;;  %v4101_v52 = vmul.f32 %v888_v26, %v3890_v4  ;;  %v4104_v35 = vmul.f32 %v827_v33, %v3893_v56  ;;  %2578 = vmatprep.subr.bf16.mxu1 %v2577_v23  ;;  %v1233_v62 = vmul.f32 %v3880_v11, %v4082_v63  ;;  %v4740_v33 = vld [vmem:[#allocation61_spill] sm:$0xff]  ;;  %v4741_v3 = vld [vmem:[#allocation75_spill] sm:$0xff] }
 0x2a8   : > { %4736 = vst [vmem:[#allocation55_spill] sm:$0xff] %v4095_v27  ;;  %2594 = vmatprep.subr.bf16.mxu0 %v2593_v7  ;;  %v1256_v30 = vsel %vm622_vm6, %v4737_v48, %v1255_v49  ;;  %v1260_v29 = vsel %vm622_vm6, %v1255_v49, %v4737_v48  ;;  %2580 = vmatpush1.bf16.msra.mxu1 %v2579_v21  ;;  %v4742_v7 = vld [vmem:[#allocation60_spill] sm:$0xff]  ;;  %v4743_v48 = vld [vmem:[#allocation59_spill] sm:$0xff] }
 0x2a9   : > { %v4113_v12 = vmul.f32 %v1256_v30, %v4738_v53  ;;  %v4116_v26 = vmul.f32 %v1260_v29, %v4739_v59  ;;  %2596 = vmatpush1.bf16.msra.mxu0 %v2595_v9  ;;  %v1237_v15 = vmul.f32 %v4740_v33, %v4082_v63  ;;  %v1232_v23 = vmul.f32 %v4741_v3, %v4079_v36  ;;  %v4744_v30 = vld [vmem:[#allocation58_spill] sm:$0xff]  ;;  %v4745_v21 = vld [vmem:[#allocation63_spill] sm:$0xff] }
 0x2aa   : > { %v1236_v49 = vmul.f32 %v4742_v7, %v4079_v36  ;;  %v4126_v11 = vmul.f32 %v4743_v48, %v4047_v31  ;;  %v4130_v53 = vmul.f32 %v4744_v30, %v4044_v32  ;;  %v4746_v3 = vld [vmem:[#allocation79_spill] sm:$0xff]  ;;  %v4747_v7 = vld [vmem:[#allocation62_spill] sm:$0xff] }
 0x2ab   : > { %v1331_v29 = vpop.permute.xlu1 %1330  ;;  %v1309_v9 = vmul.f32 %v3978_v55, %v4116_v26  ;;  %v1313_v33 = vmul.f32 %v4745_v21, %v4116_v26  ;;  %v1308_v59 = vmul.f32 %v4746_v3, %v4113_v12  ;;  %v1312_v13 = vmul.f32 %v4747_v7, %v4113_v12  ;;  %v4140_v46 = vpop.permute.xlu0 %1021  ;;  %v4749_v48 = vld [vmem:[#allocation74_spill] sm:$0xff]  ;;  %v4751_v3 = vld [vmem:[#allocation52_spill] sm:$0xff] }
 0x2ac   : > { %4748 = vst [vmem:[#allocation26_spill] sm:$0xff] %v4140_v46  ;;  %v1332_v45 = vsel %vm644_vm7, %v4749_v48, %v1331_v29  ;;  %v1336_v30 = vsel %vm644_vm7, %v1331_v29, %v4749_v48  ;;  %v2611_v21 = vpack.c.bf16 %v4130_v53, %v4090_v51  ;;  %v4752_v46 = vld [vmem:[#allocation67_spill] sm:$0xff]  ;;  %v4753_v29 = vld [vmem:[#allocation66_spill] sm:$0xff] }
 0x2ad   : > { %v4151_v42 = vmul.f32 %v4750_v44, %v1332_v45  ;;  %v4154_v56 = vmul.f32 %v4751_v3, %v1336_v30  ;;  %v2581_v7 = vpack.c.bf16 %v1309_v9, %v1233_v62  ;;  %v2597_v27 = vpack.c.bf16 %v1313_v33, %v1237_v15 }
 0x2ae   : > { %v2583_v4 = vpack.c.bf16 %v1308_v59, %v1232_v23  ;;  %v2599_v25 = vpack.c.bf16 %v1312_v13, %v1236_v49  ;;  %v4158_v17 = vmul.f32 %v4752_v46, %v4116_v26  ;;  %v4162_v48 = vmul.f32 %v4753_v29, %v4113_v12  ;;  %v4754_v13 = vld [vmem:[#allocation65_spill] sm:$0xff]  ;;  %v4198_v49 = vld [vmem:[%s4756_s8] sm:$0xff] }
 0x2af   : > { %v4164_v55 = vpop.permute.xlu1 %960  ;;  %2582 = vmatprep.subr.bf16.mxu1 %v2581_v7  ;;  %2598 = vmatprep.subr.bf16.mxu0 %v2597_v27  ;;  %v1385_v44 = vmul.f32 %v4016_v57, %v4154_v56  ;;  %v1389_v45 = vmul.f32 %v4052_v60, %v4154_v56  ;;  %v1124_v62 = vpop.permute.xlu0 %1123  ;;  %v4172_v59 = vmul.f32 %v4754_v13, %v4082_v63  ;;  %v4755_v27 = vld [vmem:[#allocation64_spill] sm:$0xff]  ;;  %v4760_v29 = vld [vmem:[#allocation37_spill] sm:$0xff] }
 0x2b0   : > { %2584 = vmatpush1.bf16.msra.mxu1 %v2583_v4  ;;  %2600 = vmatpush1.bf16.msra.mxu0 %v2599_v25  ;;  %v914_v46 = vmul.f32 %v4006_v38, %v3887_v24  ;;  %v1067_v15 = vmul.f32 %v4036_v22, %v3953_v47  ;;  %v4180_v23 = vmul.f32 %v4755_v27, %v4079_v36  ;;  %v4759_v7 = vld [vmem:[#allocation36_spill] sm:$0xff] }
 0x2b1   : > { %v965_v57 = vsel %vm523_vm2, %v3942_v20, %v4018_v5  ;;  %v1056_v60 = vsel %vm545_vm3, %v4060_v2, %v3969_v18  ;;  %1518 = vmatprep.subr.mxu1 %v1385_v44  ;;  %1589 = vmatprep.subr.mxu0 %v1389_v45  ;;  %v2613_v4 = vpack.c.bf16 %v4158_v17, %v4172_v59 }
 0x2b2   : > { %v1071_v25 = vmul.f32 %v1041_v43, %v3953_v47  ;;  %v1384_v38 = vmul.f32 %v4011_v34, %v4151_v42  ;;  %v1388_v22 = vmul.f32 %v4041_v19, %v4151_v42  ;;  %v2615_v18 = vpack.c.bf16 %v4162_v48, %v4180_v23 }
 0x2b3   : > { %v1055_v17 = vsel %vm545_vm3, %v3673_v58, %v4722_v40  ;;  %v1037_v2 = vpop.permute.xlu1 %1036  ;;  %v2601_v43 = vpack.c.bf16 %v4101_v52, %v4098_v16  ;;  %v991_v34 = vmul.f32 %v4023_v14, %v3926_v8  ;;  %v4209_v19 = vpop.permute.xlu0 %1127  ;;  %v980_v9 = vsel %vm523_vm2, %v4018_v5, %v3942_v20  ;;  %v4767_v53 = vld [vmem:[#allocation26_spill] sm:$0xff] }
 0x2b4   : > { %v995_v33 = vmul.f32 %v965_v57, %v3926_v8  ;;  %1519 = vmatpush1.msra.mxu1 %v1384_v38  ;;  %1590 = vmatpush1.msra.mxu0 %v1388_v22  ;;  %v1066_v30 = vmul.f32 %v1055_v17, %v3950_v41  ;;  %v979_v58 = vsel %vm523_vm2, %v3669_v54, %v3667_v50  ;;  %v4763_v22 = vld [vmem:[#allocation71_spill] sm:$0xff]  ;;  %v4764_v17 = vld [vmem:[#allocation70_spill] sm:$0xff] }
 0x2b5   : > { %v1070_v40 = vmul.f32 %v1056_v60, %v3950_v41  ;;  %2530 = vmatmul.mubr.msk.f32.vlgmr.msra.gmra.mrb[0].mxu1 %vm685_vm8, %v4198_v49  ;;  %2531 = vmatmul.mubr.msk.f32.vlgmr.msra.gmra.mrb[2].mxu0 %vm685_vm8, %v4198_v49  ;;  %v2603_v20 = vpack.c.bf16 %v914_v46, %v4104_v35  ;;  %v4757_v5 = vpack.c.bf16 %v3965_v61, %v3958_v10 }
 0x2b6   : > { %2602 = vmatprep.subr.bf16.mxu1 %v2601_v43  ;;  %v2605_v14 = vpack.c.bf16 %v1067_v15, %v991_v34  ;;  %v2621_v16 = vpack.c.bf16 %v1071_v25, %v995_v33  ;;  %v990_v52 = vmul.f32 %v979_v58, %v3929_v1  ;;  %v994_v50 = vmul.f32 %v980_v9, %v3929_v1  ;;  %v4765_v9 = vld [vmem:[#allocation80_spill] sm:$0xff]  ;;  %v4768_v33 = vld [vmem:[#allocation78_spill] sm:$0xff] }
 0x2b7   : > { %2618 = vmatprep.subr.bf16.mxu0 %v4757_v5  ;;  %2604 = vmatpush1.bf16.msra.mxu1 %v2603_v20  ;;  %v4758_v54 = vpack.c.bf16 %v4001_v37, %v3997_v0  ;;  %v1126_v3 = vpop.permute.xlu1 %1125  ;;  %v1092_v35 = vmul.f32 %v3993_v28, %v4759_v7  ;;  %v1093_v44 = vmul.f32 %v4031_v39, %v4760_v29  ;;  %v1200_v10 = vpop.permute.xlu0 %1199  ;;  %v4761_v37 = vmov 0.0   ;;  %v4771_v5 = vld [vmem:[#allocation55_spill] sm:$0xff]  ;;  %v4772_v7 = vld [vmem:[#allocation77_spill] sm:$0xff] }
 0x2b8   : > { %v1134_v61 = vsel %vm578_vm4, %v1124_v62, %v1126_v3  ;;  %v1154_v45 = vsel %vm578_vm4, %v1126_v3, %v1124_v62  ;;  %2606 = vmatprep.subr.bf16.mxu1 %v2605_v14  ;;  %v2607_v13 = vpack.c.bf16 %v1066_v30, %v990_v52  ;;  %v2623_v59 = vpack.c.bf16 %v1070_v40, %v994_v50  ;;  %v4769_v30 = vld [vmem:[#allocation68_spill] sm:$0xff] }
 0x2b9   : > { %2620 = vmatpush1.bf16.msra.mxu0 %v4758_v54  ;;  %v1168_v46 = vmul.f32 %v1134_v61, %v4044_v32  ;;  %v1169_v0 = vmul.f32 %v1154_v45, %v4047_v31  ;;  %1708 = vmatprep.mubr.f32.mxu1 %v4761_v37  ;;  %v4762_v62 = vpack.c.bf16 %v4126_v11, %v4086_v6  ;;  %v4766_v6 = vld [vmem:[#allocation81_spill] sm:$0xff]  ;;  %v4770_v40 = vld [vmem:[#allocation76_spill] sm:$0xff] }
 0x2ba   : > { %2622 = vmatprep.subr.bf16.mxu0 %v2621_v16  ;;  %1779 = vmatprep.mubr.f32.mxu0 %v4761_v37  ;;  %v890_v43 = vsel %vm501_vm0, %v4764_v17, %v4763_v22  ;;  %v905_v34 = vsel %vm501_vm0, %v4763_v22, %v4764_v17  ;;  %v1361_v11 = vsel %vm644_vm7, %v4766_v6, %v4765_v9  ;;  %v4774_v17 = vld [vmem:[#allocation47_spill] sm:$0xff] }
 0x2bb   : > { %v2627_v15 = vpack.c.bf16 %v1168_v46, %v1092_v35  ;;  %2608 = vmatpush1.bf16.msra.mxu1 %v2607_v13  ;;  %v1130_v27 = vpop.permute.xlu1 %1129  ;;  %v2625_v57 = vpack.c.bf16 %v1169_v0, %v1093_v44  ;;  %v1276_v60 = vpop.permute.xlu0 %1275  ;;  %v1381_v51 = vsel %vm644_vm7, %v4765_v9, %v4766_v6  ;;  %v847_v58 = vmul.f32 %v4769_v30, %v4768_v33  ;;  %v4773_v35 = vld [vmem:[#allocation69_spill] sm:$0xff] }
 0x2bc   : > { %2610 = vmatprep.subr.bf16.mxu1 %v4762_v62  ;;  %v923_v20 = vmul.f32 %v890_v43, %v4770_v40  ;;  %v966_v14 = vsel %vm523_vm2, %v4164_v55, %v4771_v5  ;;  %v1393_v52 = vmul.f32 %v1381_v51, %v4154_v56  ;;  %v1057_v50 = vsel %vm545_vm3, %v4767_v53, %v1037_v2 }
 0x2bd   : > { %2624 = vmatpush1.bf16.msra.mxu0 %v2623_v59  ;;  %v1392_v3 = vmul.f32 %v1361_v11, %v4151_v42  ;;  %v846_v29 = vmul.f32 %v4773_v35, %v4772_v7  ;;  %v922_v44 = vmul.f32 %v905_v34, %v3887_v24  ;;  %v981_v24 = vsel %vm523_vm2, %v4771_v5, %v4164_v55  ;;  %v4775_v11 = vld [vmem:[#allocation46_spill] sm:$0xff] }
 0x2be   : > { %2626 = vmatprep.subr.bf16.mxu0 %v2625_v57  ;;  %v2633_v46 = vpack.c.bf16 %v923_v20, %v847_v58  ;;  %v1074_v0 = vmul.f32 %v1057_v50, %v3950_v41  ;;  %v1097_v43 = vmul.f32 %v4031_v39, %v4774_v17  ;;  %v1096_v51 = vmul.f32 %v3993_v28, %v4775_v11 }
 0x2bf   : > { %2612 = vmatpush1.bf16.msra.mxu1 %v2611_v21  ;;  %v1202_v25 = vpop.permute.xlu1 %1201  ;;  %v4249_v38 = vpop.permute.xlu0 %1203  ;;  %v1042_v21 = vsel %vm545_vm3, %v1037_v2, %v4767_v53 }
 0x2c0   : > { %2614 = vmatprep.subr.bf16.mxu1 %v2613_v4  ;;  %v1210_v16 = vsel %vm600_vm5, %v1200_v10, %v1202_v25  ;;  %v1230_v4 = vsel %vm600_vm5, %v1202_v25, %v1200_v10  ;;  %v1075_v61 = vmul.f32 %v1042_v21, %v3953_v47  ;;  %v1155_v10 = vsel %vm578_vm4, %v1130_v27, %v4209_v19 }
 0x2c1   : > { %2628 = vmatpush1.bf16.msra.mxu0 %v2627_v15  ;;  %v1244_v48 = vmul.f32 %v1210_v16, %v4079_v36  ;;  %v1245_v23 = vmul.f32 %v1230_v4, %v4082_v63  ;;  %v999_v47 = vmul.f32 %v966_v14, %v3926_v8  ;;  %v1135_v25 = vsel %vm578_vm4, %v4209_v19, %v1130_v27 }
 0x2c2   : > { %v1173_v22 = vmul.f32 %v1155_v10, %v4047_v31  ;;  %v998_v8 = vmul.f32 %v981_v24, %v3929_v1  ;;  %v1172_v31 = vmul.f32 %v1135_v25, %v4044_v32 }
 0x2c3   : > { %2616 = vmatpush1.bf16.msra.mxu1 %v2615_v18  ;;  %v1278_v54 = vpop.permute.xlu1 %1277  ;;  %v1280_v59 = vpop.permute.xlu0 %1279  ;;  %v2637_v55 = vpack.c.bf16 %v1075_v61, %v999_v47 }
 0x2c4   : > { %v1286_v45 = vsel %vm622_vm6, %v1276_v60, %v1278_v54  ;;  %v1306_v2 = vsel %vm622_vm6, %v1278_v54, %v1276_v60  ;;  %1660 = vmatprep.subr.mxu1 %v1393_v52  ;;  %v2635_v60 = vpack.c.bf16 %v922_v44, %v846_v29  ;;  %v2639_v19 = vpack.c.bf16 %v1074_v0, %v998_v8 }
 0x2c5   : > { %v1320_v18 = vmul.f32 %v1286_v45, %v4113_v12  ;;  %v1321_v13 = vmul.f32 %v1306_v2, %v4116_v26  ;;  %v2641_v6 = vpack.c.bf16 %v1173_v22, %v1097_v43  ;;  %v2643_v32 = vpack.c.bf16 %v1172_v31, %v1096_v51 }
 0x2c7   : > { %v2631_v15 = vpack.c.bf16 %v1320_v18, %v1244_v48  ;;  %1661 = vmatpush1.msra.mxu1 %v1392_v3  ;;  %v1206_v57 = vpop.permute.xlu1 %1205  ;;  %v2629_v62 = vpack.c.bf16 %v1321_v13, %v1245_v23  ;;  %v1352_v34 = vpop.permute.xlu0 %1351 }
 0x2c8   : > { %2532 = vmatmul.mubr.msk.f32.vlgmr.msra.gmra.mrb[2].mxu1 %vm685_vm8, %v4198_v49  ;;  %2634 = vmatprep.subr.bf16.mxu1 %v2633_v46  ;;  %v1231_v41 = vsel %vm600_vm5, %v1206_v57, %v4249_v38  ;;  %v1211_v39 = vsel %vm600_vm5, %v4249_v38, %v1206_v57 }
 0x2c9   : > { %2636 = vmatpush1.bf16.msra.mxu1 %v2635_v60  ;;  %2630 = vmatprep.subr.bf16.mxu0 %v2629_v62  ;;  %v1249_v53 = vmul.f32 %v1231_v41, %v4082_v63  ;;  %v1248_v28 = vmul.f32 %v1211_v39, %v4079_v36 }
 0x2ca   : > { %2638 = vmatprep.subr.bf16.mxu1 %v2637_v55  ;;  %2632 = vmatpush1.bf16.msra.mxu0 %v2631_v15 }
 0x2cb   : > { %v1282_v27 = vpop.permute.xlu1 %1281  ;;  %1850 = vmatprep.mubr.f32.mxu1 %v4761_v37  ;;  %v1356_v5 = vpop.permute.xlu0 %1355 }
 0x2cc   : > { %v1287_v9 = vsel %vm622_vm6, %v1280_v59, %v1282_v27  ;;  %v1307_v1 = vsel %vm622_vm6, %v1282_v27, %v1280_v59 }
 0x2cd   : > { %v1325_v21 = vmul.f32 %v1307_v1, %v4116_v26  ;;  %2640 = vmatpush1.bf16.msra.mxu1 %v2639_v19  ;;  %v1324_v33 = vmul.f32 %v1287_v9, %v4113_v12 }
 0x2ce   : > { %2642 = vmatprep.subr.bf16.mxu1 %v2641_v6 }
 0x2cf   : > { %v1354_v30 = vpop.permute.xlu1 %1353  ;;  %v2645_v58 = vpack.c.bf16 %v1325_v21, %v1249_v53  ;;  %v2647_v38 = vpack.c.bf16 %v1324_v33, %v1248_v28 }
 0x2d0   : > { %v1362_v40 = vsel %vm644_vm7, %v1352_v34, %v1354_v30  ;;  %v1382_v20 = vsel %vm644_vm7, %v1354_v30, %v1352_v34 }
 0x2d1   : > { %v1396_v63 = vmul.f32 %v1362_v40, %v4151_v42  ;;  %v1397_v26 = vmul.f32 %v1382_v20, %v4154_v56  ;;  %2644 = vmatpush1.bf16.msra.mxu1 %v2643_v32 }
 0x2d2   : > { %2646 = vmatprep.subr.bf16.mxu1 %v2645_v58 }
 0x2d3   : > { %v1358_v14 = vpop.permute.xlu1 %1357  ;;  %1731 = vmatprep.subr.mxu0 %v1397_v26 }
 0x2d4   : > { %v1363_v12 = vsel %vm644_vm7, %v1356_v5, %v1358_v14  ;;  %v1383_v16 = vsel %vm644_vm7, %v1358_v14, %v1356_v5  ;;  %1732 = vmatpush1.msra.mxu0 %v1396_v63 }
 0x2d5   : > { %v1400_v4 = vmul.f32 %v1363_v12, %v4151_v42  ;;  %v1401_v52 = vmul.f32 %v1383_v16, %v4154_v56  ;;  %2648 = vmatpush1.bf16.msra.mxu1 %v2647_v38  ;;  %2533 = vmatmul.mubr.msk.f32.vlgmr.msra.gmra.mrb[4].mxu0 %vm685_vm8, %v4198_v49 }
 0x2d6   : > { %2109 = vmatprep.mubr.f32.mxu0 %v4761_v37 }
 0x2d7   : > { %1802 = vmatprep.subr.mxu1 %v1401_v52 }
 0x2d9   : > { %1803 = vmatpush1.msra.mxu1 %v1400_v4 }
 0x2da   : > { %2534 = vmatmul.mubr.msk.f32.vlgmr.msra.gmra.mrb[4].mxu1 %vm685_vm8, %v4198_v49 }
 0x2db   : > { %2310 = vmatprep.mubr.f32.mxu1 %v4761_v37 }
 0x2dc   : > { %v4333_v36 = vpop.permute.xlu0 %1496 }
 0x388   : > { %v1568_v50 = vpop.f32.mrb[0].mxu1  ;;  %v1639_v54 = vpop.f32.mrb[2].mxu0 }
 0x389   : > { %v1569_v42 = vadd.f32 %v1568_v50, %v4333_v36  ;;  %v1640_v56 = vadd.f32 %v1639_v54, %v4333_v36  ;;  %v1570_v3 = vpop.f32.mrb[1].mxu1  ;;  %v1641_v7 = vpop.f32.mrb[3].mxu0  ;;  %v452_v54 = vld [vmem:[%s387_s15] sm:$0xff] }
 0x38a   : > { %v1571_v35 = vadd.f32 %v1570_v3, %v4333_v36  ;;  %v1642_v29 = vadd.f32 %v1641_v7, %v4333_v36  ;;  %v453_v7 = vld [vmem:[%s387_s15 + $0x8] sm:$0xff] }
 0x38b   : > { %v1859_v44 = vadd.f32 %v1640_v56, %v1569_v42 }
 0x38c   : > { %v1860_v61 = vadd.f32 %v1642_v29, %v1571_v35 }
 0x39b   : > { %v1710_v10 = vpop.f32.mrb[2].mxu1 }
 0x39c   : > { %v1711_v45 = vadd.f32 %v1710_v10, %v4333_v36  ;;  %v1712_v2 = vpop.f32.mrb[3].mxu1 }
 0x39d   : > { %v1713_v48 = vadd.f32 %v1712_v2, %v4333_v36  ;;  %v2770_v2 = vld [vmem:[%s3302_s22 + $0x8] sm:$0xff] }
 0x39e   : > { %v1861_v23 = vadd.f32 %v1859_v44, %v1711_v45 }
 0x39f   : > { %v1862_v18 = vadd.f32 %v1860_v61, %v1713_v48 }
 0x3a8   : > { %v1781_v13 = vpop.f32.mrb[4].mxu0 }
 0x3a9   : > { %v1782_v59 = vadd.f32 %v1781_v13, %v4333_v36  ;;  %v1783_v24 = vpop.f32.mrb[5].mxu0 }
 0x3aa   : > { %v1784_v47 = vadd.f32 %v1783_v24, %v4333_v36 }
 0x3ab   : > { %v1863_v46 = vadd.f32 %v1861_v23, %v1782_v59 }
 0x3ac   : > { %v1864_v0 = vadd.f32 %v1862_v18, %v1784_v47 }
 0x3ad   : > { %v1852_v15 = vpop.f32.mrb[4].mxu1 }
 0x3ae   : > { %v1853_v57 = vadd.f32 %v1852_v15, %v4333_v36  ;;  %v1854_v60 = vpop.f32.mrb[5].mxu1 }
 0x3af   : > { %v1855_v62 = vadd.f32 %v1854_v60, %v4333_v36  ;;  %v4776_v60 = vld [vmem:[#allocation32_spill] sm:$0xff] }
 0x3b0   : > { %v1865_v25 = vadd.f32 %v1863_v46, %v1853_v57 }
 0x3b1   : > { %v1866_v22 = vadd.f32 %v1864_v0, %v1855_v62 }
 0x3b2   : > { %v1867_v55 = vmul.f32 0.2, %v1865_v25  ;;  %v4777_v25 = vld [vmem:[#allocation33_spill] sm:$0xff] }
 0x3b3   : > { %v1868_v8 = vmul.f32 0.2, %v1866_v22 }
 0x3b4   : > { %v1869_v41 = vsub.f32 %v1569_v42, %v1867_v55  ;;  %v1875_v17 = vsub.f32 %v1640_v56, %v1867_v55  ;;  %v1881_v43 = vsub.f32 %v1711_v45, %v1867_v55  ;;  %v1887_v19 = vsub.f32 %v1782_v59, %v1867_v55 }
 0x3b5   : > { %v1893_v31 = vsub.f32 %v1853_v57, %v1867_v55  ;;  %v1870_v27 = vsub.f32 %v1571_v35, %v1868_v8  ;;  %v1876_v34 = vsub.f32 %v1642_v29, %v1868_v8  ;;  %v1882_v9 = vsub.f32 %v1713_v48, %v1868_v8  ;;  %v2769_v29 = vld [vmem:[%s3302_s22] sm:$0xff]  ;;  %v4778_v55 = vld [vmem:[#allocation35_spill] sm:$0xff] }
 0x3b6   : > { %v1871_v1 = vmul.f32 %v1869_v41, %v1869_v41  ;;  %v1877_v6 = vmul.f32 %v1875_v17, %v1875_v17  ;;  %v1883_v21 = vmul.f32 %v1881_v43, %v1881_v43  ;;  %v1888_v39 = vsub.f32 %v1784_v47, %v1868_v8  ;;  %v4779_v41 = vld [vmem:[#allocation34_spill] sm:$0xff] }
 0x3b7   : > { %v1872_v11 = vmul.f32 %v1870_v27, %v1870_v27  ;;  %v1878_v51 = vmul.f32 %v1876_v34, %v1876_v34  ;;  %v1894_v32 = vsub.f32 %v1855_v62, %v1868_v8  ;;  %v1884_v30 = vmul.f32 %v1882_v9, %v1882_v9 }
 0x3b8   : > { %v1879_v53 = vadd.f32 %v1877_v6, %v1871_v1  ;;  %v1889_v40 = vmul.f32 %v1887_v19, %v1887_v19  ;;  %v1890_v28 = vmul.f32 %v1888_v39, %v1888_v39  ;;  %v1895_v26 = vmul.f32 %v1893_v31, %v1893_v31  ;;  %v4780_v1 = vld [vmem:[#allocation38_spill] sm:$0xff] }
 0x3b9   : > { %v1880_v33 = vadd.f32 %v1878_v51, %v1872_v11  ;;  %v1896_v38 = vmul.f32 %v1894_v32, %v1894_v32 }
 0x3ba   : > { %v1885_v58 = vadd.f32 %v1883_v21, %v1879_v53  ;;  %v4781_v53 = vld [vmem:[#allocation39_spill] sm:$0xff] }
 0x3bb   : > { %v1886_v20 = vadd.f32 %v1884_v30, %v1880_v33  ;;  %v4782_v30 = vld [vmem:[#allocation40_spill] sm:$0xff] }
 0x3bc   : > { %v1891_v63 = vadd.f32 %v1889_v40, %v1885_v58  ;;  %v4783_v40 = vld [vmem:[#allocation41_spill] sm:$0xff] }
 0x3bd   : > { %v1892_v5 = vadd.f32 %v1890_v28, %v1886_v20 }
 0x3be   : > { %v1897_v14 = vadd.f32 %v1895_v26, %v1891_v63  ;;  %v4784_v63 = vld [vmem:[#allocation45_spill] sm:$0xff] }
 0x3bf   : > { %v1898_v12 = vadd.f32 %v1896_v38, %v1892_v5 }
 0x3c0   : > { %v1899_v16 = vmul.f32 0.25, %v1897_v14 }
 0x3c1   : > { %v1900_v4 = vmul.f32 0.25, %v1898_v12 }
 0x3c2   : > { %v2535_v52 = vadd.f32 -0.5, %v1899_v16  ;;  %v4785_v16 = vld [vmem:[#allocation42_spill] sm:$0xff] }
 0x3c3   : > { %v2536_v50 = vadd.f32 -0.5, %v1900_v4 }
 0x3c4   : > { %vm1903_vm9 = vcmp.gt.f32.partialorder %v2535_v52, 0.0  ;;  %v4786_v52 = vld [vmem:[#allocation44_spill] sm:$0xff] }
 0x3c5   : > { %v2537_v42 = vsel %vm1903_vm9, 1.0, %v4761_v37  ;;  %vm1904_vm10 = vcmp.gt.f32.partialorder %v2536_v50, 0.0 }
 0x3c6   : > { %v1911_v56 = vsub.f32 1.0, %v2537_v42  ;;  %v2538_v3 = vsel %vm1904_vm10, 1.0, %v4761_v37  ;;  %2319 = vst [vmem:[%s4350_s9] sm:$0xff] %v2537_v42  ;;  %v1909_v44 = vmul.f32 %v2769_v29, %v2537_v42  ;;  %v4787_v42 = vld [vmem:[#allocation43_spill] sm:$0xff] }
 0x3c7   : > { %v1912_v35 = vsub.f32 1.0, %v2538_v3  ;;  %2320 = vst [vmem:[%s4350_s9 + $0x8] sm:$0xff] %v2538_v3  ;;  %v1910_v48 = vmul.f32 %v2770_v2, %v2538_v3  ;;  %v4788_v2 = vld [vmem:[#allocation48_spill] sm:$0xff] }
 0x3c8   : > { %v1913_v61 = vmul.f32 %v1911_v56, %v452_v54 }
 0x3c9   : > { %v1914_v45 = vmul.f32 %v1912_v35, %v453_v7 }
 0x3ca   : > { %v1915_v10 = vadd.f32 %v1913_v61, %v1909_v44 }
 0x3cb   : > { %v1916_v37 = vadd.f32 %v1914_v45, %v1910_v48 }
 0x3cc   : > { %1975 = vrot.lane.b32.xlu1 %v1915_v10, %s3010_s11  ;;  %1922 = vrot.lane.b32.xlu0 %v1915_v10, %s3007_s24  ;;  %v1971_v56 = vmul.f32 %v1915_v10, %v4787_v42 }
 0x3cd   : > { %v1972_v4 = vmul.f32 %v1916_v37, %v4785_v16 }
 0x3d0   : > { %1918 = vrot.lane.b32.xlu1 %v1916_v37, %s3007_s24  ;;  %1935 = vrot.lane.b32.xlu0 %v1915_v10, %s3006_s30 }
 0x3d4   : > { %1932 = vrot.lane.b32.xlu1 %v1916_v37, %s3006_s30  ;;  %1948 = vrot.lane.b32.xlu0 %v1915_v10, %s3008_s23 }
 0x3d8   : > { %1945 = vrot.lane.b32.xlu1 %v1916_v37, %s3008_s23  ;;  %1961 = vrot.lane.b32.xlu0 %v1915_v10, %s3009_s21 }
 0x3dc   : > { %1958 = vrot.lane.b32.xlu1 %v1916_v37, %s3009_s21  ;;  %1977 = vrot.lane.b32.xlu0 %v1916_v37, %s3010_s11 }
 0x3e0   : > { %1988 = vrot.lane.b32.xlu1 %v1915_v10, %s3011_s13  ;;  %1990 = vrot.lane.b32.xlu0 %v1916_v37, %s3011_s13 }
 0x3e4   : > { %2001 = vrot.lane.b32.xlu1 %v1915_v10, %s3014_s16  ;;  %2003 = vrot.lane.b32.xlu0 %v1916_v37, %s3014_s16 }
 0x3e8   : > { %2014 = vrot.lane.b32.xlu1 %v1915_v10, %s3015_s1  ;;  %2016 = vrot.lane.b32.xlu0 %v1916_v37, %s3015_s1  ;;  %v4789_v37 = vld [vmem:[#allocation49_spill] sm:$0xff]  ;;  %v4791_v10 = vld [vmem:[#allocation51_spill] sm:$0xff] }
 0x43e   : > { %v1976_v23 = vpop.permute.xlu1 %1975  ;;  %v1923_v18 = vpop.permute.xlu0 %1922 }
 0x442   : > { %v1919_v13 = vpop.permute.xlu1 %1918  ;;  %v1936_v59 = vpop.permute.xlu0 %1935 }
 0x443   : > { %v1924_v24 = vsel %vm479_vm1, %v1923_v18, %v1919_v13  ;;  %v1927_v47 = vsel %vm479_vm1, %v1919_v13, %v1923_v18  ;;  %v4790_v18 = vld [vmem:[#allocation50_spill] sm:$0xff] }
 0x444   : > { %v1928_v62 = vmul.f32 %v1927_v47, %v4776_v60  ;;  %v1929_v22 = vmul.f32 %v1924_v24, %v4777_v25 }
 0x446   : > { %v1933_v46 = vpop.permute.xlu1 %1932  ;;  %v1949_v0 = vpop.permute.xlu0 %1948 }
 0x447   : > { %v1937_v15 = vsel %vm501_vm0, %v1936_v59, %v1933_v46  ;;  %v1940_v57 = vsel %vm501_vm0, %v1933_v46, %v1936_v59 }
 0x448   : > { %v1941_v8 = vmul.f32 %v1940_v57, %v4778_v55  ;;  %v1942_v17 = vmul.f32 %v1937_v15, %v4779_v41 }
 0x44a   : > { %v2651_v43 = vpack.c.bf16 %v1941_v8, %v1928_v62  ;;  %v1946_v19 = vpop.permute.xlu1 %1945  ;;  %v1962_v31 = vpop.permute.xlu0 %1961  ;;  %v2649_v27 = vpack.c.bf16 %v1942_v17, %v1929_v22  ;;  %v4406_v62 = vld [vmem:[#allocation10 + $0x18] ss:$0 sm:$0xff]  ;;  %v4409_v8 = vld [vmem:[#allocation10 + $0x10] ss:$0 sm:$0xff] }
 0x44b   : > { %v1953_v34 = vsel %vm523_vm2, %v1946_v19, %v1949_v0  ;;  %v1950_v9 = vsel %vm523_vm2, %v1949_v0, %v1946_v19 }
 0x44c   : > { %2650 = vmatprep.subr.bf16.mxu0 %v2649_v27  ;;  %v1954_v6 = vmul.f32 %v1953_v34, %v4780_v1  ;;  %v1955_v21 = vmul.f32 %v1950_v9, %v4781_v53 }
 0x44d   : > { %2652 = vmatpush1.bf16.msra.mxu0 %v2651_v43  ;;  %v2773_v43 = vld [vmem:[%s4553_s4] sm:$0xff] }
 0x44e   : > { %v1959_v11 = vpop.permute.xlu1 %1958  ;;  %v1978_v51 = vpop.permute.xlu0 %1977 }
 0x44f   : > { %v1963_v39 = vsel %vm545_vm3, %v1962_v31, %v1959_v11  ;;  %v1966_v32 = vsel %vm545_vm3, %v1959_v11, %v1962_v31  ;;  %v1983_v33 = vsel %vm578_vm4, %v1978_v51, %v1976_v23  ;;  %v1979_v28 = vsel %vm578_vm4, %v1976_v23, %v1978_v51  ;;  %v4792_v31 = vld [vmem:[#allocation54_spill] sm:$0xff] }
 0x450   : > { %v1967_v58 = vmul.f32 %v1966_v32, %v4782_v30  ;;  %v1968_v20 = vmul.f32 %v1963_v39, %v4783_v40  ;;  %v1985_v26 = vmul.f32 %v1983_v33, %v4784_v63  ;;  %v1984_v50 = vmul.f32 %v1979_v28, %v4786_v52 }
 0x452   : > { %v2655_v5 = vpack.c.bf16 %v1967_v58, %v1954_v6  ;;  %v1989_v38 = vpop.permute.xlu1 %1988  ;;  %v1991_v14 = vpop.permute.xlu0 %1990  ;;  %v2653_v12 = vpack.c.bf16 %v1968_v20, %v1955_v21  ;;  %v2657_v54 = vpack.c.bf16 %v1985_v26, %v1972_v4  ;;  %v2659_v44 = vpack.c.bf16 %v1984_v50, %v1971_v56 }
 0x453   : > { %v1992_v3 = vsel %vm600_vm5, %v1989_v38, %v1991_v14  ;;  %v1996_v7 = vsel %vm600_vm5, %v1991_v14, %v1989_v38 }
 0x454   : > { %2654 = vmatprep.subr.bf16.mxu0 %v2653_v12  ;;  %v1997_v48 = vmul.f32 %v1992_v3, %v4788_v2  ;;  %v1998_v23 = vmul.f32 %v1996_v7, %v4789_v37 }
 0x455   : > { %2656 = vmatpush1.bf16.msra.mxu0 %v2655_v5 }
 0x456   : > { %v2002_v35 = vpop.permute.xlu1 %2001  ;;  %2658 = vmatprep.subr.bf16.mxu0 %v2657_v54  ;;  %v2004_v29 = vpop.permute.xlu0 %2003 }
 0x457   : > { %v2005_v61 = vsel %vm622_vm6, %v2002_v35, %v2004_v29  ;;  %v2009_v45 = vsel %vm622_vm6, %v2004_v29, %v2002_v35 }
 0x458   : > { %v2010_v13 = vmul.f32 %v2005_v61, %v4790_v18  ;;  %v2011_v59 = vmul.f32 %v2009_v45, %v4791_v10 }
 0x459   : > { %2660 = vmatpush1.bf16.msra.mxu0 %v2659_v44 }
 0x45a   : > { %v2663_v24 = vpack.c.bf16 %v2010_v13, %v1997_v48  ;;  %v2015_v47 = vpop.permute.xlu1 %2014  ;;  %v2017_v46 = vpop.permute.xlu0 %2016  ;;  %v2661_v0 = vpack.c.bf16 %v2011_v59, %v1998_v23 }
 0x45b   : > { %v2022_v15 = vsel %vm644_vm7, %v2017_v46, %v2015_v47  ;;  %v2018_v57 = vsel %vm644_vm7, %v2015_v47, %v2017_v46 }
 0x45c   : > { %v2024_v22 = vmul.f32 %v4406_v62, %v2022_v15  ;;  %2662 = vmatprep.subr.bf16.mxu0 %v2661_v0  ;;  %v2023_v17 = vmul.f32 %v4409_v8, %v2018_v57 }
 0x45d   : > { %2664 = vmatpush1.bf16.msra.mxu0 %v2663_v24 }
 0x45e   : > { %2061 = vmatprep.subr.mxu0 %v2024_v22 }
 0x461   : > { %2062 = vmatpush1.msra.mxu0 %v2023_v17 }
 0x462   : > { %2539 = vmatmul.mubr.msk.f32.vlgmr.msra.gmra.mrb[6].mxu0 %vm685_vm8, %v2773_v43 }
 0x535   : > { %v2111_v19 = vpop.f32.mrb[6].mxu0 }
 0x536   : > { %v2112_v27 = vadd.f32 %v2111_v19, %v4792_v31  ;;  %v2113_v34 = vpop.f32.mrb[7].mxu0 }
 0x537   : > { %v2114_v6 = vadd.f32 %v2113_v34, %v4792_v31 }
 0x538   : > { %v2116_v9 = vmax.f32 %v2112_v27, 0.0 }
 0x539   : > { %v2117_v11 = vmax.f32 %v2114_v6, 0.0 }
 0x53a   : > { %2176 = vrot.lane.b32.xlu1 %v2116_v9, %s3010_s11  ;;  %2123 = vrot.lane.b32.xlu0 %v2116_v9, %s3007_s24  ;;  %v2172_v15 = vmul.f32 %v2116_v9, %v4787_v42 }
 0x53e   : > { %2119 = vrot.lane.b32.xlu1 %v2117_v11, %s3007_s24  ;;  %2136 = vrot.lane.b32.xlu0 %v2116_v9, %s3006_s30  ;;  %s2551_s24 = sshll.u32 %s3158_s29, 8 }
 0x542   : > { %2133 = vrot.lane.b32.xlu1 %v2117_v11, %s3006_s30  ;;  %2149 = vrot.lane.b32.xlu0 %v2116_v9, %s3008_s23  ;;  %s4793_s30 = sld [smem:[#allocation24_spill]] }
 0x546   : > { %2146 = vrot.lane.b32.xlu1 %v2117_v11, %s3008_s23  ;;  %2162 = vrot.lane.b32.xlu0 %v2116_v9, %s3009_s21 }
 0x548   : > { %p4796_p9 = scmp.ne.s32.totalorder %s4793_s30, 0 }
 0x54a   : > { %2159 = vrot.lane.b32.xlu1 %v2117_v11, %s3009_s21  ;;  %2178 = vrot.lane.b32.xlu0 %v2117_v11, %s3010_s11  ;;  %s4794_s11 = sld [smem:[#allocation85_spill]] }
 0x54e   : > { %2189 = vrot.lane.b32.xlu1 %v2116_v9, %s3011_s13  ;;  %2191 = vrot.lane.b32.xlu0 %v2117_v11, %s3011_s13 }
 0x550   : > { %s4795_s13 = smov %s4794_s11 }
 0x552   : > { %2202 = vrot.lane.b32.xlu1 %v2116_v9, %s3014_s16  ;;  %2204 = vrot.lane.b32.xlu0 %v2117_v11, %s3014_s16  ;;  %s4476_s16 = scalar_lea.hbm %s4794_s11, %s2551_s24 }
 0x556   : > { %2215 = vrot.lane.b32.xlu1 %v2116_v9, %s3015_s1  ;;  %2217 = vrot.lane.b32.xlu0 %v2117_v11, %s3015_s1  ;;  %s2355_s1 = sshll.u32 %s4350_s9, 4  ;;  %s2356_s1 = int_to_ptr.vmem [resolvable:$true] %s2355_s1 }
 0x557   : > { %s2892_s19 = scalar_lea.vmem %s2356_s1, 256  ;;  %p2899_p3 = scmp.lt.s32.totalorder %s2356_s1, %s2897_s18 }
 0x558   : > { %p2893_p4 = scmp.ne.s32.totalorder %s2356_s1, %s2892_s19  ;;  %p2900_p5 = scmp.lt.s32.totalorder %s2898_s6, %s2892_s19 }
 0x55a   : > { %p2894_p12 = pnand %p2893_p4, %p4796_p9  ;;  %p2901_p7 = por %p2900_p5, %p2899_p3 }
 0x55c   : > { %p2895_p6 = pneg %p2894_p12 }
 0x55e   : > { %p2902_p11 = pnand %p2901_p7, %p2895_p6 }
 0x5ac   : > { %v2177_v51 = vpop.permute.xlu1 %2176  ;;  %v2124_v21 = vpop.permute.xlu0 %2123 }
 0x5b0   : > { %v2120_v39 = vpop.permute.xlu1 %2119  ;;  %v2137_v32 = vpop.permute.xlu0 %2136 }
 0x5b1   : > { %v2125_v33 = vsel %vm479_vm1, %v2124_v21, %v2120_v39  ;;  %v2128_v58 = vsel %vm479_vm1, %v2120_v39, %v2124_v21 }
 0x5b2   : > { %v2129_v38 = vmul.f32 %v2128_v58, %v4776_v60  ;;  %v2130_v14 = vmul.f32 %v2125_v33, %v4777_v25 }
 0x5b4   : > { %v2134_v20 = vpop.permute.xlu1 %2133  ;;  %v2150_v28 = vpop.permute.xlu0 %2149 }
 0x5b5   : > { %v2138_v26 = vsel %vm501_vm0, %v2137_v32, %v2134_v20  ;;  %v2141_v5 = vsel %vm501_vm0, %v2134_v20, %v2137_v32 }
 0x5b6   : > { %v2142_v12 = vmul.f32 %v2141_v5, %v4778_v55  ;;  %v2143_v4 = vmul.f32 %v2138_v26, %v4779_v41 }
 0x5b8   : > { %v2667_v50 = vpack.c.bf16 %v2142_v12, %v2129_v38  ;;  %v2147_v54 = vpop.permute.xlu1 %2146  ;;  %v2163_v56 = vpop.permute.xlu0 %2162  ;;  %v2665_v3 = vpack.c.bf16 %v2143_v4, %v2130_v14 }
 0x5b9   : > { %v2154_v7 = vsel %vm523_vm2, %v2147_v54, %v2150_v28  ;;  %v2151_v35 = vsel %vm523_vm2, %v2150_v28, %v2147_v54 }
 0x5ba   : > { %2666 = vmatprep.subr.bf16.mxu1 %v2665_v3  ;;  %v2155_v29 = vmul.f32 %v2154_v7, %v4780_v1  ;;  %v2156_v25 = vmul.f32 %v2151_v35, %v4781_v53  ;;  %v2173_v53 = vmul.f32 %v2117_v11, %v4785_v16 }
 0x5bb   : > { %2668 = vmatpush1.bf16.msra.mxu1 %v2667_v50 }
 0x5bc   : > { %v2160_v44 = vpop.permute.xlu1 %2159  ;;  %v2179_v60 = vpop.permute.xlu0 %2178 }
 0x5bd   : > { %v2164_v55 = vsel %vm545_vm3, %v2163_v56, %v2160_v44  ;;  %v2167_v41 = vsel %vm545_vm3, %v2160_v44, %v2163_v56  ;;  %v2184_v61 = vsel %vm578_vm4, %v2179_v60, %v2177_v51  ;;  %v2180_v23 = vsel %vm578_vm4, %v2177_v51, %v2179_v60 }
 0x5be   : > { %v2168_v45 = vmul.f32 %v2167_v41, %v4782_v30  ;;  %v2169_v48 = vmul.f32 %v2164_v55, %v4783_v40  ;;  %v2186_v13 = vmul.f32 %v2184_v61, %v4784_v63  ;;  %v2185_v46 = vmul.f32 %v2180_v23, %v4786_v52 }
 0x5c0   : > { %v2671_v59 = vpack.c.bf16 %v2168_v45, %v2155_v29  ;;  %v2190_v1 = vpop.permute.xlu1 %2189  ;;  %v2192_v24 = vpop.permute.xlu0 %2191  ;;  %v2669_v47 = vpack.c.bf16 %v2169_v48, %v2156_v25  ;;  %v2673_v0 = vpack.c.bf16 %v2186_v13, %v2173_v53  ;;  %v2675_v22 = vpack.c.bf16 %v2185_v46, %v2172_v15 }
 0x5c1   : > { %v2193_v30 = vsel %vm600_vm5, %v2190_v1, %v2192_v24  ;;  %v2197_v40 = vsel %vm600_vm5, %v2192_v24, %v2190_v1 }
 0x5c2   : > { %2670 = vmatprep.subr.bf16.mxu1 %v2669_v47  ;;  %v2198_v16 = vmul.f32 %v2193_v30, %v4788_v2  ;;  %v2199_v52 = vmul.f32 %v2197_v40, %v4789_v37 }
 0x5c3   : > { %2672 = vmatpush1.bf16.msra.mxu1 %v2671_v59 }
 0x5c4   : > { %v2203_v57 = vpop.permute.xlu1 %2202  ;;  %2674 = vmatprep.subr.bf16.mxu1 %v2673_v0  ;;  %v2205_v63 = vpop.permute.xlu0 %2204 }
 0x5c5   : > { %v2206_v17 = vsel %vm622_vm6, %v2203_v57, %v2205_v63  ;;  %v2210_v43 = vsel %vm622_vm6, %v2205_v63, %v2203_v57 }
 0x5c6   : > { %v2211_v19 = vmul.f32 %v2206_v17, %v4790_v18  ;;  %v2212_v42 = vmul.f32 %v2210_v43, %v4791_v10 }
 0x5c7   : > { %2676 = vmatpush1.bf16.msra.mxu1 %v2675_v22 }
 0x5c8   : > { %v2679_v31 = vpack.c.bf16 %v2211_v19, %v2198_v16  ;;  %v2216_v27 = vpop.permute.xlu1 %2215  ;;  %v2218_v34 = vpop.permute.xlu0 %2217  ;;  %v2677_v9 = vpack.c.bf16 %v2212_v42, %v2199_v52 }
 0x5c9   : > { %v2223_v6 = vsel %vm644_vm7, %v2218_v34, %v2216_v27  ;;  %v2219_v2 = vsel %vm644_vm7, %v2216_v27, %v2218_v34 }
 0x5ca   : > { %v2225_v37 = vmul.f32 %v4406_v62, %v2223_v6  ;;  %2678 = vmatprep.subr.bf16.mxu1 %v2677_v9  ;;  %v2224_v18 = vmul.f32 %v4409_v8, %v2219_v2 }
 0x5cb   : > { %2680 = vmatpush1.bf16.msra.mxu1 %v2679_v31 }
 0x5cc   : > { %2262 = vmatprep.subr.mxu1 %v2225_v37 }
 0x5cf   : > { %2263 = vmatpush1.msra.mxu1 %v2224_v18 }
 0x5d0   : > { %2540 = vmatmul.mubr.msk.f32.vlgmr.msra.gmra.mrb[6].mxu1 %vm685_vm8, %v4198_v49 }
 0x5d1   : > { %2905 = shalt.err (!%p2902_p11)
}
 0x5d2   : > { %s2906_s20 = scalar_lea.hbm %s4476_s16, 256  ;;  %s2910_s8 = scalar_lea.hbm %s4795_s13, 512 }
 0x5d3   : > { %p2907_p13 = scmp.ne.s32.totalorder %s4476_s16, %s2906_s20  ;;  %p2911_p10 = scmp.lt.u32.totalorder %s4476_s16, %s4795_s13 }
 0x5d4   : > { %p2912_p1 = scmp.lt.u32.totalorder %s2910_s8, %s2906_s20  ;;  %p2914_p4 = scmp.lt.u32.totalorder %s2906_s20, %s4476_s16 }
 0x5d5   : > { %p2908_p2 = pnand %p2907_p13, %p4796_p9 }
 0x5d6   : > { %p2913_p0 = por %p2912_p1, %p2911_p10 }
 0x5d7   : > { %p2909_p8 = pneg %p2908_p2 }
 0x5d8   : > { %p2915_p12 = por %p2914_p4, %p2913_p0 }
 0x5da   : > { %p2916_p6 = pnand %p2915_p12, %p2909_p8 }
 0x5dc   : > { %2919 = shalt.err (!%p2916_p6)
}
 0x5dd   : > { %2695 = dma.vmem_to_hbm [thread:$0]  (%p4796_p9), %s2356_s1, 256, %s4476_s16, %s2327_s27  }
 0x5de   : > { %s442_s15 = scalar_lea.vmem [#allocation12], %s3298_s26  ;;  %s4797_s19 = sld [smem:[#allocation84_spill]] }
 0x5df   : > { %s2341_s23 = sshll.u32 %s442_s15, 4  ;;  %s2322_s26 = scalar_lea.sflag [#allocation6], %s3295_s14  ;;  %s4507_s23 = int_to_ptr.vmem [resolvable:$true] %s2341_s23 }
 0x5e0   : > { %s2920_s16 = scalar_lea.vmem %s4507_s23, 256  ;;  %s3017_s1 = smov [#allocation12]  }
 0x5e1   : > { %p2921_p3 = scmp.ne.s32.totalorder %s4507_s23, %s2920_s16  ;;  %s2924_s29 = sshll.u32 %s3017_s1, 4  ;;  %s2925_s29 = int_to_ptr.vmem [resolvable:$false] %s2924_s29 }
 0x5e2   : > { %s2926_s27 = scalar_lea.vmem %s2925_s29, 512  ;;  %p2927_p11 = scmp.lt.s32.totalorder %s4507_s23, %s2925_s29 }
 0x5e3   : > { %p2922_p5 = pnand %p2921_p3, %p4796_p9  ;;  %p2928_p13 = scmp.lt.s32.totalorder %s2926_s27, %s2920_s16 }
 0x5e4   : > { %s4505_s17 = scalar_lea.hbm %s4797_s19, %s2551_s24 }
 0x5e5   : > { %p2923_p7 = pneg %p2922_p5  ;;  %p2929_p2 = por %p2928_p13, %p2927_p11 }
 0x5e7   : > { %p2930_p8 = pnand %p2929_p2, %p2923_p7 }
 0x6a3   : > { %v2312_v49 = vpop.f32.mrb[6].mxu1 }
 0x6a4   : > { %v2313_v10 = vadd.f32 %v2312_v49, %v4333_v36  ;;  %v2314_v62 = vpop.f32.mrb[7].mxu1 }
 0x6a5   : > { %v2315_v8 = vadd.f32 %v2314_v62, %v4333_v36 }
 0x6a6   : > { %2317 = vst [vmem:[%s442_s15] sm:$0xff] %v2313_v10 }
 0x6a7   : > { %2318 = vst [vmem:[%s442_s15 + $0x8] sm:$0xff] %v2315_v8 }
 0x6a8   : > { %2933 = shalt.err (!%p2930_p8)
}
 0x6a9   : > { %s2934_s14 = scalar_lea.hbm %s4505_s17, 256  ;;  %s2938_s6 = scalar_lea.hbm %s4797_s19, 512 }
 0x6aa   : > { %p2935_p10 = scmp.ne.s32.totalorder %s4505_s17, %s2934_s14  ;;  %p2939_p4 = scmp.lt.u32.totalorder %s4505_s17, %s4797_s19 }
 0x6ab   : > { %p2940_p12 = scmp.lt.u32.totalorder %s2938_s6, %s2934_s14  ;;  %p2942_p3 = scmp.lt.u32.totalorder %s2934_s14, %s4505_s17 }
 0x6ac   : > { %p2936_p1 = pnand %p2935_p10, %p4796_p9 }
 0x6ad   : > { %p2941_p6 = por %p2940_p12, %p2939_p4 }
 0x6ae   : > { %p2937_p0 = pneg %p2936_p1 }
 0x6af   : > { %p2943_p5 = por %p2942_p3, %p2941_p6 }
 0x6b1   : > { %p2944_p7 = pnand %p2943_p5, %p2937_p0 }
 0x6b3   : > { %2947 = shalt.err (!%p2944_p7)
}
 0x6b4   : > { %2694 = dma.vmem_to_hbm [thread:$0]  (%p4796_p9), %s4507_s23, 256, %s4505_s17, %s2322_s26  }
 0x6b5 PF: > { %s4798_s25 = sld [smem:[#allocation20_spill]]  ;;  %s4799_s8 = sld [smem:[#allocation25_spill]] }
 0x6b6   : > { %p4801_p13 = scmp.ge.s32.totalorder %s2998_s12, 2 }
 0x6bb   : > { %s2367_s9 = sand.u32 1, %s4798_s25   ;;  %p4800_p11 = scmp.ne.s32.totalorder %s4799_s8, 0 }
 0x6bc   : > { %s2368_s22 = scalar_lea.sflag [#allocation6], %s2367_s9 }
 0x6bd   : > { %p2713_p2 = pnand %p4801_p13, %p4800_p11 }
 0x6bf   : > { %2977 = dma.done.wait (!%p2713_p2), %s2368_s22, 256  }
 0x6c0   : > { %2979 = vsyncadd (!%p2713_p2), %s2368_s22, 4294967040  ;;  %s2377_s15 = scalar_lea.sflag [#allocation14], %s2367_s9 }
 0x6c1   : > { %2981 = dma.done.wait (!%p2713_p2), %s2377_s15, 256  }
 0x6c2   : > { %2983 = vsyncadd (!%p2713_p2), %s2377_s15, 4294967040  ;;  %s4802_s12 = sld [smem:[#allocation22_spill]]  ;;  %s4803_s21 = sld [smem:[#allocation21_spill]] }
 0x6c3   : > { %s4804_s11 = sld [smem:[#allocation23_spill]]  ;;  %s4805_s30 = smov %s2990_s10 }
 0x6c8   : > { %p30_p9 = scmp.ge.s32.totalorder %s4802_s12, 4   ;;  %s4806_s10 = smov %s4803_s21 }
 0x6ca   :  { %32 = sbr.rel (!%p30_p9) target bundleno = 15 (0xf), region = 142 }
 0x6d1   :  { %2382 = vsyncpa [#allocation5], 1 }
 0x6d2   :  { %2384 = vsyncpa [#allocation5 + $0x1], 1 }
 0x6d3   :  { %2385 = vsyncpa [#allocation8], 1 }
 0x6d4   :  { %2387 = vsyncpa [#allocation8 + $0x1], 1 }
 0x6d5   :  { %2388 = vsyncpa [#allocation11], 1 }
 0x6d6   :  { %2389 = vsyncpa [#allocation6], 1 }
 0x6d7   :  { %2391 = vsyncpa [#allocation6 + $0x1], 1 }
 0x6d8   :  { %2392 = vsyncpa [#allocation14], 1 }
 0x6d9   :  { %2394 = vsyncpa [#allocation14 + $0x1], 1 }

</bundles_post_ra>
